<compile_context>
chip_gen: v6e
topology: v6e:2x2x1
jax: 0.10.0
libtpu: 0.0.40
codegen_flags: <defaults>
</compile_context>

<pallas_src>
import functools
import math

import jax
import jax.numpy as jnp
from jax.experimental import pallas as pl
from jax.experimental.pallas import tpu as pltpu


# ------------------------------- config --------------------------------- #

class Config:
    vocab_size = 64
    hidden_size = 256          # multiple of 128 -> lane-dense tiles everywhere
    num_heads = 2
    head_dim = 128             # lane-aligned head dim
    intermediate_size = 512
    num_layers = 2
    max_position_embeddings = 32
    type_vocab_size = 1
    pad_token_id = 1
    layer_norm_eps = 1e-5
    class_num = 3


# ---------------------------- small helpers ----------------------------- #

def _spec2d(shape):
    """Full-array 2-D BlockSpec for a grid of (1,)."""
    return pl.BlockSpec(shape, lambda i: (0, 0))


def _ln(x, g, b, eps):
    mean = jnp.mean(x, axis=-1, keepdims=True)
    var = jnp.mean(jnp.square(x - mean), axis=-1, keepdims=True)
    return (x - mean) * jax.lax.rsqrt(var + eps) * g + b


# ----------------------- embedding LayerNorm kernel ---------------------- #

def _embed_ln_kernel(x_ref, g_ref, b_ref, o_ref, *, eps):
    x = x_ref[...].astype(jnp.float32)
    o_ref[...] = _ln(x, g_ref[...], b_ref[...], eps).astype(o_ref.dtype)


def embed_layernorm(x, gamma2d, beta2d, eps):
    M, H = x.shape
    return pl.pallas_call(
        functools.partial(_embed_ln_kernel, eps=eps),
        out_shape=jax.ShapeDtypeStruct((M, H), jnp.bfloat16),
        grid_spec=pltpu.PrefetchScalarGridSpec(
            num_scalar_prefetch=0,
            grid=(1,),
            in_specs=[_spec2d((M, H)), _spec2d((1, H)), _spec2d((1, H))],
            out_specs=_spec2d((M, H)),
        ),
        compiler_params=pltpu.CompilerParams(dimension_semantics=("arbitrary",)),
    )(x, gamma2d, beta2d)


# --------------------------- fused encoder layer -------------------------- #

def _encoder_layer_kernel(h_ref, mask_ref,
                          qkv_w_ref, qkv_b_ref, o_w_ref, o_b_ref,
                          ln1_g_ref, ln1_b_ref,
                          i_w_ref, i_b_ref, d_w_ref, d_b_ref,
                          ln2_g_ref, ln2_b_ref,
                          o_ref, *, B, S, nH, dH, eps, scale):
    H = nH * dH
    h_bf = h_ref[...]                               # (B*S, H) bf16
    h_f32 = h_bf.astype(jnp.float32)
    mask = mask_ref[...]                            # (B, S) additive key mask, f32

    # --- fused QKV projection: single MXU pass over the activation slab ---
    qkv = jnp.dot(h_bf, qkv_w_ref[...],
                  preferred_element_type=jnp.float32) + qkv_b_ref[...]  # (B*S, 3H) f32

    # --- attention: (batch, head) statically unrolled (B, nH tiny & static) ---
    ctx_rows = []
    for b in range(B):
        row = qkv[b * S:(b + 1) * S, :]             # (S, 3H) f32
        mask_row = mask[b:b + 1, :]                 # (1, S)
        head_outs = []
        for hd in range(nH):
            q = row[:, hd * dH:(hd + 1) * dH].astype(jnp.bfloat16)
            k = row[:, H + hd * dH:H + (hd + 1) * dH].astype(jnp.bfloat16)
            v = row[:, 2 * H + hd * dH:2 * H + (hd + 1) * dH].astype(jnp.bfloat16)
            # QK^T via dot_general contracting dims (no K transpose / XLU copy)
            s = jax.lax.dot_general(
                q, k, (((1,), (1,)), ((), ())),
                preferred_element_type=jnp.float32) * scale
            s = s + mask_row
            s = s - jnp.max(s, axis=-1, keepdims=True)
            p = jnp.exp(s)
            p = p / jnp.sum(p, axis=-1, keepdims=True)          # exact softmax
            head_outs.append(jnp.dot(p.astype(v.dtype), v,
                                     preferred_element_type=jnp.float32))
        ctx_rows.append(jnp.concatenate(head_outs, axis=-1))    # (S, H) f32
    ctx = jnp.concatenate(ctx_rows, axis=0).astype(jnp.bfloat16)  # (B*S, H)

    # --- output projection + residual + LayerNorm1 ---
    attn_out = jnp.dot(ctx, o_w_ref[...],
                       preferred_element_type=jnp.float32) + o_b_ref[...]
    h1 = _ln(attn_out + h_f32, ln1_g_ref[...], ln1_b_ref[...], eps)   # f32
    h1_bf = h1.astype(jnp.bfloat16)

    # --- FFN up (GELU) / down + residual + LayerNorm2 ---
    inter = jnp.dot(h1_bf, i_w_ref[...],
                    preferred_element_type=jnp.float32) + i_b_ref[...]
    inter = jax.nn.gelu(inter, approximate=True).astype(jnp.bfloat16)
    ffn = jnp.dot(inter, d_w_ref[...],
                  preferred_element_type=jnp.float32) + d_b_ref[...]
    h2 = _ln(ffn + h1, ln2_g_ref[...], ln2_b_ref[...], eps)
    o_ref[...] = h2.astype(o_ref.dtype)


def encoder_layer(h, mask_add, lw, *, B, S, nH, dH, eps):
    M, H = h.shape
    scale = 1.0 / math.sqrt(dH)
    kernel = functools.partial(_encoder_layer_kernel, B=B, S=S, nH=nH, dH=dH,
                               eps=eps, scale=scale)
    args = (h, mask_add,
            lw["qkv_w"], lw["qkv_b"], lw["o_w"], lw["o_b"],
            lw["ln1_g"], lw["ln1_b"],
            lw["i_w"], lw["i_b"], lw["d_w"], lw["d_b"],
            lw["ln2_g"], lw["ln2_b"])
    return pl.pallas_call(
        kernel,
        out_shape=jax.ShapeDtypeStruct((M, H), jnp.bfloat16),
        grid_spec=pltpu.PrefetchScalarGridSpec(
            num_scalar_prefetch=0,
            grid=(1,),
            in_specs=[_spec2d(a.shape) for a in args],
            out_specs=_spec2d((M, H)),
        ),
        compiler_params=pltpu.CompilerParams(dimension_semantics=("arbitrary",)),
    )(*args)


# ------------------------ fused pooler + classifier ----------------------- #

def _pool_fc_kernel(cls_ref, pw_ref, pb_ref, fw_ref, fb_ref, o_ref):
    pooled = jnp.tanh(
        jnp.dot(cls_ref[...], pw_ref[...],
                preferred_element_type=jnp.float32) + pb_ref[...])
    logits = jnp.dot(pooled.astype(fw_ref.dtype), fw_ref[...],
                     preferred_element_type=jnp.float32) + fb_ref[...]
    o_ref[...] = logits


def pool_fc(cls, pool_w, pool_b, fc_w_pad, fc_b_pad):
    B, H = cls.shape
    Np = fc_w_pad.shape[1]
    args = (cls, pool_w, pool_b, fc_w_pad, fc_b_pad)
    return pl.pallas_call(
        _pool_fc_kernel,
        out_shape=jax.ShapeDtypeStruct((B, Np), jnp.float32),
        grid_spec=pltpu.PrefetchScalarGridSpec(
            num_scalar_prefetch=0,
            grid=(1,),
            in_specs=[_spec2d(a.shape) for a in args],
            out_specs=_spec2d((B, Np)),
        ),
        compiler_params=pltpu.CompilerParams(dimension_semantics=("arbitrary",)),
    )(*args)


# ------------------------------- parameters ------------------------------- #

def init_params(cfg, key):
    """Float32 'torch-like' parameters."""
    def nrm(k, shape):
        return 0.02 * jax.random.normal(k, shape, dtype=jnp.float32)

    keys = iter(jax.random.split(key, 8 + cfg.num_layers * 8))
    H, I = cfg.hidden_size, cfg.intermediate_size
    p = {
        "word_emb": nrm(next(keys), (cfg.vocab_size, H)),
        "pos_emb": nrm(next(keys), (cfg.max_position_embeddings, H)),
        "type_emb": nrm(next(keys), (cfg.type_vocab_size, H)),
        "emb_ln_g": jnp.ones((H,), jnp.float32),
        "emb_ln_b": jnp.zeros((H,), jnp.float32),
        "pool_w": nrm(next(keys), (H, H)),
        "pool_b": jnp.zeros((H,), jnp.float32),
        "fc_w": nrm(next(keys), (H, cfg.class_num)),
        "fc_b": jnp.zeros((cfg.class_num,), jnp.float32),
        "layers": [],
    }
    for _ in range(cfg.num_layers):
        qw = nrm(next(keys), (H, H))
        kw = nrm(next(keys), (H, H))
        vw = nrm(next(keys), (H, H))
        p["layers"].append({
            # fused Q/K/V projection: one matmul reads the activation slab once
            "qkv_w": jnp.concatenate([qw, kw, vw], axis=1),
            "qkv_b": jnp.zeros((3 * H,), jnp.float32),
            "o_w": nrm(next(keys), (H, H)), "o_b": jnp.zeros((H,), jnp.float32),
            "ln1_g": jnp.ones((H,), jnp.float32), "ln1_b": jnp.zeros((H,), jnp.float32),
            "i_w": nrm(next(keys), (H, I)), "i_b": jnp.zeros((I,), jnp.float32),
            "d_w": nrm(next(keys), (I, H)), "d_b": jnp.zeros((H,), jnp.float32),
            "ln2_g": jnp.ones((H,), jnp.float32), "ln2_b": jnp.zeros((H,), jnp.float32),
        })
    return p


def prepare_params(params, cfg):
    """One-time cast/pad/reshape of parameters (outside the forward)."""
    def row(v):
        return jnp.asarray(v, jnp.float32).reshape(1, -1)

    H = cfg.hidden_size
    Np = 128  # lane-dense classifier width
    fc_w_pad = jnp.zeros((H, Np), jnp.bfloat16).at[:, :cfg.class_num].set(
        params["fc_w"].astype(jnp.bfloat16))
    fc_b_pad = jnp.zeros((1, Np), jnp.float32).at[0, :cfg.class_num].set(
        params["fc_b"])

    prep = {
        "word_emb": params["word_emb"],
        "pos_emb": params["pos_emb"],
        "type_emb": params["type_emb"],
        "emb_ln_g": row(params["emb_ln_g"]),
        "emb_ln_b": row(params["emb_ln_b"]),
        "pool_w": params["pool_w"].astype(jnp.bfloat16),
        "pool_b": row(params["pool_b"]),
        "fc_w_pad": fc_w_pad,
        "fc_b_pad": fc_b_pad,
        "layers": [],
    }
    for lp in params["layers"]:
        prep["layers"].append({
            "qkv_w": lp["qkv_w"].astype(jnp.bfloat16), "qkv_b": row(lp["qkv_b"]),
            "o_w": lp["o_w"].astype(jnp.bfloat16), "o_b": row(lp["o_b"]),
            "ln1_g": row(lp["ln1_g"]), "ln1_b": row(lp["ln1_b"]),
            "i_w": lp["i_w"].astype(jnp.bfloat16), "i_b": row(lp["i_b"]),
            "d_w": lp["d_w"].astype(jnp.bfloat16), "d_b": row(lp["d_b"]),
            "ln2_g": row(lp["ln2_g"]), "ln2_b": row(lp["ln2_b"]),
        })
    return prep


# -------------------------------- forward --------------------------------- #

def cino_forward(prep, cfg, input_ids, attention_mask):
    B, S = input_ids.shape
    H, nH, dH = cfg.hidden_size, cfg.num_heads, cfg.head_dim

    # --- XLM-R embeddings (gathers / position-id cumsum are plain JAX glue) ---
    not_pad = (input_ids != cfg.pad_token_id).astype(jnp.int32)
    position_ids = jnp.cumsum(not_pad, axis=1) * not_pad + cfg.pad_token_id
    emb = (prep["word_emb"][input_ids]
           + prep["pos_emb"][position_ids]
           + prep["type_emb"][0][None, None, :])                    # (B, S, H) f32

    h = embed_layernorm(emb.reshape(B * S, H), prep["emb_ln_g"],
                        prep["emb_ln_b"], cfg.layer_norm_eps)        # (B*S, H) bf16

    # additive key mask, kept at (B, S) and reused per head inside the kernel
    mask_add = (1.0 - attention_mask.astype(jnp.float32)) * -1e9

    for lw in prep["layers"]:
        h = encoder_layer(h, mask_add, lw, B=B, S=S, nH=nH, dH=dH,
                          eps=cfg.layer_norm_eps)

    # --- pooler: tanh(W @ h[:, 0] + b)  (output[1] of XLMRobertaModel) + fc ---
    cls = h.reshape(B, S, H)[:, 0, :]                                # (B, H) bf16
    logits_padded = pool_fc(cls, prep["pool_w"], prep["pool_b"],
                            prep["fc_w_pad"], prep["fc_b_pad"])      # (B, 128) f32
    return logits_padded[:, :cfg.class_num]


# ---------------------------------- main ----------------------------------- #

if __name__ == "__main__":
    cfg = Config()
    B, S = 2, 8

    key = jax.random.PRNGKey(0)
    k_param, k_ids = jax.random.split(key)
    params = init_params(cfg, k_param)
    prep = prepare_params(params, cfg)          # one-time cast/pad, outside forward

    input_ids = jax.random.randint(k_ids, (B, S), 2, cfg.vocab_size, dtype=jnp.int32)
    # pad the tail of the second sequence (pad token id = 1 for XLM-R)
    input_ids = input_ids.at[1, 5:].set(cfg.pad_token_id)
    attention_mask = (input_ids != cfg.pad_token_id).astype(jnp.int32)

    fwd = jax.jit(lambda ids, m: cino_forward(prep, cfg, ids, m))
    logits = fwd(input_ids, attention_mask)
    jax.block_until_ready(logits)
    assert logits.shape == (B, cfg.class_num)
    assert bool(jnp.all(jnp.isfinite(logits)))
    print("KERNEL_OK")
</pallas_src>

<mosaic_0001>
module attributes {stable_mosaic.version = 11 : i64} {
  func.func @_encoder_layer_kernel(%arg0: i32, %arg1: memref<16x256xbf16, #tpu.memory_space<vmem>>, %arg2: memref<2x8xf32, #tpu.memory_space<vmem>>, %arg3: memref<256x768xbf16, #tpu.memory_space<vmem>>, %arg4: memref<1x768xf32, #tpu.memory_space<vmem>>, %arg5: memref<256x256xbf16, #tpu.memory_space<vmem>>, %arg6: memref<1x256xf32, #tpu.memory_space<vmem>>, %arg7: memref<1x256xf32, #tpu.memory_space<vmem>>, %arg8: memref<1x256xf32, #tpu.memory_space<vmem>>, %arg9: memref<256x512xbf16, #tpu.memory_space<vmem>>, %arg10: memref<1x512xf32, #tpu.memory_space<vmem>>, %arg11: memref<512x256xbf16, #tpu.memory_space<vmem>>, %arg12: memref<1x256xf32, #tpu.memory_space<vmem>>, %arg13: memref<1x256xf32, #tpu.memory_space<vmem>>, %arg14: memref<1x256xf32, #tpu.memory_space<vmem>>, %arg15: memref<16x256xbf16, #tpu.memory_space<vmem>>) attributes {dimension_semantics = [#tpu.dimension_semantics<arbitrary>], iteration_bounds = array<i64: 1>, scalar_prefetch = 0 : i64, scratch_operands = 0 : i64, tpu.core_type = #tpu.core_type<tc>, window_params = [{pipeline_mode = #tpu.pipeline_mode<synchronous>, transform_indices = @transform_0, window_bounds = array<i64: 16, 256>}, {pipeline_mode = #tpu.pipeline_mode<synchronous>, transform_indices = @transform_1, window_bounds = array<i64: 2, 8>}, {pipeline_mode = #tpu.pipeline_mode<synchronous>, transform_indices = @transform_2, window_bounds = array<i64: 256, 768>}, {pipeline_mode = #tpu.pipeline_mode<synchronous>, transform_indices = @transform_3, window_bounds = array<i64: 1, 768>}, {pipeline_mode = #tpu.pipeline_mode<synchronous>, transform_indices = @transform_4, window_bounds = array<i64: 256, 256>}, {pipeline_mode = #tpu.pipeline_mode<synchronous>, transform_indices = @transform_5, window_bounds = array<i64: 1, 256>}, {pipeline_mode = #tpu.pipeline_mode<synchronous>, transform_indices = @transform_6, window_bounds = array<i64: 1, 256>}, {pipeline_mode = #tpu.pipeline_mode<synchronous>, transform_indices = @transform_7, window_bounds = array<i64: 1, 256>}, {pipeline_mode = #tpu.pipeline_mode<synchronous>, transform_indices = @transform_8, window_bounds = array<i64: 256, 512>}, {pipeline_mode = #tpu.pipeline_mode<synchronous>, transform_indices = @transform_9, window_bounds = array<i64: 1, 512>}, {pipeline_mode = #tpu.pipeline_mode<synchronous>, transform_indices = @transform_10, window_bounds = array<i64: 512, 256>}, {pipeline_mode = #tpu.pipeline_mode<synchronous>, transform_indices = @transform_11, window_bounds = array<i64: 1, 256>}, {pipeline_mode = #tpu.pipeline_mode<synchronous>, transform_indices = @transform_12, window_bounds = array<i64: 1, 256>}, {pipeline_mode = #tpu.pipeline_mode<synchronous>, transform_indices = @transform_13, window_bounds = array<i64: 1, 256>}, {pipeline_mode = #tpu.pipeline_mode<synchronous>, transform_indices = @transform_14, window_bounds = array<i64: 16, 256>}]} {
    %c0 = arith.constant 0 : index
    %c0_0 = arith.constant 0 : index
    %0 = vector.load %arg1[%c0, %c0_0] : memref<16x256xbf16, #tpu.memory_space<vmem>>, vector<16x256xbf16>
    %1 = arith.extf %0 : vector<16x256xbf16> to vector<16x256xf32>
    %c0_1 = arith.constant 0 : index
    %c0_2 = arith.constant 0 : index
    %2 = vector.load %arg2[%c0_1, %c0_2] : memref<2x8xf32, #tpu.memory_space<vmem>>, vector<2x8xf32>
    %c0_3 = arith.constant 0 : index
    %c0_4 = arith.constant 0 : index
    %3 = vector.load %arg3[%c0_3, %c0_4] : memref<256x768xbf16, #tpu.memory_space<vmem>>, vector<256x768xbf16>
    %cst = arith.constant dense<0.000000e+00> : vector<16x768xf32>
    %4 = tpu.matmul %0, %3, %cst {dimension_numbers = #tpu.dot_dimension_numbers<[1], [0], [0], [1], [0, 0, 1, 1], [], []>} : vector<16x256xbf16>, vector<256x768xbf16>, vector<16x768xf32> -> vector<16x768xf32>
    %c0_5 = arith.constant 0 : index
    %c0_6 = arith.constant 0 : index
    %5 = vector.load %arg4[%c0_5, %c0_6] : memref<1x768xf32, #tpu.memory_space<vmem>>, vector<1x768xf32>
    %6 = vector.broadcast %5 : vector<1x768xf32> to vector<16x768xf32>
    %7 = arith.addf %4, %6 : vector<16x768xf32>
    %8 = vector.extract_strided_slice %7 {offsets = [0, 0], sizes = [8, 768], strides = [1, 1]} : vector<16x768xf32> to vector<8x768xf32>
    %9 = vector.extract_strided_slice %2 {offsets = [0, 0], sizes = [1, 8], strides = [1, 1]} : vector<2x8xf32> to vector<1x8xf32>
    %10 = vector.extract_strided_slice %8 {offsets = [0, 0], sizes = [8, 128], strides = [1, 1]} : vector<8x768xf32> to vector<8x128xf32>
    %11 = arith.truncf %10 : vector<8x128xf32> to vector<8x128xbf16>
    %12 = vector.extract_strided_slice %8 {offsets = [0, 256], sizes = [8, 128], strides = [1, 1]} : vector<8x768xf32> to vector<8x128xf32>
    %13 = arith.truncf %12 : vector<8x128xf32> to vector<8x128xbf16>
    %14 = vector.extract_strided_slice %8 {offsets = [0, 512], sizes = [8, 128], strides = [1, 1]} : vector<8x768xf32> to vector<8x128xf32>
    %15 = arith.truncf %14 : vector<8x128xf32> to vector<8x128xbf16>
    %cst_7 = arith.constant dense<0.000000e+00> : vector<8x8xf32>
    %16 = tpu.matmul %11, %13, %cst_7 {dimension_numbers = #tpu.dot_dimension_numbers<[1], [1], [0], [0], [0, 0, 1, 0], [], []>} : vector<8x128xbf16>, vector<8x128xbf16>, vector<8x8xf32> -> vector<8x8xf32>
    %cst_8 = arith.constant 0.0883883461 : f32
    %17 = vector.broadcast %cst_8 : f32 to vector<8x8xf32>
    %18 = arith.mulf %16, %17 : vector<8x8xf32>
    %19 = vector.broadcast %9 : vector<1x8xf32> to vector<8x8xf32>
    %20 = arith.addf %18, %19 : vector<8x8xf32>
    %cst_9 = arith.constant dense<0xFF800000> : vector<8xf32>
    %21 = vector.multi_reduction <maximumf>, %20, %cst_9 [1] : vector<8x8xf32> to vector<8xf32>
    %22 = vector.shape_cast %21 : vector<8xf32> to vector<8x1xf32>
    %23 = vector.broadcast %22 : vector<8x1xf32> to vector<8x8xf32>
    %24 = arith.subf %20, %23 : vector<8x8xf32>
    %25 = math.exp %24 : vector<8x8xf32>
    %cst_10 = arith.constant dense<0.000000e+00> : vector<8xf32>
    %26 = vector.multi_reduction <add>, %25, %cst_10 [1] : vector<8x8xf32> to vector<8xf32>
    %27 = vector.shape_cast %26 : vector<8xf32> to vector<8x1xf32>
    %28 = vector.broadcast %27 : vector<8x1xf32> to vector<8x8xf32>
    %29 = arith.divf %25, %28 : vector<8x8xf32>
    %30 = arith.truncf %29 : vector<8x8xf32> to vector<8x8xbf16>
    %cst_11 = arith.constant dense<0.000000e+00> : vector<8x128xf32>
    %31 = tpu.matmul %30, %15, %cst_11 {dimension_numbers = #tpu.dot_dimension_numbers<[1], [0], [0], [1], [0, 0, 1, 1], [], []>} : vector<8x8xbf16>, vector<8x128xbf16>, vector<8x128xf32> -> vector<8x128xf32>
    %32 = vector.extract_strided_slice %8 {offsets = [0, 128], sizes = [8, 128], strides = [1, 1]} : vector<8x768xf32> to vector<8x128xf32>
    %33 = arith.truncf %32 : vector<8x128xf32> to vector<8x128xbf16>
    %34 = vector.extract_strided_slice %8 {offsets = [0, 384], sizes = [8, 128], strides = [1, 1]} : vector<8x768xf32> to vector<8x128xf32>
    %35 = arith.truncf %34 : vector<8x128xf32> to vector<8x128xbf16>
    %36 = vector.extract_strided_slice %8 {offsets = [0, 640], sizes = [8, 128], strides = [1, 1]} : vector<8x768xf32> to vector<8x128xf32>
    %37 = arith.truncf %36 : vector<8x128xf32> to vector<8x128xbf16>
    %cst_12 = arith.constant dense<0.000000e+00> : vector<8x8xf32>
    %38 = tpu.matmul %33, %35, %cst_12 {dimension_numbers = #tpu.dot_dimension_numbers<[1], [1], [0], [0], [0, 0, 1, 0], [], []>} : vector<8x128xbf16>, vector<8x128xbf16>, vector<8x8xf32> -> vector<8x8xf32>
    %cst_13 = arith.constant 0.0883883461 : f32
    %39 = vector.broadcast %cst_13 : f32 to vector<8x8xf32>
    %40 = arith.mulf %38, %39 : vector<8x8xf32>
    %41 = vector.broadcast %9 : vector<1x8xf32> to vector<8x8xf32>
    %42 = arith.addf %40, %41 : vector<8x8xf32>
    %cst_14 = arith.constant dense<0xFF800000> : vector<8xf32>
    %43 = vector.multi_reduction <maximumf>, %42, %cst_14 [1] : vector<8x8xf32> to vector<8xf32>
    %44 = vector.shape_cast %43 : vector<8xf32> to vector<8x1xf32>
    %45 = vector.broadcast %44 : vector<8x1xf32> to vector<8x8xf32>
    %46 = arith.subf %42, %45 : vector<8x8xf32>
    %47 = math.exp %46 : vector<8x8xf32>
    %cst_15 = arith.constant dense<0.000000e+00> : vector<8xf32>
    %48 = vector.multi_reduction <add>, %47, %cst_15 [1] : vector<8x8xf32> to vector<8xf32>
    %49 = vector.shape_cast %48 : vector<8xf32> to vector<8x1xf32>
    %50 = vector.broadcast %49 : vector<8x1xf32> to vector<8x8xf32>
    %51 = arith.divf %47, %50 : vector<8x8xf32>
    %52 = arith.truncf %51 : vector<8x8xf32> to vector<8x8xbf16>
    %cst_16 = arith.constant dense<0.000000e+00> : vector<8x128xf32>
    %53 = tpu.matmul %52, %37, %cst_16 {dimension_numbers = #tpu.dot_dimension_numbers<[1], [0], [0], [1], [0, 0, 1, 1], [], []>} : vector<8x8xbf16>, vector<8x128xbf16>, vector<8x128xf32> -> vector<8x128xf32>
    %54 = tpu.concatenate %31, %53 in 1 : vector<8x128xf32>, vector<8x128xf32> -> vector<8x256xf32>
    %55 = vector.extract_strided_slice %7 {offsets = [8, 0], sizes = [8, 768], strides = [1, 1]} : vector<16x768xf32> to vector<8x768xf32>
    %56 = vector.extract_strided_slice %2 {offsets = [1, 0], sizes = [1, 8], strides = [1, 1]} : vector<2x8xf32> to vector<1x8xf32>
    %57 = vector.extract_strided_slice %55 {offsets = [0, 0], sizes = [8, 128], strides = [1, 1]} : vector<8x768xf32> to vector<8x128xf32>
    %58 = arith.truncf %57 : vector<8x128xf32> to vector<8x128xbf16>
    %59 = vector.extract_strided_slice %55 {offsets = [0, 256], sizes = [8, 128], strides = [1, 1]} : vector<8x768xf32> to vector<8x128xf32>
    %60 = arith.truncf %59 : vector<8x128xf32> to vector<8x128xbf16>
    %61 = vector.extract_strided_slice %55 {offsets = [0, 512], sizes = [8, 128], strides = [1, 1]} : vector<8x768xf32> to vector<8x128xf32>
    %62 = arith.truncf %61 : vector<8x128xf32> to vector<8x128xbf16>
    %cst_17 = arith.constant dense<0.000000e+00> : vector<8x8xf32>
    %63 = tpu.matmul %58, %60, %cst_17 {dimension_numbers = #tpu.dot_dimension_numbers<[1], [1], [0], [0], [0, 0, 1, 0], [], []>} : vector<8x128xbf16>, vector<8x128xbf16>, vector<8x8xf32> -> vector<8x8xf32>
    %cst_18 = arith.constant 0.0883883461 : f32
    %64 = vector.broadcast %cst_18 : f32 to vector<8x8xf32>
    %65 = arith.mulf %63, %64 : vector<8x8xf32>
    %66 = vector.broadcast %56 : vector<1x8xf32> to vector<8x8xf32>
    %67 = arith.addf %65, %66 : vector<8x8xf32>
    %cst_19 = arith.constant dense<0xFF800000> : vector<8xf32>
    %68 = vector.multi_reduction <maximumf>, %67, %cst_19 [1] : vector<8x8xf32> to vector<8xf32>
    %69 = vector.shape_cast %68 : vector<8xf32> to vector<8x1xf32>
    %70 = vector.broadcast %69 : vector<8x1xf32> to vector<8x8xf32>
    %71 = arith.subf %67, %70 : vector<8x8xf32>
    %72 = math.exp %71 : vector<8x8xf32>
    %cst_20 = arith.constant dense<0.000000e+00> : vector<8xf32>
    %73 = vector.multi_reduction <add>, %72, %cst_20 [1] : vector<8x8xf32> to vector<8xf32>
    %74 = vector.shape_cast %73 : vector<8xf32> to vector<8x1xf32>
    %75 = vector.broadcast %74 : vector<8x1xf32> to vector<8x8xf32>
    %76 = arith.divf %72, %75 : vector<8x8xf32>
    %77 = arith.truncf %76 : vector<8x8xf32> to vector<8x8xbf16>
    %cst_21 = arith.constant dense<0.000000e+00> : vector<8x128xf32>
    %78 = tpu.matmul %77, %62, %cst_21 {dimension_numbers = #tpu.dot_dimension_numbers<[1], [0], [0], [1], [0, 0, 1, 1], [], []>} : vector<8x8xbf16>, vector<8x128xbf16>, vector<8x128xf32> -> vector<8x128xf32>
    %79 = vector.extract_strided_slice %55 {offsets = [0, 128], sizes = [8, 128], strides = [1, 1]} : vector<8x768xf32> to vector<8x128xf32>
    %80 = arith.truncf %79 : vector<8x128xf32> to vector<8x128xbf16>
    %81 = vector.extract_strided_slice %55 {offsets = [0, 384], sizes = [8, 128], strides = [1, 1]} : vector<8x768xf32> to vector<8x128xf32>
    %82 = arith.truncf %81 : vector<8x128xf32> to vector<8x128xbf16>
    %83 = vector.extract_strided_slice %55 {offsets = [0, 640], sizes = [8, 128], strides = [1, 1]} : vector<8x768xf32> to vector<8x128xf32>
    %84 = arith.truncf %83 : vector<8x128xf32> to vector<8x128xbf16>
    %cst_22 = arith.constant dense<0.000000e+00> : vector<8x8xf32>
    %85 = tpu.matmul %80, %82, %cst_22 {dimension_numbers = #tpu.dot_dimension_numbers<[1], [1], [0], [0], [0, 0, 1, 0], [], []>} : vector<8x128xbf16>, vector<8x128xbf16>, vector<8x8xf32> -> vector<8x8xf32>
    %cst_23 = arith.constant 0.0883883461 : f32
    %86 = vector.broadcast %cst_23 : f32 to vector<8x8xf32>
    %87 = arith.mulf %85, %86 : vector<8x8xf32>
    %88 = vector.broadcast %56 : vector<1x8xf32> to vector<8x8xf32>
    %89 = arith.addf %87, %88 : vector<8x8xf32>
    %cst_24 = arith.constant dense<0xFF800000> : vector<8xf32>
    %90 = vector.multi_reduction <maximumf>, %89, %cst_24 [1] : vector<8x8xf32> to vector<8xf32>
    %91 = vector.shape_cast %90 : vector<8xf32> to vector<8x1xf32>
    %92 = vector.broadcast %91 : vector<8x1xf32> to vector<8x8xf32>
    %93 = arith.subf %89, %92 : vector<8x8xf32>
    %94 = math.exp %93 : vector<8x8xf32>
    %cst_25 = arith.constant dense<0.000000e+00> : vector<8xf32>
    %95 = vector.multi_reduction <add>, %94, %cst_25 [1] : vector<8x8xf32> to vector<8xf32>
    %96 = vector.shape_cast %95 : vector<8xf32> to vector<8x1xf32>
    %97 = vector.broadcast %96 : vector<8x1xf32> to vector<8x8xf32>
    %98 = arith.divf %94, %97 : vector<8x8xf32>
    %99 = arith.truncf %98 : vector<8x8xf32> to vector<8x8xbf16>
    %cst_26 = arith.constant dense<0.000000e+00> : vector<8x128xf32>
    %100 = tpu.matmul %99, %84, %cst_26 {dimension_numbers = #tpu.dot_dimension_numbers<[1], [0], [0], [1], [0, 0, 1, 1], [], []>} : vector<8x8xbf16>, vector<8x128xbf16>, vector<8x128xf32> -> vector<8x128xf32>
    %101 = tpu.concatenate %78, %100 in 1 : vector<8x128xf32>, vector<8x128xf32> -> vector<8x256xf32>
    %102 = tpu.concatenate %54, %101 in 0 : vector<8x256xf32>, vector<8x256xf32> -> vector<16x256xf32>
    %103 = arith.truncf %102 : vector<16x256xf32> to vector<16x256xbf16>
    %c0_27 = arith.constant 0 : index
    %c0_28 = arith.constant 0 : index
    %104 = vector.load %arg5[%c0_27, %c0_28] : memref<256x256xbf16, #tpu.memory_space<vmem>>, vector<256x256xbf16>
    %cst_29 = arith.constant dense<0.000000e+00> : vector<16x256xf32>
    %105 = tpu.matmul %103, %104, %cst_29 {dimension_numbers = #tpu.dot_dimension_numbers<[1], [0], [0], [1], [0, 0, 1, 1], [], []>} : vector<16x256xbf16>, vector<256x256xbf16>, vector<16x256xf32> -> vector<16x256xf32>
    %c0_30 = arith.constant 0 : index
    %c0_31 = arith.constant 0 : index
    %106 = vector.load %arg6[%c0_30, %c0_31] : memref<1x256xf32, #tpu.memory_space<vmem>>, vector<1x256xf32>
    %107 = vector.broadcast %106 : vector<1x256xf32> to vector<16x256xf32>
    %108 = arith.addf %105, %107 : vector<16x256xf32>
    %109 = arith.addf %108, %1 : vector<16x256xf32>
    %c0_32 = arith.constant 0 : index
    %c0_33 = arith.constant 0 : index
    %110 = vector.load %arg7[%c0_32, %c0_33] : memref<1x256xf32, #tpu.memory_space<vmem>>, vector<1x256xf32>
    %c0_34 = arith.constant 0 : index
    %c0_35 = arith.constant 0 : index
    %111 = vector.load %arg8[%c0_34, %c0_35] : memref<1x256xf32, #tpu.memory_space<vmem>>, vector<1x256xf32>
    %cst_36 = arith.constant dense<0.000000e+00> : vector<16xf32>
    %112 = vector.multi_reduction <add>, %109, %cst_36 [1] : vector<16x256xf32> to vector<16xf32>
    %113 = vector.shape_cast %112 : vector<16xf32> to vector<16x1xf32>
    %cst_37 = arith.constant 2.560000e+02 : f32
    %114 = vector.broadcast %cst_37 : f32 to vector<16x1xf32>
    %115 = arith.divf %113, %114 : vector<16x1xf32>
    %116 = vector.broadcast %115 : vector<16x1xf32> to vector<16x256xf32>
    %117 = arith.subf %109, %116 : vector<16x256xf32>
    %118 = arith.mulf %117, %117 : vector<16x256xf32>
    %cst_38 = arith.constant dense<0.000000e+00> : vector<16xf32>
    %119 = vector.multi_reduction <add>, %118, %cst_38 [1] : vector<16x256xf32> to vector<16xf32>
    %120 = vector.shape_cast %119 : vector<16xf32> to vector<16x1xf32>
    %cst_39 = arith.constant 2.560000e+02 : f32
    %121 = vector.broadcast %cst_39 : f32 to vector<16x1xf32>
    %122 = arith.divf %120, %121 : vector<16x1xf32>
    %123 = vector.broadcast %115 : vector<16x1xf32> to vector<16x256xf32>
    %124 = arith.subf %109, %123 : vector<16x256xf32>
    %cst_40 = arith.constant 9.99999974E-6 : f32
    %125 = vector.broadcast %cst_40 : f32 to vector<16x1xf32>
    %126 = arith.addf %122, %125 : vector<16x1xf32>
    %127 = math.rsqrt %126 : vector<16x1xf32>
    %128 = vector.broadcast %127 : vector<16x1xf32> to vector<16x256xf32>
    %129 = arith.mulf %124, %128 : vector<16x256xf32>
    %130 = vector.broadcast %110 : vector<1x256xf32> to vector<16x256xf32>
    %131 = arith.mulf %129, %130 : vector<16x256xf32>
    %132 = vector.broadcast %111 : vector<1x256xf32> to vector<16x256xf32>
    %133 = arith.addf %131, %132 : vector<16x256xf32>
    %134 = arith.truncf %133 : vector<16x256xf32> to vector<16x256xbf16>
    %c0_41 = arith.constant 0 : index
    %c0_42 = arith.constant 0 : index
    %135 = vector.load %arg9[%c0_41, %c0_42] : memref<256x512xbf16, #tpu.memory_space<vmem>>, vector<256x512xbf16>
    %cst_43 = arith.constant dense<0.000000e+00> : vector<16x512xf32>
    %136 = tpu.matmul %134, %135, %cst_43 {dimension_numbers = #tpu.dot_dimension_numbers<[1], [0], [0], [1], [0, 0, 1, 1], [], []>} : vector<16x256xbf16>, vector<256x512xbf16>, vector<16x512xf32> -> vector<16x512xf32>
    %c0_44 = arith.constant 0 : index
    %c0_45 = arith.constant 0 : index
    %137 = vector.load %arg10[%c0_44, %c0_45] : memref<1x512xf32, #tpu.memory_space<vmem>>, vector<1x512xf32>
    %138 = vector.broadcast %137 : vector<1x512xf32> to vector<16x512xf32>
    %139 = arith.addf %136, %138 : vector<16x512xf32>
    %140 = arith.mulf %139, %139 : vector<16x512xf32>
    %141 = arith.mulf %139, %140 : vector<16x512xf32>
    %cst_46 = arith.constant 4.471500e-02 : f32
    %142 = vector.broadcast %cst_46 : f32 to vector<16x512xf32>
    %143 = arith.mulf %142, %141 : vector<16x512xf32>
    %144 = arith.addf %139, %143 : vector<16x512xf32>
    %cst_47 = arith.constant 0.797884583 : f32
    %145 = vector.broadcast %cst_47 : f32 to vector<16x512xf32>
    %146 = arith.mulf %145, %144 : vector<16x512xf32>
    %147 = math.tanh %146 : vector<16x512xf32>
    %cst_48 = arith.constant 1.000000e+00 : f32
    %148 = vector.broadcast %cst_48 : f32 to vector<16x512xf32>
    %149 = arith.addf %148, %147 : vector<16x512xf32>
    %cst_49 = arith.constant 5.000000e-01 : f32
    %150 = vector.broadcast %cst_49 : f32 to vector<16x512xf32>
    %151 = arith.mulf %150, %149 : vector<16x512xf32>
    %152 = arith.mulf %139, %151 : vector<16x512xf32>
    %153 = arith.truncf %152 : vector<16x512xf32> to vector<16x512xbf16>
    %c0_50 = arith.constant 0 : index
    %c0_51 = arith.constant 0 : index
    %154 = vector.load %arg11[%c0_50, %c0_51] : memref<512x256xbf16, #tpu.memory_space<vmem>>, vector<512x256xbf16>
    %cst_52 = arith.constant dense<0.000000e+00> : vector<16x256xf32>
    %155 = tpu.matmul %153, %154, %cst_52 {dimension_numbers = #tpu.dot_dimension_numbers<[1], [0], [0], [1], [0, 0, 1, 1], [], []>} : vector<16x512xbf16>, vector<512x256xbf16>, vector<16x256xf32> -> vector<16x256xf32>
    %c0_53 = arith.constant 0 : index
    %c0_54 = arith.constant 0 : index
    %156 = vector.load %arg12[%c0_53, %c0_54] : memref<1x256xf32, #tpu.memory_space<vmem>>, vector<1x256xf32>
    %157 = vector.broadcast %156 : vector<1x256xf32> to vector<16x256xf32>
    %158 = arith.addf %155, %157 : vector<16x256xf32>
    %159 = arith.addf %158, %133 : vector<16x256xf32>
    %c0_55 = arith.constant 0 : index
    %c0_56 = arith.constant 0 : index
    %160 = vector.load %arg13[%c0_55, %c0_56] : memref<1x256xf32, #tpu.memory_space<vmem>>, vector<1x256xf32>
    %c0_57 = arith.constant 0 : index
    %c0_58 = arith.constant 0 : index
    %161 = vector.load %arg14[%c0_57, %c0_58] : memref<1x256xf32, #tpu.memory_space<vmem>>, vector<1x256xf32>
    %cst_59 = arith.constant dense<0.000000e+00> : vector<16xf32>
    %162 = vector.multi_reduction <add>, %159, %cst_59 [1] : vector<16x256xf32> to vector<16xf32>
    %163 = vector.shape_cast %162 : vector<16xf32> to vector<16x1xf32>
    %cst_60 = arith.constant 2.560000e+02 : f32
    %164 = vector.broadcast %cst_60 : f32 to vector<16x1xf32>
    %165 = arith.divf %163, %164 : vector<16x1xf32>
    %166 = vector.broadcast %165 : vector<16x1xf32> to vector<16x256xf32>
    %167 = arith.subf %159, %166 : vector<16x256xf32>
    %168 = arith.mulf %167, %167 : vector<16x256xf32>
    %cst_61 = arith.constant dense<0.000000e+00> : vector<16xf32>
    %169 = vector.multi_reduction <add>, %168, %cst_61 [1] : vector<16x256xf32> to vector<16xf32>
    %170 = vector.shape_cast %169 : vector<16xf32> to vector<16x1xf32>
    %cst_62 = arith.constant 2.560000e+02 : f32
    %171 = vector.broadcast %cst_62 : f32 to vector<16x1xf32>
    %172 = arith.divf %170, %171 : vector<16x1xf32>
    %173 = vector.broadcast %165 : vector<16x1xf32> to vector<16x256xf32>
    %174 = arith.subf %159, %173 : vector<16x256xf32>
    %cst_63 = arith.constant 9.99999974E-6 : f32
    %175 = vector.broadcast %cst_63 : f32 to vector<16x1xf32>
    %176 = arith.addf %172, %175 : vector<16x1xf32>
    %177 = math.rsqrt %176 : vector<16x1xf32>
    %178 = vector.broadcast %177 : vector<16x1xf32> to vector<16x256xf32>
    %179 = arith.mulf %174, %178 : vector<16x256xf32>
    %180 = vector.broadcast %160 : vector<1x256xf32> to vector<16x256xf32>
    %181 = arith.mulf %179, %180 : vector<16x256xf32>
    %182 = vector.broadcast %161 : vector<1x256xf32> to vector<16x256xf32>
    %183 = arith.addf %181, %182 : vector<16x256xf32>
    %184 = arith.truncf %183 : vector<16x256xf32> to vector<16x256xbf16>
    %c0_64 = arith.constant 0 : index
    %c0_65 = arith.constant 0 : index
    %185 = vector.load %arg15[%c0_64, %c0_65] : memref<16x256xbf16, #tpu.memory_space<vmem>>, vector<16x256xbf16>
    tpu.vector_store %arg15[%c0_64, %c0_65], %184 {strides = array<i32>} : memref<16x256xbf16, #tpu.memory_space<vmem>>, vector<16x256xbf16>,
    return
  }
  func.func @transform_0(%arg0: i32) -> (i32, i32) {
    %c0_i32 = arith.constant 0 : i32
    %c0_i32_0 = arith.constant 0 : i32
    %c0_i32_1 = arith.constant 0 : i32
    return %c0_i32, %c0_i32_0 : i32, i32
  }
  func.func @transform_1(%arg0: i32) -> (i32, i32) {
    %c0_i32 = arith.constant 0 : i32
    %c0_i32_0 = arith.constant 0 : i32
    %c0_i32_1 = arith.constant 0 : i32
    return %c0_i32, %c0_i32_0 : i32, i32
  }
  func.func @transform_2(%arg0: i32) -> (i32, i32) {
    %c0_i32 = arith.constant 0 : i32
    %c0_i32_0 = arith.constant 0 : i32
    %c0_i32_1 = arith.constant 0 : i32
    return %c0_i32, %c0_i32_0 : i32, i32
  }
  func.func @transform_3(%arg0: i32) -> (i32, i32) {
    %c0_i32 = arith.constant 0 : i32
    %c0_i32_0 = arith.constant 0 : i32
    %c0_i32_1 = arith.constant 0 : i32
    return %c0_i32, %c0_i32_0 : i32, i32
  }
  func.func @transform_4(%arg0: i32) -> (i32, i32) {
    %c0_i32 = arith.constant 0 : i32
    %c0_i32_0 = arith.constant 0 : i32
    %c0_i32_1 = arith.constant 0 : i32
    return %c0_i32, %c0_i32_0 : i32, i32
  }
  func.func @transform_5(%arg0: i32) -> (i32, i32) {
    %c0_i32 = arith.constant 0 : i32
    %c0_i32_0 = arith.constant 0 : i32
    %c0_i32_1 = arith.constant 0 : i32
    return %c0_i32, %c0_i32_0 : i32, i32
  }
  func.func @transform_6(%arg0: i32) -> (i32, i32) {
    %c0_i32 = arith.constant 0 : i32
    %c0_i32_0 = arith.constant 0 : i32
    %c0_i32_1 = arith.constant 0 : i32
    return %c0_i32, %c0_i32_0 : i32, i32
  }
  func.func @transform_7(%arg0: i32) -> (i32, i32) {
    %c0_i32 = arith.constant 0 : i32
    %c0_i32_0 = arith.constant 0 : i32
    %c0_i32_1 = arith.constant 0 : i32
    return %c0_i32, %c0_i32_0 : i32, i32
  }
  func.func @transform_8(%arg0: i32) -> (i32, i32) {
    %c0_i32 = arith.constant 0 : i32
    %c0_i32_0 = arith.constant 0 : i32
    %c0_i32_1 = arith.constant 0 : i32
    return %c0_i32, %c0_i32_0 : i32, i32
  }
  func.func @transform_9(%arg0: i32) -> (i32, i32) {
    %c0_i32 = arith.constant 0 : i32
    %c0_i32_0 = arith.constant 0 : i32
    %c0_i32_1 = arith.constant 0 : i32
    return %c0_i32, %c0_i32_0 : i32, i32
  }
  func.func @transform_10(%arg0: i32) -> (i32, i32) {
    %c0_i32 = arith.constant 0 : i32
    %c0_i32_0 = arith.constant 0 : i32
    %c0_i32_1 = arith.constant 0 : i32
    return %c0_i32, %c0_i32_0 : i32, i32
  }
  func.func @transform_11(%arg0: i32) -> (i32, i32) {
    %c0_i32 = arith.constant 0 : i32
    %c0_i32_0 = arith.constant 0 : i32
    %c0_i32_1 = arith.constant 0 : i32
    return %c0_i32, %c0_i32_0 : i32, i32
  }
  func.func @transform_12(%arg0: i32) -> (i32, i32) {
    %c0_i32 = arith.constant 0 : i32
    %c0_i32_0 = arith.constant 0 : i32
    %c0_i32_1 = arith.constant 0 : i32
    return %c0_i32, %c0_i32_0 : i32, i32
  }
  func.func @transform_13(%arg0: i32) -> (i32, i32) {
    %c0_i32 = arith.constant 0 : i32
    %c0_i32_0 = arith.constant 0 : i32
    %c0_i32_1 = arith.constant 0 : i32
    return %c0_i32, %c0_i32_0 : i32, i32
  }
  func.func @transform_14(%arg0: i32) -> (i32, i32) {
    %c0_i32 = arith.constant 0 : i32
    %c0_i32_0 = arith.constant 0 : i32
    %c0_i32_1 = arith.constant 0 : i32
    return %c0_i32, %c0_i32_0 : i32, i32
  }
}

module attributes {stable_mosaic.version = 11 : i64} {
  func.func @_embed_ln_kernel(%arg0: i32, %arg1: memref<16x256xf32, #tpu.memory_space<vmem>>, %arg2: memref<1x256xf32, #tpu.memory_space<vmem>>, %arg3: memref<1x256xf32, #tpu.memory_space<vmem>>, %arg4: memref<16x256xbf16, #tpu.memory_space<vmem>>) attributes {dimension_semantics = [#tpu.dimension_semantics<arbitrary>], iteration_bounds = array<i64: 1>, scalar_prefetch = 0 : i64, scratch_operands = 0 : i64, tpu.core_type = #tpu.core_type<tc>, window_params = [{pipeline_mode = #tpu.pipeline_mode<synchronous>, transform_indices = @transform_0, window_bounds = array<i64: 16, 256>}, {pipeline_mode = #tpu.pipeline_mode<synchronous>, transform_indices = @transform_1, window_bounds = array<i64: 1, 256>}, {pipeline_mode = #tpu.pipeline_mode<synchronous>, transform_indices = @transform_2, window_bounds = array<i64: 1, 256>}, {pipeline_mode = #tpu.pipeline_mode<synchronous>, transform_indices = @transform_3, window_bounds = array<i64: 16, 256>}]} {
    %c0 = arith.constant 0 : index
    %c0_0 = arith.constant 0 : index
    %0 = vector.load %arg1[%c0, %c0_0] : memref<16x256xf32, #tpu.memory_space<vmem>>, vector<16x256xf32>
    %c0_1 = arith.constant 0 : index
    %c0_2 = arith.constant 0 : index
    %1 = vector.load %arg2[%c0_1, %c0_2] : memref<1x256xf32, #tpu.memory_space<vmem>>, vector<1x256xf32>
    %c0_3 = arith.constant 0 : index
    %c0_4 = arith.constant 0 : index
    %2 = vector.load %arg3[%c0_3, %c0_4] : memref<1x256xf32, #tpu.memory_space<vmem>>, vector<1x256xf32>
    %cst = arith.constant dense<0.000000e+00> : vector<16xf32>
    %3 = vector.multi_reduction <add>, %0, %cst [1] : vector<16x256xf32> to vector<16xf32>
    %4 = vector.shape_cast %3 : vector<16xf32> to vector<16x1xf32>
    %cst_5 = arith.constant 2.560000e+02 : f32
    %5 = vector.broadcast %cst_5 : f32 to vector<16x1xf32>
    %6 = arith.divf %4, %5 : vector<16x1xf32>
    %7 = vector.broadcast %6 : vector<16x1xf32> to vector<16x256xf32>
    %8 = arith.subf %0, %7 : vector<16x256xf32>
    %9 = arith.mulf %8, %8 : vector<16x256xf32>
    %cst_6 = arith.constant dense<0.000000e+00> : vector<16xf32>
    %10 = vector.multi_reduction <add>, %9, %cst_6 [1] : vector<16x256xf32> to vector<16xf32>
    %11 = vector.shape_cast %10 : vector<16xf32> to vector<16x1xf32>
    %cst_7 = arith.constant 2.560000e+02 : f32
    %12 = vector.broadcast %cst_7 : f32 to vector<16x1xf32>
    %13 = arith.divf %11, %12 : vector<16x1xf32>
    %14 = vector.broadcast %6 : vector<16x1xf32> to vector<16x256xf32>
    %15 = arith.subf %0, %14 : vector<16x256xf32>
    %cst_8 = arith.constant 9.99999974E-6 : f32
    %16 = vector.broadcast %cst_8 : f32 to vector<16x1xf32>
    %17 = arith.addf %13, %16 : vector<16x1xf32>
    %18 = math.rsqrt %17 : vector<16x1xf32>
    %19 = vector.broadcast %18 : vector<16x1xf32> to vector<16x256xf32>
    %20 = arith.mulf %15, %19 : vector<16x256xf32>
    %21 = vector.broadcast %1 : vector<1x256xf32> to vector<16x256xf32>
    %22 = arith.mulf %20, %21 : vector<16x256xf32>
    %23 = vector.broadcast %2 : vector<1x256xf32> to vector<16x256xf32>
    %24 = arith.addf %22, %23 : vector<16x256xf32>
    %25 = arith.truncf %24 : vector<16x256xf32> to vector<16x256xbf16>
    %c0_9 = arith.constant 0 : index
    %c0_10 = arith.constant 0 : index
    %26 = vector.load %arg4[%c0_9, %c0_10] : memref<16x256xbf16, #tpu.memory_space<vmem>>, vector<16x256xbf16>
    tpu.vector_store %arg4[%c0_9, %c0_10], %25 {strides = array<i32>} : memref<16x256xbf16, #tpu.memory_space<vmem>>, vector<16x256xbf16>,
    return
  }
  func.func @transform_0(%arg0: i32) -> (i32, i32) {
    %c0_i32 = arith.constant 0 : i32
    %c0_i32_0 = arith.constant 0 : i32
    %c0_i32_1 = arith.constant 0 : i32
    return %c0_i32, %c0_i32_0 : i32, i32
  }
  func.func @transform_1(%arg0: i32) -> (i32, i32) {
    %c0_i32 = arith.constant 0 : i32
    %c0_i32_0 = arith.constant 0 : i32
    %c0_i32_1 = arith.constant 0 : i32
    return %c0_i32, %c0_i32_0 : i32, i32
  }
  func.func @transform_2(%arg0: i32) -> (i32, i32) {
    %c0_i32 = arith.constant 0 : i32
    %c0_i32_0 = arith.constant 0 : i32
    %c0_i32_1 = arith.constant 0 : i32
    return %c0_i32, %c0_i32_0 : i32, i32
  }
  func.func @transform_3(%arg0: i32) -> (i32, i32) {
    %c0_i32 = arith.constant 0 : i32
    %c0_i32_0 = arith.constant 0 : i32
    %c0_i32_1 = arith.constant 0 : i32
    return %c0_i32, %c0_i32_0 : i32, i32
  }
}

module attributes {stable_mosaic.version = 11 : i64} {
  func.func @_encoder_layer_kernel(%arg0: i32, %arg1: memref<16x256xbf16, #tpu.memory_space<vmem>>, %arg2: memref<2x8xf32, #tpu.memory_space<vmem>>, %arg3: memref<256x768xbf16, #tpu.memory_space<vmem>>, %arg4: memref<1x768xf32, #tpu.memory_space<vmem>>, %arg5: memref<256x256xbf16, #tpu.memory_space<vmem>>, %arg6: memref<1x256xf32, #tpu.memory_space<vmem>>, %arg7: memref<1x256xf32, #tpu.memory_space<vmem>>, %arg8: memref<1x256xf32, #tpu.memory_space<vmem>>, %arg9: memref<256x512xbf16, #tpu.memory_space<vmem>>, %arg10: memref<1x512xf32, #tpu.memory_space<vmem>>, %arg11: memref<512x256xbf16, #tpu.memory_space<vmem>>, %arg12: memref<1x256xf32, #tpu.memory_space<vmem>>, %arg13: memref<1x256xf32, #tpu.memory_space<vmem>>, %arg14: memref<1x256xf32, #tpu.memory_space<vmem>>, %arg15: memref<16x256xbf16, #tpu.memory_space<vmem>>) attributes {dimension_semantics = [#tpu.dimension_semantics<arbitrary>], iteration_bounds = array<i64: 1>, scalar_prefetch = 0 : i64, scratch_operands = 0 : i64, tpu.core_type = #tpu.core_type<tc>, window_params = [{pipeline_mode = #tpu.pipeline_mode<synchronous>, transform_indices = @transform_0, window_bounds = array<i64: 16, 256>}, {pipeline_mode = #tpu.pipeline_mode<synchronous>, transform_indices = @transform_1, window_bounds = array<i64: 2, 8>}, {pipeline_mode = #tpu.pipeline_mode<synchronous>, transform_indices = @transform_2, window_bounds = array<i64: 256, 768>}, {pipeline_mode = #tpu.pipeline_mode<synchronous>, transform_indices = @transform_3, window_bounds = array<i64: 1, 768>}, {pipeline_mode = #tpu.pipeline_mode<synchronous>, transform_indices = @transform_4, window_bounds = array<i64: 256, 256>}, {pipeline_mode = #tpu.pipeline_mode<synchronous>, transform_indices = @transform_5, window_bounds = array<i64: 1, 256>}, {pipeline_mode = #tpu.pipeline_mode<synchronous>, transform_indices = @transform_6, window_bounds = array<i64: 1, 256>}, {pipeline_mode = #tpu.pipeline_mode<synchronous>, transform_indices = @transform_7, window_bounds = array<i64: 1, 256>}, {pipeline_mode = #tpu.pipeline_mode<synchronous>, transform_indices = @transform_8, window_bounds = array<i64: 256, 512>}, {pipeline_mode = #tpu.pipeline_mode<synchronous>, transform_indices = @transform_9, window_bounds = array<i64: 1, 512>}, {pipeline_mode = #tpu.pipeline_mode<synchronous>, transform_indices = @transform_10, window_bounds = array<i64: 512, 256>}, {pipeline_mode = #tpu.pipeline_mode<synchronous>, transform_indices = @transform_11, window_bounds = array<i64: 1, 256>}, {pipeline_mode = #tpu.pipeline_mode<synchronous>, transform_indices = @transform_12, window_bounds = array<i64: 1, 256>}, {pipeline_mode = #tpu.pipeline_mode<synchronous>, transform_indices = @transform_13, window_bounds = array<i64: 1, 256>}, {pipeline_mode = #tpu.pipeline_mode<synchronous>, transform_indices = @transform_14, window_bounds = array<i64: 16, 256>}]} {
    %c0 = arith.constant 0 : index
    %c0_0 = arith.constant 0 : index
    %0 = vector.load %arg1[%c0, %c0_0] : memref<16x256xbf16, #tpu.memory_space<vmem>>, vector<16x256xbf16>
    %1 = arith.extf %0 : vector<16x256xbf16> to vector<16x256xf32>
    %c0_1 = arith.constant 0 : index
    %c0_2 = arith.constant 0 : index
    %2 = vector.load %arg2[%c0_1, %c0_2] : memref<2x8xf32, #tpu.memory_space<vmem>>, vector<2x8xf32>
    %c0_3 = arith.constant 0 : index
    %c0_4 = arith.constant 0 : index
    %3 = vector.load %arg3[%c0_3, %c0_4] : memref<256x768xbf16, #tpu.memory_space<vmem>>, vector<256x768xbf16>
    %cst = arith.constant dense<0.000000e+00> : vector<16x768xf32>
    %4 = tpu.matmul %0, %3, %cst {dimension_numbers = #tpu.dot_dimension_numbers<[1], [0], [0], [1], [0, 0, 1, 1], [], []>} : vector<16x256xbf16>, vector<256x768xbf16>, vector<16x768xf32> -> vector<16x768xf32>
    %c0_5 = arith.constant 0 : index
    %c0_6 = arith.constant 0 : index
    %5 = vector.load %arg4[%c0_5, %c0_6] : memref<1x768xf32, #tpu.memory_space<vmem>>, vector<1x768xf32>
    %6 = vector.broadcast %5 : vector<1x768xf32> to vector<16x768xf32>
    %7 = arith.addf %4, %6 : vector<16x768xf32>
    %8 = vector.extract_strided_slice %7 {offsets = [0, 0], sizes = [8, 768], strides = [1, 1]} : vector<16x768xf32> to vector<8x768xf32>
    %9 = vector.extract_strided_slice %2 {offsets = [0, 0], sizes = [1, 8], strides = [1, 1]} : vector<2x8xf32> to vector<1x8xf32>
    %10 = vector.extract_strided_slice %8 {offsets = [0, 0], sizes = [8, 128], strides = [1, 1]} : vector<8x768xf32> to vector<8x128xf32>
    %11 = arith.truncf %10 : vector<8x128xf32> to vector<8x128xbf16>
    %12 = vector.extract_strided_slice %8 {offsets = [0, 256], sizes = [8, 128], strides = [1, 1]} : vector<8x768xf32> to vector<8x128xf32>
    %13 = arith.truncf %12 : vector<8x128xf32> to vector<8x128xbf16>
    %14 = vector.extract_strided_slice %8 {offsets = [0, 512], sizes = [8, 128], strides = [1, 1]} : vector<8x768xf32> to vector<8x128xf32>
    %15 = arith.truncf %14 : vector<8x128xf32> to vector<8x128xbf16>
    %cst_7 = arith.constant dense<0.000000e+00> : vector<8x8xf32>
    %16 = tpu.matmul %11, %13, %cst_7 {dimension_numbers = #tpu.dot_dimension_numbers<[1], [1], [0], [0], [0, 0, 1, 0], [], []>} : vector<8x128xbf16>, vector<8x128xbf16>, vector<8x8xf32> -> vector<8x8xf32>
    %cst_8 = arith.constant 0.0883883461 : f32
    %17 = vector.broadcast %cst_8 : f32 to vector<8x8xf32>
    %18 = arith.mulf %16, %17 : vector<8x8xf32>
    %19 = vector.broadcast %9 : vector<1x8xf32> to vector<8x8xf32>
    %20 = arith.addf %18, %19 : vector<8x8xf32>
    %cst_9 = arith.constant dense<0xFF800000> : vector<8xf32>
    %21 = vector.multi_reduction <maximumf>, %20, %cst_9 [1] : vector<8x8xf32> to vector<8xf32>
    %22 = vector.shape_cast %21 : vector<8xf32> to vector<8x1xf32>
    %23 = vector.broadcast %22 : vector<8x1xf32> to vector<8x8xf32>
    %24 = arith.subf %20, %23 : vector<8x8xf32>
    %25 = math.exp %24 : vector<8x8xf32>
    %cst_10 = arith.constant dense<0.000000e+00> : vector<8xf32>
    %26 = vector.multi_reduction <add>, %25, %cst_10 [1] : vector<8x8xf32> to vector<8xf32>
    %27 = vector.shape_cast %26 : vector<8xf32> to vector<8x1xf32>
    %28 = vector.broadcast %27 : vector<8x1xf32> to vector<8x8xf32>
    %29 = arith.divf %25, %28 : vector<8x8xf32>
    %30 = arith.truncf %29 : vector<8x8xf32> to vector<8x8xbf16>
    %cst_11 = arith.constant dense<0.000000e+00> : vector<8x128xf32>
    %31 = tpu.matmul %30, %15, %cst_11 {dimension_numbers = #tpu.dot_dimension_numbers<[1], [0], [0], [1], [0, 0, 1, 1], [], []>} : vector<8x8xbf16>, vector<8x128xbf16>, vector<8x128xf32> -> vector<8x128xf32>
    %32 = vector.extract_strided_slice %8 {offsets = [0, 128], sizes = [8, 128], strides = [1, 1]} : vector<8x768xf32> to vector<8x128xf32>
    %33 = arith.truncf %32 : vector<8x128xf32> to vector<8x128xbf16>
    %34 = vector.extract_strided_slice %8 {offsets = [0, 384], sizes = [8, 128], strides = [1, 1]} : vector<8x768xf32> to vector<8x128xf32>
    %35 = arith.truncf %34 : vector<8x128xf32> to vector<8x128xbf16>
    %36 = vector.extract_strided_slice %8 {offsets = [0, 640], sizes = [8, 128], strides = [1, 1]} : vector<8x768xf32> to vector<8x128xf32>
    %37 = arith.truncf %36 : vector<8x128xf32> to vector<8x128xbf16>
    %cst_12 = arith.constant dense<0.000000e+00> : vector<8x8xf32>
    %38 = tpu.matmul %33, %35, %cst_12 {dimension_numbers = #tpu.dot_dimension_numbers<[1], [1], [0], [0], [0, 0, 1, 0], [], []>} : vector<8x128xbf16>, vector<8x128xbf16>, vector<8x8xf32> -> vector<8x8xf32>
    %cst_13 = arith.constant 0.0883883461 : f32
    %39 = vector.broadcast %cst_13 : f32 to vector<8x8xf32>
    %40 = arith.mulf %38, %39 : vector<8x8xf32>
    %41 = vector.broadcast %9 : vector<1x8xf32> to vector<8x8xf32>
    %42 = arith.addf %40, %41 : vector<8x8xf32>
    %cst_14 = arith.constant dense<0xFF800000> : vector<8xf32>
    %43 = vector.multi_reduction <maximumf>, %42, %cst_14 [1] : vector<8x8xf32> to vector<8xf32>
    %44 = vector.shape_cast %43 : vector<8xf32> to vector<8x1xf32>
    %45 = vector.broadcast %44 : vector<8x1xf32> to vector<8x8xf32>
    %46 = arith.subf %42, %45 : vector<8x8xf32>
    %47 = math.exp %46 : vector<8x8xf32>
    %cst_15 = arith.constant dense<0.000000e+00> : vector<8xf32>
    %48 = vector.multi_reduction <add>, %47, %cst_15 [1] : vector<8x8xf32> to vector<8xf32>
    %49 = vector.shape_cast %48 : vector<8xf32> to vector<8x1xf32>
    %50 = vector.broadcast %49 : vector<8x1xf32> to vector<8x8xf32>
    %51 = arith.divf %47, %50 : vector<8x8xf32>
    %52 = arith.truncf %51 : vector<8x8xf32> to vector<8x8xbf16>
    %cst_16 = arith.constant dense<0.000000e+00> : vector<8x128xf32>
    %53 = tpu.matmul %52, %37, %cst_16 {dimension_numbers = #tpu.dot_dimension_numbers<[1], [0], [0], [1], [0, 0, 1, 1], [], []>} : vector<8x8xbf16>, vector<8x128xbf16>, vector<8x128xf32> -> vector<8x128xf32>
    %54 = tpu.concatenate %31, %53 in 1 : vector<8x128xf32>, vector<8x128xf32> -> vector<8x256xf32>
    %55 = vector.extract_strided_slice %7 {offsets = [8, 0], sizes = [8, 768], strides = [1, 1]} : vector<16x768xf32> to vector<8x768xf32>
    %56 = vector.extract_strided_slice %2 {offsets = [1, 0], sizes = [1, 8], strides = [1, 1]} : vector<2x8xf32> to vector<1x8xf32>
    %57 = vector.extract_strided_slice %55 {offsets = [0, 0], sizes = [8, 128], strides = [1, 1]} : vector<8x768xf32> to vector<8x128xf32>
    %58 = arith.truncf %57 : vector<8x128xf32> to vector<8x128xbf16>
    %59 = vector.extract_strided_slice %55 {offsets = [0, 256], sizes = [8, 128], strides = [1, 1]} : vector<8x768xf32> to vector<8x128xf32>
    %60 = arith.truncf %59 : vector<8x128xf32> to vector<8x128xbf16>
    %61 = vector.extract_strided_slice %55 {offsets = [0, 512], sizes = [8, 128], strides = [1, 1]} : vector<8x768xf32> to vector<8x128xf32>
    %62 = arith.truncf %61 : vector<8x128xf32> to vector<8x128xbf16>
    %cst_17 = arith.constant dense<0.000000e+00> : vector<8x8xf32>
    %63 = tpu.matmul %58, %60, %cst_17 {dimension_numbers = #tpu.dot_dimension_numbers<[1], [1], [0], [0], [0, 0, 1, 0], [], []>} : vector<8x128xbf16>, vector<8x128xbf16>, vector<8x8xf32> -> vector<8x8xf32>
    %cst_18 = arith.constant 0.0883883461 : f32
    %64 = vector.broadcast %cst_18 : f32 to vector<8x8xf32>
    %65 = arith.mulf %63, %64 : vector<8x8xf32>
    %66 = vector.broadcast %56 : vector<1x8xf32> to vector<8x8xf32>
    %67 = arith.addf %65, %66 : vector<8x8xf32>
    %cst_19 = arith.constant dense<0xFF800000> : vector<8xf32>
    %68 = vector.multi_reduction <maximumf>, %67, %cst_19 [1] : vector<8x8xf32> to vector<8xf32>
    %69 = vector.shape_cast %68 : vector<8xf32> to vector<8x1xf32>
    %70 = vector.broadcast %69 : vector<8x1xf32> to vector<8x8xf32>
    %71 = arith.subf %67, %70 : vector<8x8xf32>
    %72 = math.exp %71 : vector<8x8xf32>
    %cst_20 = arith.constant dense<0.000000e+00> : vector<8xf32>
    %73 = vector.multi_reduction <add>, %72, %cst_20 [1] : vector<8x8xf32> to vector<8xf32>
    %74 = vector.shape_cast %73 : vector<8xf32> to vector<8x1xf32>
    %75 = vector.broadcast %74 : vector<8x1xf32> to vector<8x8xf32>
    %76 = arith.divf %72, %75 : vector<8x8xf32>
    %77 = arith.truncf %76 : vector<8x8xf32> to vector<8x8xbf16>
    %cst_21 = arith.constant dense<0.000000e+00> : vector<8x128xf32>
    %78 = tpu.matmul %77, %62, %cst_21 {dimension_numbers = #tpu.dot_dimension_numbers<[1], [0], [0], [1], [0, 0, 1, 1], [], []>} : vector<8x8xbf16>, vector<8x128xbf16>, vector<8x128xf32> -> vector<8x128xf32>
    %79 = vector.extract_strided_slice %55 {offsets = [0, 128], sizes = [8, 128], strides = [1, 1]} : vector<8x768xf32> to vector<8x128xf32>
    %80 = arith.truncf %79 : vector<8x128xf32> to vector<8x128xbf16>
    %81 = vector.extract_strided_slice %55 {offsets = [0, 384], sizes = [8, 128], strides = [1, 1]} : vector<8x768xf32> to vector<8x128xf32>
    %82 = arith.truncf %81 : vector<8x128xf32> to vector<8x128xbf16>
    %83 = vector.extract_strided_slice %55 {offsets = [0, 640], sizes = [8, 128], strides = [1, 1]} : vector<8x768xf32> to vector<8x128xf32>
    %84 = arith.truncf %83 : vector<8x128xf32> to vector<8x128xbf16>
    %cst_22 = arith.constant dense<0.000000e+00> : vector<8x8xf32>
    %85 = tpu.matmul %80, %82, %cst_22 {dimension_numbers = #tpu.dot_dimension_numbers<[1], [1], [0], [0], [0, 0, 1, 0], [], []>} : vector<8x128xbf16>, vector<8x128xbf16>, vector<8x8xf32> -> vector<8x8xf32>
    %cst_23 = arith.constant 0.0883883461 : f32
    %86 = vector.broadcast %cst_23 : f32 to vector<8x8xf32>
    %87 = arith.mulf %85, %86 : vector<8x8xf32>
    %88 = vector.broadcast %56 : vector<1x8xf32> to vector<8x8xf32>
    %89 = arith.addf %87, %88 : vector<8x8xf32>
    %cst_24 = arith.constant dense<0xFF800000> : vector<8xf32>
    %90 = vector.multi_reduction <maximumf>, %89, %cst_24 [1] : vector<8x8xf32> to vector<8xf32>
    %91 = vector.shape_cast %90 : vector<8xf32> to vector<8x1xf32>
    %92 = vector.broadcast %91 : vector<8x1xf32> to vector<8x8xf32>
    %93 = arith.subf %89, %92 : vector<8x8xf32>
    %94 = math.exp %93 : vector<8x8xf32>
    %cst_25 = arith.constant dense<0.000000e+00> : vector<8xf32>
    %95 = vector.multi_reduction <add>, %94, %cst_25 [1] : vector<8x8xf32> to vector<8xf32>
    %96 = vector.shape_cast %95 : vector<8xf32> to vector<8x1xf32>
    %97 = vector.broadcast %96 : vector<8x1xf32> to vector<8x8xf32>
    %98 = arith.divf %94, %97 : vector<8x8xf32>
    %99 = arith.truncf %98 : vector<8x8xf32> to vector<8x8xbf16>
    %cst_26 = arith.constant dense<0.000000e+00> : vector<8x128xf32>
    %100 = tpu.matmul %99, %84, %cst_26 {dimension_numbers = #tpu.dot_dimension_numbers<[1], [0], [0], [1], [0, 0, 1, 1], [], []>} : vector<8x8xbf16>, vector<8x128xbf16>, vector<8x128xf32> -> vector<8x128xf32>
    %101 = tpu.concatenate %78, %100 in 1 : vector<8x128xf32>, vector<8x128xf32> -> vector<8x256xf32>
    %102 = tpu.concatenate %54, %101 in 0 : vector<8x256xf32>, vector<8x256xf32> -> vector<16x256xf32>
    %103 = arith.truncf %102 : vector<16x256xf32> to vector<16x256xbf16>
    %c0_27 = arith.constant 0 : index
    %c0_28 = arith.constant 0 : index
    %104 = vector.load %arg5[%c0_27, %c0_28] : memref<256x256xbf16, #tpu.memory_space<vmem>>, vector<256x256xbf16>
    %cst_29 = arith.constant dense<0.000000e+00> : vector<16x256xf32>
    %105 = tpu.matmul %103, %104, %cst_29 {dimension_numbers = #tpu.dot_dimension_numbers<[1], [0], [0], [1], [0, 0, 1, 1], [], []>} : vector<16x256xbf16>, vector<256x256xbf16>, vector<16x256xf32> -> vector<16x256xf32>
    %c0_30 = arith.constant 0 : index
    %c0_31 = arith.constant 0 : index
    %106 = vector.load %arg6[%c0_30, %c0_31] : memref<1x256xf32, #tpu.memory_space<vmem>>, vector<1x256xf32>
    %107 = vector.broadcast %106 : vector<1x256xf32> to vector<16x256xf32>
    %108 = arith.addf %105, %107 : vector<16x256xf32>
    %109 = arith.addf %108, %1 : vector<16x256xf32>
    %c0_32 = arith.constant 0 : index
    %c0_33 = arith.constant 0 : index
    %110 = vector.load %arg7[%c0_32, %c0_33] : memref<1x256xf32, #tpu.memory_space<vmem>>, vector<1x256xf32>
    %c0_34 = arith.constant 0 : index
    %c0_35 = arith.constant 0 : index
    %111 = vector.load %arg8[%c0_34, %c0_35] : memref<1x256xf32, #tpu.memory_space<vmem>>, vector<1x256xf32>
    %cst_36 = arith.constant dense<0.000000e+00> : vector<16xf32>
    %112 = vector.multi_reduction <add>, %109, %cst_36 [1] : vector<16x256xf32> to vector<16xf32>
    %113 = vector.shape_cast %112 : vector<16xf32> to vector<16x1xf32>
    %cst_37 = arith.constant 2.560000e+02 : f32
    %114 = vector.broadcast %cst_37 : f32 to vector<16x1xf32>
    %115 = arith.divf %113, %114 : vector<16x1xf32>
    %116 = vector.broadcast %115 : vector<16x1xf32> to vector<16x256xf32>
    %117 = arith.subf %109, %116 : vector<16x256xf32>
    %118 = arith.mulf %117, %117 : vector<16x256xf32>
    %cst_38 = arith.constant dense<0.000000e+00> : vector<16xf32>
    %119 = vector.multi_reduction <add>, %118, %cst_38 [1] : vector<16x256xf32> to vector<16xf32>
    %120 = vector.shape_cast %119 : vector<16xf32> to vector<16x1xf32>
    %cst_39 = arith.constant 2.560000e+02 : f32
    %121 = vector.broadcast %cst_39 : f32 to vector<16x1xf32>
    %122 = arith.divf %120, %121 : vector<16x1xf32>
    %123 = vector.broadcast %115 : vector<16x1xf32> to vector<16x256xf32>
    %124 = arith.subf %109, %123 : vector<16x256xf32>
    %cst_40 = arith.constant 9.99999974E-6 : f32
    %125 = vector.broadcast %cst_40 : f32 to vector<16x1xf32>
    %126 = arith.addf %122, %125 : vector<16x1xf32>
    %127 = math.rsqrt %126 : vector<16x1xf32>
    %128 = vector.broadcast %127 : vector<16x1xf32> to vector<16x256xf32>
    %129 = arith.mulf %124, %128 : vector<16x256xf32>
    %130 = vector.broadcast %110 : vector<1x256xf32> to vector<16x256xf32>
    %131 = arith.mulf %129, %130 : vector<16x256xf32>
    %132 = vector.broadcast %111 : vector<1x256xf32> to vector<16x256xf32>
    %133 = arith.addf %131, %132 : vector<16x256xf32>
    %134 = arith.truncf %133 : vector<16x256xf32> to vector<16x256xbf16>
    %c0_41 = arith.constant 0 : index
    %c0_42 = arith.constant 0 : index
    %135 = vector.load %arg9[%c0_41, %c0_42] : memref<256x512xbf16, #tpu.memory_space<vmem>>, vector<256x512xbf16>
    %cst_43 = arith.constant dense<0.000000e+00> : vector<16x512xf32>
    %136 = tpu.matmul %134, %135, %cst_43 {dimension_numbers = #tpu.dot_dimension_numbers<[1], [0], [0], [1], [0, 0, 1, 1], [], []>} : vector<16x256xbf16>, vector<256x512xbf16>, vector<16x512xf32> -> vector<16x512xf32>
    %c0_44 = arith.constant 0 : index
    %c0_45 = arith.constant 0 : index
    %137 = vector.load %arg10[%c0_44, %c0_45] : memref<1x512xf32, #tpu.memory_space<vmem>>, vector<1x512xf32>
    %138 = vector.broadcast %137 : vector<1x512xf32> to vector<16x512xf32>
    %139 = arith.addf %136, %138 : vector<16x512xf32>
    %140 = arith.mulf %139, %139 : vector<16x512xf32>
    %141 = arith.mulf %139, %140 : vector<16x512xf32>
    %cst_46 = arith.constant 4.471500e-02 : f32
    %142 = vector.broadcast %cst_46 : f32 to vector<16x512xf32>
    %143 = arith.mulf %142, %141 : vector<16x512xf32>
    %144 = arith.addf %139, %143 : vector<16x512xf32>
    %cst_47 = arith.constant 0.797884583 : f32
    %145 = vector.broadcast %cst_47 : f32 to vector<16x512xf32>
    %146 = arith.mulf %145, %144 : vector<16x512xf32>
    %147 = math.tanh %146 : vector<16x512xf32>
    %cst_48 = arith.constant 1.000000e+00 : f32
    %148 = vector.broadcast %cst_48 : f32 to vector<16x512xf32>
    %149 = arith.addf %148, %147 : vector<16x512xf32>
    %cst_49 = arith.constant 5.000000e-01 : f32
    %150 = vector.broadcast %cst_49 : f32 to vector<16x512xf32>
    %151 = arith.mulf %150, %149 : vector<16x512xf32>
    %152 = arith.mulf %139, %151 : vector<16x512xf32>
    %153 = arith.truncf %152 : vector<16x512xf32> to vector<16x512xbf16>
    %c0_50 = arith.constant 0 : index
    %c0_51 = arith.constant 0 : index
    %154 = vector.load %arg11[%c0_50, %c0_51] : memref<512x256xbf16, #tpu.memory_space<vmem>>, vector<512x256xbf16>
    %cst_52 = arith.constant dense<0.000000e+00> : vector<16x256xf32>
    %155 = tpu.matmul %153, %154, %cst_52 {dimension_numbers = #tpu.dot_dimension_numbers<[1], [0], [0], [1], [0, 0, 1, 1], [], []>} : vector<16x512xbf16>, vector<512x256xbf16>, vector<16x256xf32> -> vector<16x256xf32>
    %c0_53 = arith.constant 0 : index
    %c0_54 = arith.constant 0 : index
    %156 = vector.load %arg12[%c0_53, %c0_54] : memref<1x256xf32, #tpu.memory_space<vmem>>, vector<1x256xf32>
    %157 = vector.broadcast %156 : vector<1x256xf32> to vector<16x256xf32>
    %158 = arith.addf %155, %157 : vector<16x256xf32>
    %159 = arith.addf %158, %133 : vector<16x256xf32>
    %c0_55 = arith.constant 0 : index
    %c0_56 = arith.constant 0 : index
    %160 = vector.load %arg13[%c0_55, %c0_56] : memref<1x256xf32, #tpu.memory_space<vmem>>, vector<1x256xf32>
    %c0_57 = arith.constant 0 : index
    %c0_58 = arith.constant 0 : index
    %161 = vector.load %arg14[%c0_57, %c0_58] : memref<1x256xf32, #tpu.memory_space<vmem>>, vector<1x256xf32>
    %cst_59 = arith.constant dense<0.000000e+00> : vector<16xf32>
    %162 = vector.multi_reduction <add>, %159, %cst_59 [1] : vector<16x256xf32> to vector<16xf32>
    %163 = vector.shape_cast %162 : vector<16xf32> to vector<16x1xf32>
    %cst_60 = arith.constant 2.560000e+02 : f32
    %164 = vector.broadcast %cst_60 : f32 to vector<16x1xf32>
    %165 = arith.divf %163, %164 : vector<16x1xf32>
    %166 = vector.broadcast %165 : vector<16x1xf32> to vector<16x256xf32>
    %167 = arith.subf %159, %166 : vector<16x256xf32>
    %168 = arith.mulf %167, %167 : vector<16x256xf32>
    %cst_61 = arith.constant dense<0.000000e+00> : vector<16xf32>
    %169 = vector.multi_reduction <add>, %168, %cst_61 [1] : vector<16x256xf32> to vector<16xf32>
    %170 = vector.shape_cast %169 : vector<16xf32> to vector<16x1xf32>
    %cst_62 = arith.constant 2.560000e+02 : f32
    %171 = vector.broadcast %cst_62 : f32 to vector<16x1xf32>
    %172 = arith.divf %170, %171 : vector<16x1xf32>
    %173 = vector.broadcast %165 : vector<16x1xf32> to vector<16x256xf32>
    %174 = arith.subf %159, %173 : vector<16x256xf32>
    %cst_63 = arith.constant 9.99999974E-6 : f32
    %175 = vector.broadcast %cst_63 : f32 to vector<16x1xf32>
    %176 = arith.addf %172, %175 : vector<16x1xf32>
    %177 = math.rsqrt %176 : vector<16x1xf32>
    %178 = vector.broadcast %177 : vector<16x1xf32> to vector<16x256xf32>
    %179 = arith.mulf %174, %178 : vector<16x256xf32>
    %180 = vector.broadcast %160 : vector<1x256xf32> to vector<16x256xf32>
    %181 = arith.mulf %179, %180 : vector<16x256xf32>
    %182 = vector.broadcast %161 : vector<1x256xf32> to vector<16x256xf32>
    %183 = arith.addf %181, %182 : vector<16x256xf32>
    %184 = arith.truncf %183 : vector<16x256xf32> to vector<16x256xbf16>
    %c0_64 = arith.constant 0 : index
    %c0_65 = arith.constant 0 : index
    %185 = vector.load %arg15[%c0_64, %c0_65] : memref<16x256xbf16, #tpu.memory_space<vmem>>, vector<16x256xbf16>
    tpu.vector_store %arg15[%c0_64, %c0_65], %184 {strides = array<i32>} : memref<16x256xbf16, #tpu.memory_space<vmem>>, vector<16x256xbf16>,
    return
  }
  func.func @transform_0(%arg0: i32) -> (i32, i32) {
    %c0_i32 = arith.constant 0 : i32
    %c0_i32_0 = arith.constant 0 : i32
    %c0_i32_1 = arith.constant 0 : i32
    return %c0_i32, %c0_i32_0 : i32, i32
  }
  func.func @transform_1(%arg0: i32) -> (i32, i32) {
    %c0_i32 = arith.constant 0 : i32
    %c0_i32_0 = arith.constant 0 : i32
    %c0_i32_1 = arith.constant 0 : i32
    return %c0_i32, %c0_i32_0 : i32, i32
  }
  func.func @transform_2(%arg0: i32) -> (i32, i32) {
    %c0_i32 = arith.constant 0 : i32
    %c0_i32_0 = arith.constant 0 : i32
    %c0_i32_1 = arith.constant 0 : i32
    return %c0_i32, %c0_i32_0 : i32, i32
  }
  func.func @transform_3(%arg0: i32) -> (i32, i32) {
    %c0_i32 = arith.constant 0 : i32
    %c0_i32_0 = arith.constant 0 : i32
    %c0_i32_1 = arith.constant 0 : i32
    return %c0_i32, %c0_i32_0 : i32, i32
  }
  func.func @transform_4(%arg0: i32) -> (i32, i32) {
    %c0_i32 = arith.constant 0 : i32
    %c0_i32_0 = arith.constant 0 : i32
    %c0_i32_1 = arith.constant 0 : i32
    return %c0_i32, %c0_i32_0 : i32, i32
  }
  func.func @transform_5(%arg0: i32) -> (i32, i32) {
    %c0_i32 = arith.constant 0 : i32
    %c0_i32_0 = arith.constant 0 : i32
    %c0_i32_1 = arith.constant 0 : i32
    return %c0_i32, %c0_i32_0 : i32, i32
  }
  func.func @transform_6(%arg0: i32) -> (i32, i32) {
    %c0_i32 = arith.constant 0 : i32
    %c0_i32_0 = arith.constant 0 : i32
    %c0_i32_1 = arith.constant 0 : i32
    return %c0_i32, %c0_i32_0 : i32, i32
  }
  func.func @transform_7(%arg0: i32) -> (i32, i32) {
    %c0_i32 = arith.constant 0 : i32
    %c0_i32_0 = arith.constant 0 : i32
    %c0_i32_1 = arith.constant 0 : i32
    return %c0_i32, %c0_i32_0 : i32, i32
  }
  func.func @transform_8(%arg0: i32) -> (i32, i32) {
    %c0_i32 = arith.constant 0 : i32
    %c0_i32_0 = arith.constant 0 : i32
    %c0_i32_1 = arith.constant 0 : i32
    return %c0_i32, %c0_i32_0 : i32, i32
  }
  func.func @transform_9(%arg0: i32) -> (i32, i32) {
    %c0_i32 = arith.constant 0 : i32
    %c0_i32_0 = arith.constant 0 : i32
    %c0_i32_1 = arith.constant 0 : i32
    return %c0_i32, %c0_i32_0 : i32, i32
  }
  func.func @transform_10(%arg0: i32) -> (i32, i32) {
    %c0_i32 = arith.constant 0 : i32
    %c0_i32_0 = arith.constant 0 : i32
    %c0_i32_1 = arith.constant 0 : i32
    return %c0_i32, %c0_i32_0 : i32, i32
  }
  func.func @transform_11(%arg0: i32) -> (i32, i32) {
    %c0_i32 = arith.constant 0 : i32
    %c0_i32_0 = arith.constant 0 : i32
    %c0_i32_1 = arith.constant 0 : i32
    return %c0_i32, %c0_i32_0 : i32, i32
  }
  func.func @transform_12(%arg0: i32) -> (i32, i32) {
    %c0_i32 = arith.constant 0 : i32
    %c0_i32_0 = arith.constant 0 : i32
    %c0_i32_1 = arith.constant 0 : i32
    return %c0_i32, %c0_i32_0 : i32, i32
  }
  func.func @transform_13(%arg0: i32) -> (i32, i32) {
    %c0_i32 = arith.constant 0 : i32
    %c0_i32_0 = arith.constant 0 : i32
    %c0_i32_1 = arith.constant 0 : i32
    return %c0_i32, %c0_i32_0 : i32, i32
  }
  func.func @transform_14(%arg0: i32) -> (i32, i32) {
    %c0_i32 = arith.constant 0 : i32
    %c0_i32_0 = arith.constant 0 : i32
    %c0_i32_1 = arith.constant 0 : i32
    return %c0_i32, %c0_i32_0 : i32, i32
  }
}

module attributes {stable_mosaic.version = 11 : i64} {
  func.func @_pool_fc_kernel(%arg0: i32, %arg1: memref<2x256xbf16, #tpu.memory_space<vmem>>, %arg2: memref<256x256xbf16, #tpu.memory_space<vmem>>, %arg3: memref<1x256xf32, #tpu.memory_space<vmem>>, %arg4: memref<256x128xbf16, #tpu.memory_space<vmem>>, %arg5: memref<1x128xf32, #tpu.memory_space<vmem>>, %arg6: memref<2x128xf32, #tpu.memory_space<vmem>>) attributes {dimension_semantics = [#tpu.dimension_semantics<arbitrary>], iteration_bounds = array<i64: 1>, scalar_prefetch = 0 : i64, scratch_operands = 0 : i64, tpu.core_type = #tpu.core_type<tc>, window_params = [{pipeline_mode = #tpu.pipeline_mode<synchronous>, transform_indices = @transform_0, window_bounds = array<i64: 2, 256>}, {pipeline_mode = #tpu.pipeline_mode<synchronous>, transform_indices = @transform_1, window_bounds = array<i64: 256, 256>}, {pipeline_mode = #tpu.pipeline_mode<synchronous>, transform_indices = @transform_2, window_bounds = array<i64: 1, 256>}, {pipeline_mode = #tpu.pipeline_mode<synchronous>, transform_indices = @transform_3, window_bounds = array<i64: 256, 128>}, {pipeline_mode = #tpu.pipeline_mode<synchronous>, transform_indices = @transform_4, window_bounds = array<i64: 1, 128>}, {pipeline_mode = #tpu.pipeline_mode<synchronous>, transform_indices = @transform_5, window_bounds = array<i64: 2, 128>}]} {
    %c0 = arith.constant 0 : index
    %c0_0 = arith.constant 0 : index
    %0 = vector.load %arg1[%c0, %c0_0] : memref<2x256xbf16, #tpu.memory_space<vmem>>, vector<2x256xbf16>
    %c0_1 = arith.constant 0 : index
    %c0_2 = arith.constant 0 : index
    %1 = vector.load %arg2[%c0_1, %c0_2] : memref<256x256xbf16, #tpu.memory_space<vmem>>, vector<256x256xbf16>
    %cst = arith.constant dense<0.000000e+00> : vector<2x256xf32>
    %2 = tpu.matmul %0, %1, %cst {dimension_numbers = #tpu.dot_dimension_numbers<[1], [0], [0], [1], [0, 0, 1, 1], [], []>} : vector<2x256xbf16>, vector<256x256xbf16>, vector<2x256xf32> -> vector<2x256xf32>
    %c0_3 = arith.constant 0 : index
    %c0_4 = arith.constant 0 : index
    %3 = vector.load %arg3[%c0_3, %c0_4] : memref<1x256xf32, #tpu.memory_space<vmem>>, vector<1x256xf32>
    %4 = vector.broadcast %3 : vector<1x256xf32> to vector<2x256xf32>
    %5 = arith.addf %2, %4 : vector<2x256xf32>
    %6 = math.tanh %5 : vector<2x256xf32>
    %7 = arith.truncf %6 : vector<2x256xf32> to vector<2x256xbf16>
    %c0_5 = arith.constant 0 : index
    %c0_6 = arith.constant 0 : index
    %8 = vector.load %arg4[%c0_5, %c0_6] : memref<256x128xbf16, #tpu.memory_space<vmem>>, vector<256x128xbf16>
    %cst_7 = arith.constant dense<0.000000e+00> : vector<2x128xf32>
    %9 = tpu.matmul %7, %8, %cst_7 {dimension_numbers = #tpu.dot_dimension_numbers<[1], [0], [0], [1], [0, 0, 1, 1], [], []>} : vector<2x256xbf16>, vector<256x128xbf16>, vector<2x128xf32> -> vector<2x128xf32>
    %c0_8 = arith.constant 0 : index
    %c0_9 = arith.constant 0 : index
    %10 = vector.load %arg5[%c0_8, %c0_9] : memref<1x128xf32, #tpu.memory_space<vmem>>, vector<1x128xf32>
    %11 = vector.broadcast %10 : vector<1x128xf32> to vector<2x128xf32>
    %12 = arith.addf %9, %11 : vector<2x128xf32>
    %c0_10 = arith.constant 0 : index
    %c0_11 = arith.constant 0 : index
    %13 = vector.load %arg6[%c0_10, %c0_11] : memref<2x128xf32, #tpu.memory_space<vmem>>, vector<2x128xf32>
    tpu.vector_store %arg6[%c0_10, %c0_11], %12 {strides = array<i32>} : memref<2x128xf32, #tpu.memory_space<vmem>>, vector<2x128xf32>,
    return
  }
  func.func @transform_0(%arg0: i32) -> (i32, i32) {
    %c0_i32 = arith.constant 0 : i32
    %c0_i32_0 = arith.constant 0 : i32
    %c0_i32_1 = arith.constant 0 : i32
    return %c0_i32, %c0_i32_0 : i32, i32
  }
  func.func @transform_1(%arg0: i32) -> (i32, i32) {
    %c0_i32 = arith.constant 0 : i32
    %c0_i32_0 = arith.constant 0 : i32
    %c0_i32_1 = arith.constant 0 : i32
    return %c0_i32, %c0_i32_0 : i32, i32
  }
  func.func @transform_2(%arg0: i32) -> (i32, i32) {
    %c0_i32 = arith.constant 0 : i32
    %c0_i32_0 = arith.constant 0 : i32
    %c0_i32_1 = arith.constant 0 : i32
    return %c0_i32, %c0_i32_0 : i32, i32
  }
  func.func @transform_3(%arg0: i32) -> (i32, i32) {
    %c0_i32 = arith.constant 0 : i32
    %c0_i32_0 = arith.constant 0 : i32
    %c0_i32_1 = arith.constant 0 : i32
    return %c0_i32, %c0_i32_0 : i32, i32
  }
  func.func @transform_4(%arg0: i32) -> (i32, i32) {
    %c0_i32 = arith.constant 0 : i32
    %c0_i32_0 = arith.constant 0 : i32
    %c0_i32_1 = arith.constant 0 : i32
    return %c0_i32, %c0_i32_0 : i32, i32
  }
  func.func @transform_5(%arg0: i32) -> (i32, i32) {
    %c0_i32 = arith.constant 0 : i32
    %c0_i32_0 = arith.constant 0 : i32
    %c0_i32_1 = arith.constant 0 : i32
    return %c0_i32, %c0_i32_0 : i32, i32
  }
}

</mosaic_0001>

<bundles_post_ra>
// kernel: _lambda_.4
= control target key start
LH: loop header
LB: loop body
LE: loop exit
PB: predicated region body
PF: predicated region fallthrough
CT: control target
= control target key end

     0   :  { %v54_v24 = vlaneseq  ;;  %s153_s0 = inlined_call_operand.vmem [shape: f32[16,256], index: 0, kind: input, shape index: {}]   ;;  %s154_s1 = inlined_call_operand.vmem [shape: f32[1,256], index: 1, kind: input, shape index: {}]   ;;  %s155_s2 = inlined_call_operand.vmem [shape: f32[1,256], index: 2, kind: input, shape index: {}]   ;;  %s156_s3 = inlined_call_operand.vmem [shape: bf16[16,256], index: 3, kind: output, shape index: {}]  }
   0x1   :  { %v14_v0 = vld [vmem:[%s153_s0] sm:$0xff]  ;;  %v15_v1 = vld [vmem:[%s153_s0 + $0x8] sm:$0xff]  ;;  %v16_v2 = vld [vmem:[%s153_s0 + $0x10] sm:$0xff] }
   0x2   :  { %v20_v3 = vadd.f32 %v15_v1, %v14_v0  ;;  %v17_v4 = vld [vmem:[%s153_s0 + $0x18] sm:$0xff]  ;;  %v55_v27 = vshrl.u32 %v54_v24, 7  ;;  %v18_v30 = vld [vmem:[%s154_s1] sm:$0x3] }
   0x3   :  { %v23_v5 = vadd.f32 %v17_v4, %v16_v2  ;;  %v19_v31 = vld [vmem:[%s155_s2] sm:$0x3] }
   0x4   :  { %21 = vadd.xlane.f32.xlu0 %v20_v3  ;;  %v56_v28 = vsub.s32 0, %v55_v27  ;;  %v60_v29 = vsub.s32 1, %v55_v27 }
   0x6   :  { %v57_v32 = vrot.slane %v18_v30, %v56_v28  ;;  %v61_v33 = vrot.slane %v18_v30, %v60_v29  ;;  %v72_v35 = vrot.slane %v19_v31, %v56_v28  ;;  %v76_v36 = vrot.slane %v19_v31, %v60_v29 }
   0x8   :  { %24 = vadd.xlane.f32.xlu0 %v23_v5 }
  0x8d   :  { %v22_v6 = vpop.xlane.xlu0 %21 }
  0x8e   :  { %v27_v7 = vmul.f32 0.00390625, %v22_v6 }
  0x90   :  { %v29_v8 = vsub.f32 %v14_v0, %v27_v7  ;;  %v30_v9 = vsub.f32 %v15_v1, %v27_v7 }
  0x91   :  { %v25_v10 = vpop.xlane.xlu0 %24 }
  0x92   :  { %v28_v11 = vmul.f32 0.00390625, %v25_v10  ;;  %v33_v12 = vmul.f32 %v29_v8, %v29_v8  ;;  %v34_v13 = vmul.f32 %v30_v9, %v30_v9 }
  0x94   :  { %v31_v14 = vsub.f32 %v16_v2, %v28_v11  ;;  %v32_v15 = vsub.f32 %v17_v4, %v28_v11  ;;  %v37_v16 = vadd.f32 %v34_v13, %v33_v12 }
  0x96   :  { %38 = vadd.xlane.f32.xlu1 %v37_v16  ;;  %v35_v17 = vmul.f32 %v31_v14, %v31_v14  ;;  %v36_v18 = vmul.f32 %v32_v15, %v32_v15 }
  0x98   :  { %v40_v19 = vadd.f32 %v36_v18, %v35_v17 }
  0x9a   :  { %41 = vadd.xlane.f32.xlu1 %v40_v19 }
 0x11f   :  { %v39_v20 = vpop.xlane.xlu1 %38 }
 0x120   :  { %v43_v21 = vmul.f32 0.00390625, %v39_v20 }
 0x122   :  { %v45_v22 = vadd.f32 1e-05, %v43_v21 }
 0x123   :  { %v42_v23 = vpop.xlane.xlu1 %41 }
 0x124   :  { %105 = vrsqrt.f32 %v45_v22  ;;  %v44_v25 = vmul.f32 0.00390625, %v42_v23 }
 0x126   :  { %v46_v26 = vadd.f32 1e-05, %v44_v25 }
 0x128   :  { %107 = vrsqrt.f32 %v46_v26 }
 0x131   :  { %v106_v34 = vpop.eup %105 }
 0x132   :  { %v49_v37 = vmul.f32 %v106_v34, %v29_v8  ;;  %v50_v38 = vmul.f32 %v106_v34, %v30_v9 }
 0x134   :  { %v64_v39 = vmul.f32 %v57_v32, %v49_v37  ;;  %v65_v40 = vmul.f32 %v61_v33, %v50_v38 }
 0x135   :  { %v108_v41 = vpop.eup %107 }
 0x136   :  { %v79_v42 = vadd.f32 %v72_v35, %v64_v39  ;;  %v80_v43 = vadd.f32 %v76_v36, %v65_v40  ;;  %v51_v44 = vmul.f32 %v108_v41, %v31_v14  ;;  %v52_v45 = vmul.f32 %v108_v41, %v32_v15 }
 0x138   :  { %v103_v46 = vpack.c.bf16 %v80_v43, %v79_v42  ;;  %v66_v47 = vmul.f32 %v57_v32, %v51_v44  ;;  %v67_v48 = vmul.f32 %v61_v33, %v52_v45 }
 0x13a   :  { %95 = vst [vmem:[%s156_s3] sm:$0xff] %v103_v46  ;;  %v81_v49 = vadd.f32 %v72_v35, %v66_v47  ;;  %v82_v50 = vadd.f32 %v76_v36, %v67_v48 }
 0x13c   :  { %v104_v51 = vpack.c.bf16 %v82_v50, %v81_v49 }
 0x13e   :  { %96 = vst [vmem:[%s156_s3 + $0x8] sm:$0xff] %v104_v51 }

// kernel: _lambda_.7
= control target key start
LH: loop header
LB: loop body
LE: loop exit
PB: predicated region body
PF: predicated region fallthrough
CT: control target
= control target key end

     0   :  { %v57_v9 = vlaneseq  ;;  %v651_v10 = vmov 1966171168   ;;  %s844_s0 = inlined_call_operand.vmem [shape: bf16[2,256], index: 0, kind: input, shape index: {}]   ;;  %s845_s1 = inlined_call_operand.vmem [shape: bf16[256,256], index: 1, kind: input, shape index: {}]   ;;  %s846_s2 = inlined_call_operand.vmem [shape: f32[1,256], index: 2, kind: input, shape index: {}]   ;;  %s847_s3 = inlined_call_operand.vmem [shape: bf16[256,128], index: 3, kind: input, shape index: {}]   ;;  %s848_s4 = inlined_call_operand.vmem [shape: f32[1,128], index: 4, kind: input, shape index: {}]   ;;  %s849_s5 = inlined_call_operand.hbm [shape: f32[2,128], index: 5, kind: output, shape index: {}]  }
   0x1   :  { %v561_v0 = vld [vmem:[%s845_s1 + $0x74] ss:$8 sps:$4 sm:$0xff]   ;;  %v563_v1 = vld [vmem:[%s845_s1 + $0x70] ss:$8 sps:$4 sm:$0xff]   ;;  %v564_v2 = vld [vmem:[%s845_s1 + $0x64] ss:$8 sps:$4 sm:$0xff]   ;;  %v77_v11 = vunpack.c.l.s4 %v651_v10 }
   0x2   :  { %252 = vmatprep.subr.bf16.mxu0 %v561_v0  ;;  %v566_v3 = vld [vmem:[%s845_s1 + $0x60] ss:$8 sps:$4 sm:$0xff]   ;;  %v567_v4 = vld [vmem:[%s845_s1 + $0x54] ss:$8 sps:$4 sm:$0xff]   ;;  %v569_v5 = vld [vmem:[%s845_s1 + $0x50] ss:$8 sps:$4 sm:$0xff]  }
   0x3   :  { %253 = vmatpush1.bf16.msra.mxu0 %v563_v1  ;;  %v570_v6 = vld [vmem:[%s845_s1 + $0x44] ss:$8 sps:$4 sm:$0xff]   ;;  %v572_v7 = vld [vmem:[%s845_s1 + $0x40] ss:$8 sps:$4 sm:$0xff]   ;;  %v573_v8 = vld [vmem:[%s845_s1 + $0x34] ss:$8 sps:$4 sm:$0xff]   ;;  %v78_v15 = vunpack.c.0.s8 %v77_v11 }
   0x4   :  { %254 = vmatprep.subr.bf16.mxu0 %v564_v2  ;;  %v575_v12 = vld [vmem:[%s845_s1 + $0x30] ss:$8 sps:$4 sm:$0xff]   ;;  %v576_v13 = vld [vmem:[%s845_s1 + $0x24] ss:$8 sps:$4 sm:$0xff]   ;;  %v716_v14 = vshrl.u32 %v57_v9, 7 }
   0x5   :  { %v578_v16 = vld [vmem:[%s845_s1 + $0x20] ss:$8 sps:$4 sm:$0xff]   ;;  %v579_v17 = vld [vmem:[%s845_s1 + $0x14] ss:$8 sps:$4 sm:$0xff]   ;;  %v581_v19 = vld [vmem:[%s845_s1 + $0x10] ss:$8 sps:$4 sm:$0xff]  }
   0x6   :  { %v81_v18 = vsub.s32 %v78_v15, %v716_v14  ;;  %v487_v20 = vld.sshfl [vmem:[%s844_s0] sm:$0x11 pattern:$0x75316420]  ;;  %v582_v21 = vld [vmem:[%s845_s1 + $0x4] ss:$8 sps:$4 sm:$0xff]  }
   0x7   :  { %255 = vmatpush1.bf16.msra.mxu0 %v566_v3  ;;  %v75_v22 = vcombine.high %v487_v20, %v487_v20  ;;  %v609_v23 = vld [vmem:[%s847_s3 + $0x78] sm:$0xff]   ;;  %v611_v26 = vld [vmem:[%s847_s3 + $0x70] sm:$0xff]   ;;  %v584_v27 = vld [vmem:[%s845_s1] ss:$8 sps:$4 sm:$0xff]  }
   0x8   :  { %256 = vmatprep.subr.bf16.mxu0 %v567_v4  ;;  %v610_v24 = vld [vmem:[%s847_s3 + $0x38] sm:$0xff]   ;;  %537 = vmatprep.subr.bf16.mxu1 %v609_v23  ;;  %v612_v28 = vld [vmem:[%s847_s3 + $0x30] sm:$0xff]   ;;  %v613_v29 = vld [vmem:[%s847_s3 + $0x68] sm:$0xff]  }
   0x9   :  { %v89_v25 = vrot.slane %v75_v22, %v81_v18  ;;  %538 = vmatpush3.bf16.msra.mxu1 %v610_v24  ;;  %v585_v30 = vld [vmem:[%s845_s1 + $0xf4] ss:$8 sps:$4 sm:$0xff]   ;;  %v614_v31 = vld [vmem:[%s847_s3 + $0x28] sm:$0xff]   ;;  %v587_v32 = vld [vmem:[%s845_s1 + $0xf0] ss:$8 sps:$4 sm:$0xff]  }
   0xa   :  { %539 = vmatprep.subr.bf16.mxu1 %v611_v26  ;;  %v588_v33 = vld [vmem:[%s845_s1 + $0xe4] ss:$8 sps:$4 sm:$0xff]   ;;  %v590_v34 = vld [vmem:[%s845_s1 + $0xe0] ss:$8 sps:$4 sm:$0xff]  }
   0xb   :  { %257 = vmatpush1.bf16.msra.mxu0 %v569_v5  ;;  %284 = vmatprep.mubr.bf16.mxu0 %v89_v25 }
   0xc   :  { %258 = vmatprep.subr.bf16.mxu0 %v570_v6 }
   0xd   :  { %540 = vmatpush3.bf16.msra.mxu1 %v612_v28 }
   0xe   :  { %541 = vmatprep.subr.bf16.mxu1 %v613_v29 }
   0xf   :  { %259 = vmatpush1.bf16.msra.mxu0 %v572_v7 }
  0x10   :  { %260 = vmatprep.subr.bf16.mxu0 %v573_v8 }
  0x11   :  { %542 = vmatpush3.bf16.msra.mxu1 %v614_v31 }
  0x13   :  { %261 = vmatpush1.bf16.msra.mxu0 %v575_v12 }
  0x14   :  { %262 = vmatprep.subr.bf16.mxu0 %v576_v13 }
  0x17   :  { %263 = vmatpush1.bf16.msra.mxu0 %v578_v16 }
  0x18   :  { %264 = vmatprep.subr.bf16.mxu0 %v579_v17 }
  0x1b   :  { %265 = vmatpush1.bf16.msra.mxu0 %v581_v19 }
  0x1c   :  { %266 = vmatprep.subr.bf16.mxu0 %v582_v21 }
  0x1f   :  { %267 = vmatpush1.bf16.msra.mxu0 %v584_v27 }
  0x20   :  { %268 = vmatprep.subr.bf16.mxu0 %v585_v30 }
  0x23   :  { %269 = vmatpush2.bf16.msra.mxu0 %v587_v32 }
  0x24   :  { %10 = vsyncpa [#allocation3], 0  ;;  %270 = vmatprep.subr.bf16.mxu0 %v588_v33  ;;  %v591_v35 = vld [vmem:[%s845_s1 + $0xd4] ss:$8 sps:$4 sm:$0xff]   ;;  %v593_v36 = vld [vmem:[%s845_s1 + $0xd0] ss:$8 sps:$4 sm:$0xff]   ;;  %v82_v47 = vrot.slane %v487_v20, %v81_v18 }
  0x25   :  { %v594_v37 = vld [vmem:[%s845_s1 + $0xc4] ss:$8 sps:$4 sm:$0xff]   ;;  %v596_v38 = vld [vmem:[%s845_s1 + $0xc0] ss:$8 sps:$4 sm:$0xff]   ;;  %v597_v39 = vld [vmem:[%s845_s1 + $0xb4] ss:$8 sps:$4 sm:$0xff]  }
  0x26   :  { %v599_v40 = vld [vmem:[%s845_s1 + $0xb0] ss:$8 sps:$4 sm:$0xff]   ;;  %v600_v41 = vld [vmem:[%s845_s1 + $0xa4] ss:$8 sps:$4 sm:$0xff]   ;;  %v602_v42 = vld [vmem:[%s845_s1 + $0xa0] ss:$8 sps:$4 sm:$0xff]  }
  0x27   :  { %271 = vmatpush2.bf16.msra.mxu0 %v590_v34  ;;  %v603_v43 = vld [vmem:[%s845_s1 + $0x94] ss:$8 sps:$4 sm:$0xff]   ;;  %v605_v44 = vld [vmem:[%s845_s1 + $0x90] ss:$8 sps:$4 sm:$0xff]   ;;  %v606_v45 = vld [vmem:[%s845_s1 + $0x84] ss:$8 sps:$4 sm:$0xff]  }
  0x28   :  { %272 = vmatprep.subr.bf16.mxu0 %v591_v35  ;;  %v608_v46 = vld [vmem:[%s845_s1 + $0x80] ss:$8 sps:$4 sm:$0xff]   ;;  %v617_v50 = vld [vmem:[%s847_s3 + $0x58] sm:$0xff]   ;;  %v619_v52 = vld [vmem:[%s847_s3 + $0x50] sm:$0xff]   ;;  %v59_v58 = vsub.s32 0, %v716_v14  ;;  %v63_v60 = vsub.s32 1, %v716_v14 }
  0x29   :  { %v615_v48 = vld [vmem:[%s847_s3 + $0x60] sm:$0xff]   ;;  %v618_v51 = vld [vmem:[%s847_s3 + $0x18] sm:$0xff]   ;;  %v620_v53 = vld [vmem:[%s847_s3 + $0x10] sm:$0xff]   ;;  %s652_s14 = smov [#allocation2]  }
  0x2a   :  { %v616_v49 = vld [vmem:[%s847_s3 + $0x20] sm:$0xff]   ;;  %543 = vmatprep.subr.bf16.mxu1 %v615_v48  ;;  %v621_v54 = vld [vmem:[%s847_s3 + $0x48] sm:$0xff]   ;;  %s479_s15 = sshll.u32 %s652_s14, 4  ;;  %s480_s15 = int_to_ptr.vmem [resolvable:$true] %s479_s15 }
  0x2b   :  { %273 = vmatpush2.bf16.msra.mxu0 %v593_v36  ;;  %544 = vmatpush3.bf16.msra.mxu1 %v616_v49  ;;  %v622_v55 = vld [vmem:[%s847_s3 + $0x8] sm:$0xff]   ;;  %v623_v56 = vld [vmem:[%s847_s3 + $0x40] sm:$0xff]   ;;  %s629_s16 = scalar_lea.vmem %s480_s15, 32  ;;  %p634_p1 = scmp.lt.s32.totalorder %s480_s15, %s480_s15 }
  0x2c   :  { %274 = vmatprep.subr.bf16.mxu0 %v594_v37  ;;  %545 = vmatprep.subr.bf16.mxu1 %v617_v50  ;;  %v624_v57 = vld [vmem:[%s847_s3] sm:$0xff]   ;;  %p630_p0 = scmp.ne.s32.totalorder %s480_s15, %s629_s16  ;;  %p635_p2 = scmp.lt.s32.totalorder %s629_s16, %s629_s16 }
  0x2d   :  { %v55_v59 = vld [vmem:[%s846_s2] sm:$0x3] }
  0x2e   :  { %v60_v61 = vrot.slane %v55_v59, %v59_v58  ;;  %v64_v62 = vrot.slane %v55_v59, %v63_v60  ;;  %v520_v11 = vld [vmem:[%s848_s4] ss:$0 sm:$0xff]  ;;  %p636_p3 = por %p635_p2, %p634_p1 }
  0x2f   :  { %275 = vmatpush2.bf16.msra.mxu0 %v596_v38  ;;  %546 = vmatpush3.bf16.msra.mxu1 %v618_v51 }
  0x30   :  { %276 = vmatprep.subr.bf16.mxu0 %v597_v39  ;;  %547 = vmatprep.subr.bf16.mxu1 %v619_v52  ;;  %p637_p4 = pnand %p636_p3, %p630_p0 }
  0x33   :  { %277 = vmatpush2.bf16.msra.mxu0 %v599_v40  ;;  %548 = vmatpush3.bf16.msra.mxu1 %v620_v53 }
  0x34   :  { %278 = vmatprep.subr.bf16.mxu0 %v600_v41  ;;  %549 = vmatprep.subr.bf16.mxu1 %v621_v54 }
  0x37   :  { %279 = vmatpush2.bf16.msra.mxu0 %v602_v42  ;;  %550 = vmatpush3.bf16.msra.mxu1 %v622_v55 }
  0x38   :  { %280 = vmatprep.subr.bf16.mxu0 %v603_v43  ;;  %551 = vmatprep.subr.bf16.mxu1 %v623_v56 }
  0x3b   :  { %281 = vmatpush2.bf16.msra.mxu0 %v605_v44  ;;  %552 = vmatpush3.bf16.msra.mxu1 %v624_v57 }
  0x3c   :  { %282 = vmatprep.subr.bf16.mxu0 %v606_v45 }
  0x3f   :  { %283 = vmatpush2.bf16.msra.mxu0 %v608_v46 }
  0x42   :  { %285 = vmatmul.mubr.bf16.vlgmr.msra.gmra.mxu0 %v82_v47 }
 0x102   :  { %v286_v63 = vpop.f32.mrf.mxu0 }
 0x103   :  { %v287_v0 = vadd.f32 %v286_v63, %v60_v61 }
 0x104   :  { %v288_v1 = vpop.f32.mrf.mxu0 }
 0x105   :  { %v289_v2 = vadd.f32 %v288_v1, %v64_v62  ;;  %625 = vtanh.f32 %v287_v0 }
 0x106   :  { %v290_v3 = vpop.f32.mrf.mxu0 }
 0x107   :  { %627 = vtanh.f32 %v289_v2 }
 0x108   :  { %v291_v4 = vpop.f32.mrf.mxu0 }
 0x112   :  { %v626_v5 = vpop.eup %625 }
 0x113   :  { %v295_v8 = vpack.c.bf16 %v626_v5, %v626_v5 }
 0x114   :  { %v628_v6 = vpop.eup %627 }
 0x115   :  { %v296_v7 = vpack.c.bf16 %v628_v6, %v628_v6 }
 0x117   :  { %464 = vmatprep.mubr.bf16.mxu1 %v296_v7 }
 0x118   :  { %465 = vmatmul.mubr.bf16.vlgmr.msra.gmra.mxu1 %v295_v8 }
 0x1d8   :  { %v553_v9 = vpop.f32.mrf.mxu1 }
 0x1da   :  { %v554_v10 = vpop.f32.mrf.mxu1 }
 0x1db   :  { %v555_v12 = vadd.f32 %v554_v10, %v553_v9 }
 0x1dc   :  { %v556_v13 = vpop.f32.mrf.mxu1 }
 0x1dd   :  { %v467_v14 = vadd.f32 %v555_v12, %v520_v11 }
 0x1de   :  { %v557_v15 = vpop.f32.mrf.mxu1 }
 0x1df   :  { %472 = vst [vmem:[#allocation2] sm:$0x3] %v467_v14 }
 0x1e0   :  { %640 = shalt.err (!%p637_p4)
}
 0x1e1   :  { %482 = dma.vmem_to_hbm [thread:$0]  %s480_s15, 32, %s849_s5, [#allocation3]  }
 0x1e2   :  { %649 = dma.done.wait [#allocation3], 32  }
 0x1e3   :  { %650 = vsyncadd [#allocation3], 4294967264 }
 0x1e4   :  { %486 = vsyncpa [#allocation3], 1 }

// kernel: _lambda_.5
= control target key start
LH: loop header
LB: loop body
LE: loop exit
PB: predicated region body
PF: predicated region fallthrough
CT: control target
= control target key end

     0   :  { %19 = vsyncpa [#allocation3], 0  ;;  %s4135_s0 = inlined_call_operand.vmem [shape: bf16[16,256], index: 0, kind: input, shape index: {}]   ;;  %s4136_s1 = inlined_call_operand.vmem [shape: f32[2,8], index: 1, kind: input, shape index: {}]   ;;  %s4137_s2 = inlined_call_operand.hbm [shape: bf16[256,768], index: 2, kind: input, shape index: {}]   ;;  %s4138_s3 = inlined_call_operand.vmem [shape: f32[1,768], index: 3, kind: input, shape index: {}]   ;;  %s4139_s4 = inlined_call_operand.hbm [shape: bf16[256,256], index: 4, kind: input, shape index: {}]   ;;  %s4140_s5 = inlined_call_operand.vmem [shape: f32[1,256], index: 5, kind: input, shape index: {}, may-alias: {5,7,11,13}]   ;;  %s4141_s6 = inlined_call_operand.vmem [shape: f32[1,256], index: 6, kind: input, shape index: {}, may-alias: {6,12}]   ;;  %s4142_s7 = inlined_call_operand.vmem [shape: f32[1,256], index: 7, kind: input, shape index: {}, may-alias: {5,7,11,13}]   ;;  %s4143_s8 = inlined_call_operand.vmem [shape: bf16[256,512], index: 8, kind: input, shape index: {}]   ;;  %s4144_s9 = inlined_call_operand.vmem [shape: f32[1,512], index: 9, kind: input, shape index: {}]   ;;  %s4145_s10 = inlined_call_operand.hbm [shape: bf16[512,256], index: 10, kind: input, shape index: {}]   ;;  %s4146_s11 = inlined_call_operand.vmem [shape: f32[1,256], index: 11, kind: input, shape index: {}, may-alias: {5,7,11,13}]   ;;  %s4147_s12 = inlined_call_operand.vmem [shape: f32[1,256], index: 12, kind: input, shape index: {}, may-alias: {6,12}]   ;;  %s4148_s13 = inlined_call_operand.vmem [shape: f32[1,256], index: 13, kind: input, shape index: {}, may-alias: {5,7,11,13}]   ;;  %s4149_s14 = inlined_call_operand.vmem [shape: bf16[16,256], index: 14, kind: output, shape index: {}]  }
   0x1   :  { %20 = vsyncpa [#allocation5], 0  ;;  %s3554_s29 = smov [#allocation4]  }
   0x2   :  { %s44_s30 = sshll.u32 %s3554_s29, 4  ;;  %s45_s30 = int_to_ptr.vmem [resolvable:$true] %s44_s30 }
   0x3   :  { %s3498_s15 = scalar_lea.vmem %s45_s30, 4096  ;;  %p3503_p1 = scmp.lt.s32.totalorder %s45_s30, %s45_s30 }
   0x4   :  { %p3499_p0 = scmp.ne.s32.totalorder %s45_s30, %s3498_s15  ;;  %p3504_p2 = scmp.lt.s32.totalorder %s3498_s15, %s3498_s15 }
   0x6   :  { %p3505_p3 = por %p3504_p2, %p3503_p1 }
   0x8   :  { %p3506_p4 = pnand %p3505_p3, %p3499_p0 }
   0xa   :  { %3509 = shalt.err (!%p3506_p4)
}
   0xb   :  { %s3555_s16 = smov 128   ;;  %s3556_s17 = smov 8  }
   0xc   :  { %50 = dma.hbm_to_vmem [thread:$0]  %s4139_s4, 4096, %s45_s30, [#allocation5], %s3555_s16, %s3555_s16, %s3556_s17  }
   0xd   :  { %s3557_s20 = smov [#allocation2]  }
   0xe   :  { %s30_s21 = sshll.u32 %s3557_s20, 4  ;;  %s31_s21 = int_to_ptr.vmem [resolvable:$true] %s30_s21 }
   0xf   :  { %s3518_s22 = scalar_lea.vmem %s31_s21, 12288  ;;  %p3523_p6 = scmp.lt.s32.totalorder %s31_s21, %s31_s21 }
  0x10   :  { %p3519_p5 = scmp.ne.s32.totalorder %s31_s21, %s3518_s22  ;;  %p3524_p7 = scmp.lt.s32.totalorder %s3518_s22, %s3518_s22 }
  0x12   :  { %p3525_p8 = por %p3524_p7, %p3523_p6 }
  0x14   :  { %p3526_p9 = pnand %p3525_p8, %p3519_p5 }
  0x16   :  { %3529 = shalt.err (!%p3526_p9)
}
  0x17   :  { %s3558_s23 = smov 384   ;;  %s3559_s24 = smov 24  }
  0x18   :  { %36 = dma.hbm_to_vmem [thread:$0]  %s4137_s2, 12288, %s31_s21, [#allocation3], %s3558_s23, %s3558_s23, %s3559_s24  }
  0x19   :  { %s3560_s27 = smov [#allocation6]  }
  0x1a   :  { %s66_s28 = sshll.u32 %s3560_s27, 4  ;;  %s67_s28 = int_to_ptr.vmem [resolvable:$true] %s66_s28 }
  0x1b   :  { %s3538_s4 = scalar_lea.vmem %s67_s28, 8192  ;;  %p3543_p11 = scmp.lt.s32.totalorder %s67_s28, %s67_s28 }
  0x1c   :  { %p3539_p10 = scmp.ne.s32.totalorder %s67_s28, %s3538_s4  ;;  %p3544_p12 = scmp.lt.s32.totalorder %s3538_s4, %s3538_s4 }
  0x1e   :  { %p3545_p13 = por %p3544_p12, %p3543_p11 }
  0x20   :  { %p3546_p0 = pnand %p3545_p13, %p3539_p10 }
  0x22   :  { %3549 = shalt.err (!%p3546_p0)
}
  0x23   :  { %72 = dma.hbm_to_vmem [thread:$0]  %s4145_s10, 8192, %s67_s28, [#allocation5], %s3555_s16, %s3555_s16, %s3556_s17  }
  0x24   :  { %3550 = dma.done.wait [#allocation3], 12288  }
  0x25   :  { %3551 = vsyncadd [#allocation3], 4294955008 }
  0x26   :  { %3552 = dma.done.wait [#allocation5], 12288  }
  0x27   :  { %3553 = vsyncadd [#allocation5], 4294955008  ;;  %v3062_v0 = vld [vmem:[#allocation2 + $0x15c] ss:$24 sps:$4 sm:$0xff]   ;;  %v3064_v1 = vld [vmem:[#allocation2 + $0x158] ss:$24 sps:$4 sm:$0xff]  }
  0x28   :  { %757 = vmatprep.subr.bf16.mxu1 %v3062_v0  ;;  %v3065_v2 = vld [vmem:[#allocation2 + $0x154] ss:$24 sps:$4 sm:$0xff]   ;;  %v3067_v3 = vld [vmem:[#allocation2 + $0x150] ss:$24 sps:$4 sm:$0xff]   ;;  %v3071_v6 = vld [vmem:[#allocation2 + $0x124] ss:$24 sps:$4 sm:$0xff]  }
  0x29   :  { %758 = vmatpush1.bf16.msra.mxu1 %v3064_v1  ;;  %v3068_v4 = vld [vmem:[#allocation2 + $0x12c] ss:$24 sps:$4 sm:$0xff]   ;;  %v3070_v5 = vld [vmem:[#allocation2 + $0x128] ss:$24 sps:$4 sm:$0xff]   ;;  %714 = vmatprep.subr.bf16.mxu0 %v3065_v2  ;;  %v3074_v8 = vld [vmem:[#allocation2 + $0xfc] ss:$24 sps:$4 sm:$0xff]  }
  0x2a   :  { %715 = vmatpush1.bf16.msra.mxu0 %v3067_v3  ;;  %759 = vmatprep.subr.bf16.mxu1 %v3068_v4  ;;  %v3073_v7 = vld [vmem:[#allocation2 + $0x120] ss:$24 sps:$4 sm:$0xff]   ;;  %v3077_v10 = vld [vmem:[#allocation2 + $0xf4] ss:$24 sps:$4 sm:$0xff]   ;;  %v3079_v12 = vld [vmem:[#allocation2 + $0xf0] ss:$24 sps:$4 sm:$0xff]  }
  0x2b   :  { %716 = vmatprep.subr.bf16.mxu0 %v3071_v6  ;;  %v3076_v9 = vld [vmem:[#allocation2 + $0xf8] ss:$24 sps:$4 sm:$0xff]   ;;  %v3080_v11 = vld [vmem:[#allocation2 + $0xcc] ss:$24 sps:$4 sm:$0xff]   ;;  %v3082_v14 = vld [vmem:[#allocation2 + $0xc8] ss:$24 sps:$4 sm:$0xff]  }
  0x2c   :  { %v3083_v13 = vld [vmem:[#allocation2 + $0xc4] ss:$24 sps:$4 sm:$0xff]   ;;  %v3085_v16 = vld [vmem:[#allocation2 + $0xc0] ss:$24 sps:$4 sm:$0xff]   ;;  %v3089_v17 = vld [vmem:[#allocation2 + $0x94] ss:$24 sps:$4 sm:$0xff]  }
  0x2d   :  { %760 = vmatpush1.bf16.msra.mxu1 %v3070_v5  ;;  %v3086_v15 = vld [vmem:[#allocation2 + $0x9c] ss:$24 sps:$4 sm:$0xff]   ;;  %v3088_v18 = vld [vmem:[#allocation2 + $0x98] ss:$24 sps:$4 sm:$0xff]   ;;  %v3092_v19 = vld [vmem:[#allocation2 + $0x6c] ss:$24 sps:$4 sm:$0xff]   ;;  %v194_v5 = vlaneseq }
  0x2e   :  { %761 = vmatprep.subr.bf16.mxu1 %v3074_v8  ;;  %717 = vmatpush1.bf16.msra.mxu0 %v3073_v7  ;;  %v3091_v20 = vld [vmem:[#allocation2 + $0x90] ss:$24 sps:$4 sm:$0xff]   ;;  %v3095_v21 = vld [vmem:[#allocation2 + $0x64] ss:$24 sps:$4 sm:$0xff]   ;;  %v3097_v24 = vld [vmem:[#allocation2 + $0x60] ss:$24 sps:$4 sm:$0xff]  }
  0x2f   :  { %718 = vmatprep.subr.bf16.mxu0 %v3077_v10  ;;  %v3094_v22 = vld [vmem:[#allocation2 + $0x68] ss:$24 sps:$4 sm:$0xff]   ;;  %v3098_v23 = vld [vmem:[#allocation2 + $0x3c] ss:$24 sps:$4 sm:$0xff]   ;;  %v3100_v26 = vld [vmem:[#allocation2 + $0x38] ss:$24 sps:$4 sm:$0xff]  }
  0x30   :  { %v3101_v25 = vld [vmem:[#allocation2 + $0x34] ss:$24 sps:$4 sm:$0xff]   ;;  %v3103_v28 = vld [vmem:[#allocation2 + $0x30] ss:$24 sps:$4 sm:$0xff]   ;;  %v3107_v29 = vld [vmem:[#allocation2 + $0x4] ss:$24 sps:$4 sm:$0xff]  }
  0x31   :  { %762 = vmatpush1.bf16.msra.mxu1 %v3076_v9  ;;  %v3104_v27 = vld [vmem:[#allocation2 + $0xc] ss:$24 sps:$4 sm:$0xff]   ;;  %v3106_v30 = vld [vmem:[#allocation2 + $0x8] ss:$24 sps:$4 sm:$0xff]   ;;  %v3110_v31 = vld [vmem:[#allocation2 + $0x2dc] ss:$24 sps:$4 sm:$0xff]  }
  0x32   :  { %763 = vmatprep.subr.bf16.mxu1 %v3080_v11  ;;  %719 = vmatpush1.bf16.msra.mxu0 %v3079_v12  ;;  %v3109_v32 = vld [vmem:[#allocation2] ss:$24 sps:$4 sm:$0xff]   ;;  %v3113_v33 = vld [vmem:[#allocation2 + $0x2d4] ss:$24 sps:$4 sm:$0xff]   ;;  %v3115_v36 = vld [vmem:[#allocation2 + $0x2d0] ss:$24 sps:$4 sm:$0xff]  }
  0x33   :  { %720 = vmatprep.subr.bf16.mxu0 %v3083_v13  ;;  %v3112_v34 = vld [vmem:[#allocation2 + $0x2d8] ss:$24 sps:$4 sm:$0xff]   ;;  %v3116_v35 = vld [vmem:[#allocation2 + $0x2ac] ss:$24 sps:$4 sm:$0xff]   ;;  %v3118_v38 = vld [vmem:[#allocation2 + $0x2a8] ss:$24 sps:$4 sm:$0xff]  }
  0x34   :  { %v3119_v37 = vld [vmem:[#allocation2 + $0x2a4] ss:$24 sps:$4 sm:$0xff]   ;;  %v3121_v40 = vld [vmem:[#allocation2 + $0x2a0] ss:$24 sps:$4 sm:$0xff]   ;;  %v3125_v41 = vld [vmem:[#allocation2 + $0x274] ss:$24 sps:$4 sm:$0xff]  }
  0x35   :  { %764 = vmatpush1.bf16.msra.mxu1 %v3082_v14  ;;  %v3122_v39 = vld [vmem:[#allocation2 + $0x27c] ss:$24 sps:$4 sm:$0xff]   ;;  %v3124_v42 = vld [vmem:[#allocation2 + $0x278] ss:$24 sps:$4 sm:$0xff]   ;;  %v3128_v43 = vld [vmem:[#allocation2 + $0x24c] ss:$24 sps:$4 sm:$0xff]  }
  0x36   :  { %765 = vmatprep.subr.bf16.mxu1 %v3086_v15  ;;  %721 = vmatpush1.bf16.msra.mxu0 %v3085_v16  ;;  %v3127_v44 = vld [vmem:[#allocation2 + $0x270] ss:$24 sps:$4 sm:$0xff]   ;;  %v3131_v46 = vld [vmem:[#allocation2 + $0x244] ss:$24 sps:$4 sm:$0xff]   ;;  %v3133_v48 = vld [vmem:[#allocation2 + $0x240] ss:$24 sps:$4 sm:$0xff]  }
  0x37   :  { %722 = vmatprep.subr.bf16.mxu0 %v3089_v17  ;;  %v3130_v45 = vld [vmem:[#allocation2 + $0x248] ss:$24 sps:$4 sm:$0xff]   ;;  %v3134_v49 = vld [vmem:[#allocation2 + $0x21c] ss:$24 sps:$4 sm:$0xff]   ;;  %v3136_v53 = vld [vmem:[#allocation2 + $0x218] ss:$24 sps:$4 sm:$0xff]  }
  0x38   :  { %v89_v47 = vld [vmem:[%s4135_s0] sm:$0xff]  ;;  %v90_v50 = vld [vmem:[%s4135_s0 + $0x8] sm:$0xff]  ;;  %v3146_v58 = vld [vmem:[#allocation2 + $0x1bc] ss:$24 sps:$4 sm:$0xff]   ;;  %v3561_v4 = vmov 0.0   ;;  %vm3562_vm0 = vmmov 0  }
  0x39   :  { %766 = vmatpush1.bf16.msra.mxu1 %v3088_v18  ;;  %v3137_v51 = vld [vmem:[#allocation2 + $0x214] ss:$24 sps:$4 sm:$0xff]   ;;  %v2724_v52 = vcombine.high %v89_v47, %v90_v50  ;;  %v3139_v55 = vld [vmem:[#allocation2 + $0x210] ss:$24 sps:$4 sm:$0xff]   ;;  %v3143_v56 = vld [vmem:[#allocation2 + $0x1e4] ss:$24 sps:$4 sm:$0xff]   ;;  %v3653_v3 = vcombine.low %v89_v47, %v90_v50 }
  0x3a   :  { %767 = vmatprep.subr.bf16.mxu1 %v3092_v19  ;;  %723 = vmatpush1.bf16.msra.mxu0 %v3091_v20  ;;  %v3140_v54 = vld [vmem:[#allocation2 + $0x1ec] ss:$24 sps:$4 sm:$0xff]   ;;  %v3142_v57 = vld [vmem:[#allocation2 + $0x1e8] ss:$24 sps:$4 sm:$0xff]   ;;  %v3148_v61 = vld [vmem:[#allocation2 + $0x1b8] ss:$24 sps:$4 sm:$0xff]  }
  0x3b   :  { %724 = vmatprep.subr.bf16.mxu0 %v3095_v21  ;;  %789 = vmatprep.mubr.bf16.mxu1 %v2724_v52  ;;  %v3145_v59 = vld [vmem:[#allocation2 + $0x1e0] ss:$24 sps:$4 sm:$0xff]   ;;  %v3149_v60 = vld [vmem:[#allocation2 + $0x1b4] ss:$24 sps:$4 sm:$0xff]   ;;  %v3151_v63 = vld [vmem:[#allocation2 + $0x1b0] ss:$24 sps:$4 sm:$0xff]  }
  0x3c   :  { %746 = vmatprep.mubr.bf16.mxu0 %v2724_v52  ;;  %v3152_v62 = vld [vmem:[#allocation2 + $0x18c] ss:$24 sps:$4 sm:$0xff]   ;;  %v3154_v1 = vld [vmem:[#allocation2 + $0x188] ss:$24 sps:$4 sm:$0xff]   ;;  %v3660_v6 = vshrl.u32 %v194_v5, 7  ;;  %vm892_vm1 = vcmask 64512  }
  0x3d   :  { %768 = vmatpush1.bf16.msra.mxu1 %v3094_v22  ;;  %v3155_v0 = vld [vmem:[#allocation2 + $0x184] ss:$24 sps:$4 sm:$0xff]   ;;  %v3157_v2 = vld [vmem:[#allocation2 + $0x180] ss:$24 sps:$4 sm:$0xff]   ;;  %v3193_v47 = vld [vmem:[#allocation2 + $0x250] ss:$24 sps:$4 sm:$0xff]  }
  0x3e   :  { %769 = vmatprep.subr.bf16.mxu1 %v3098_v23  ;;  %725 = vmatpush1.bf16.msra.mxu0 %v3097_v24  ;;  %v204_v7 = vsub.s32 2, %v3660_v6  ;;  %v3666_v8 = vld [vmem:[%s4138_s3] sm:$0x3f]  ;;  %v3669_v9 = vsub.s32 0, %v3660_v6  ;;  %v3201_v50 = vld [vmem:[#allocation2 + $0x1f4] ss:$24 sps:$4 sm:$0xff]  }
  0x3f   :  { %726 = vmatprep.subr.bf16.mxu0 %v3101_v25  ;;  %v3160_v24 = vld [vmem:[#allocation2 + $0x160] ss:$24 sps:$4 sm:$0xff]   ;;  %v3162_v25 = vld [vmem:[#allocation2 + $0x164] ss:$24 sps:$4 sm:$0xff]   ;;  %vm908_vm2 = vcmask 1043456  }
  0x40   :  { %v205_v10 = vrot.slane %v3666_v8, %v204_v7  ;;  %v197_v12 = vrot.slane %v3666_v8, %v3669_v9 }
  0x41   :  { %770 = vmatpush1.bf16.msra.mxu1 %v3100_v26  ;;  %v3165_v26 = vld [vmem:[#allocation2 + $0x134] ss:$24 sps:$4 sm:$0xff]  }
  0x42   :  { %771 = vmatprep.subr.bf16.mxu1 %v3104_v27  ;;  %727 = vmatpush1.bf16.msra.mxu0 %v3103_v28  ;;  %v3163_v27 = vld [vmem:[#allocation2 + $0x130] ss:$24 sps:$4 sm:$0xff]   ;;  %v3168_v28 = vld [vmem:[#allocation2 + $0x104] ss:$24 sps:$4 sm:$0xff]  }
  0x43   :  { %728 = vmatprep.subr.bf16.mxu0 %v3107_v29  ;;  %v3166_v29 = vld [vmem:[#allocation2 + $0x100] ss:$24 sps:$4 sm:$0xff]  }
  0x45   :  { %772 = vmatpush1.bf16.msra.mxu1 %v3106_v30  ;;  %v3171_v30 = vld [vmem:[#allocation2 + $0xd4] ss:$24 sps:$4 sm:$0xff]  }
  0x46   :  { %773 = vmatprep.subr.bf16.mxu1 %v3110_v31  ;;  %729 = vmatpush1.bf16.msra.mxu0 %v3109_v32  ;;  %v3169_v31 = vld [vmem:[#allocation2 + $0xd0] ss:$24 sps:$4 sm:$0xff]   ;;  %v3174_v32 = vld [vmem:[#allocation2 + $0xa4] ss:$24 sps:$4 sm:$0xff]  }
  0x47   :  { %730 = vmatprep.subr.bf16.mxu0 %v3113_v33  ;;  %v3172_v33 = vld [vmem:[#allocation2 + $0xa0] ss:$24 sps:$4 sm:$0xff]  }
  0x49   :  { %774 = vmatpush2.bf16.msra.mxu1 %v3112_v34  ;;  %v3177_v34 = vld [vmem:[#allocation2 + $0x74] ss:$24 sps:$4 sm:$0xff]  }
  0x4a   :  { %775 = vmatprep.subr.bf16.mxu1 %v3116_v35  ;;  %731 = vmatpush2.bf16.msra.mxu0 %v3115_v36  ;;  %v3175_v35 = vld [vmem:[#allocation2 + $0x70] ss:$24 sps:$4 sm:$0xff]   ;;  %v3180_v36 = vld [vmem:[#allocation2 + $0x44] ss:$24 sps:$4 sm:$0xff]  }
  0x4b   :  { %732 = vmatprep.subr.bf16.mxu0 %v3119_v37  ;;  %v3178_v37 = vld [vmem:[#allocation2 + $0x40] ss:$24 sps:$4 sm:$0xff]  }
  0x4d   :  { %776 = vmatpush2.bf16.msra.mxu1 %v3118_v38  ;;  %v3183_v38 = vld [vmem:[#allocation2 + $0x14] ss:$24 sps:$4 sm:$0xff]  }
  0x4e   :  { %777 = vmatprep.subr.bf16.mxu1 %v3122_v39  ;;  %733 = vmatpush2.bf16.msra.mxu0 %v3121_v40  ;;  %v3181_v39 = vld [vmem:[#allocation2 + $0x10] ss:$24 sps:$4 sm:$0xff]   ;;  %v3186_v40 = vld [vmem:[#allocation2 + $0x2e4] ss:$24 sps:$4 sm:$0xff]  }
  0x4f   :  { %734 = vmatprep.subr.bf16.mxu0 %v3125_v41  ;;  %v3184_v41 = vld [vmem:[#allocation2 + $0x2e0] ss:$24 sps:$4 sm:$0xff]  }
  0x51   :  { %778 = vmatpush2.bf16.msra.mxu1 %v3124_v42  ;;  %v3189_v42 = vld [vmem:[#allocation2 + $0x2b4] ss:$24 sps:$4 sm:$0xff]  }
  0x52   :  { %779 = vmatprep.subr.bf16.mxu1 %v3128_v43  ;;  %735 = vmatpush2.bf16.msra.mxu0 %v3127_v44  ;;  %v3187_v43 = vld [vmem:[#allocation2 + $0x2b0] ss:$24 sps:$4 sm:$0xff]   ;;  %v3192_v44 = vld [vmem:[#allocation2 + $0x284] ss:$24 sps:$4 sm:$0xff]  }
  0x53   :  { %736 = vmatprep.subr.bf16.mxu0 %v3131_v46  ;;  %v3195_v46 = vld [vmem:[#allocation2 + $0x254] ss:$24 sps:$4 sm:$0xff]  }
  0x55   :  { %780 = vmatpush2.bf16.msra.mxu1 %v3130_v45  ;;  %v3190_v45 = vld [vmem:[#allocation2 + $0x280] ss:$24 sps:$4 sm:$0xff]  }
  0x56   :  { %781 = vmatprep.subr.bf16.mxu1 %v3134_v49  ;;  %737 = vmatpush2.bf16.msra.mxu0 %v3133_v48  ;;  %v3198_v48 = vld [vmem:[#allocation2 + $0x224] ss:$24 sps:$4 sm:$0xff]   ;;  %v3196_v49 = vld [vmem:[#allocation2 + $0x220] ss:$24 sps:$4 sm:$0xff]  }
  0x57   :  { %738 = vmatprep.subr.bf16.mxu0 %v3137_v51  ;;  %v3199_v51 = vld [vmem:[#allocation2 + $0x1f0] ss:$24 sps:$4 sm:$0xff]  }
  0x59   :  { %782 = vmatpush2.bf16.msra.mxu1 %v3136_v53  ;;  %v3202_v53 = vld [vmem:[#allocation2 + $0x1c0] ss:$24 sps:$4 sm:$0xff]  }
  0x5a   :  { %783 = vmatprep.subr.bf16.mxu1 %v3140_v54  ;;  %739 = vmatpush2.bf16.msra.mxu0 %v3139_v55  ;;  %v3207_v54 = vld [vmem:[#allocation2 + $0x194] ss:$24 sps:$4 sm:$0xff]   ;;  %v3205_v55 = vld [vmem:[#allocation2 + $0x190] ss:$24 sps:$4 sm:$0xff]  }
  0x5b   :  { %740 = vmatprep.subr.bf16.mxu0 %v3143_v56  ;;  %v3691_v56 = vld [vmem:[%s4136_s1] sm:$0x3] }
  0x5d   :  { %784 = vmatpush2.bf16.msra.mxu1 %v3142_v57 }
  0x5e   :  { %785 = vmatprep.subr.bf16.mxu1 %v3146_v58  ;;  %741 = vmatpush2.bf16.msra.mxu0 %v3145_v59  ;;  %v3697_v58 = vrot.slane %v3691_v56, %v3669_v9 }
  0x5f   :  { %742 = vmatprep.subr.bf16.mxu0 %v3149_v60 }
  0x61   :  { %786 = vmatpush2.bf16.msra.mxu1 %v3148_v61 }
  0x62   :  { %787 = vmatprep.subr.bf16.mxu1 %v3152_v62  ;;  %743 = vmatpush2.bf16.msra.mxu0 %v3151_v63 }
  0x63   :  { %744 = vmatprep.subr.bf16.mxu0 %v3155_v0 }
  0x65   :  { %788 = vmatpush2.bf16.msra.mxu1 %v3154_v1 }
  0x66   :  { %745 = vmatpush2.bf16.msra.mxu0 %v3157_v2  ;;  %3005 = vmatprep.subr.bf16.mxu1 %v3561_v4  ;;  %v212_v2 = vsub.s32 4, %v3660_v6 }
  0x67   :  { %800 = vmatprep.subr.bf16.mxu0 %v3162_v25 }
  0x68   :  { %790 = vmatmul.mubr.bf16.vlgmr.msra.gmra.mxu1 %v3653_v3 }
  0x69   :  { %747 = vmatmul.mubr.bf16.vlgmr.msra.gmra.mxu0 %v3653_v3  ;;  %3007 = vmatprep.mubr.msk.bf16.mxu1 %vm3562_vm0, %v3561_v4 }
  0x6a   :  { %832 = vmatprep.mubr.bf16.mxu0 %v2724_v52  ;;  %801 = vmatpush1.bf16.msra.mxu0 %v3160_v24  ;;  %v3204_v52 = vld [vmem:[#allocation2 + $0x1c4] ss:$24 sps:$4 sm:$0xff]  }
  0x6b   :  { %802 = vmatprep.subr.bf16.mxu0 %v3165_v26 }
  0x6e   :  { %803 = vmatpush1.bf16.msra.mxu0 %v3163_v27 }
  0x6f   :  { %804 = vmatprep.subr.bf16.mxu0 %v3168_v28 }
  0x72   :  { %805 = vmatpush1.bf16.msra.mxu0 %v3166_v29 }
  0x73   :  { %806 = vmatprep.subr.bf16.mxu0 %v3171_v30 }
  0x76   :  { %807 = vmatpush1.bf16.msra.mxu0 %v3169_v31 }
  0x77   :  { %808 = vmatprep.subr.bf16.mxu0 %v3174_v32 }
  0x7a   :  { %809 = vmatpush1.bf16.msra.mxu0 %v3172_v33 }
  0x7b   :  { %810 = vmatprep.subr.bf16.mxu0 %v3177_v34 }
  0x7e   :  { %811 = vmatpush1.bf16.msra.mxu0 %v3175_v35  ;;  %v208_v35 = vsub.s32 3, %v3660_v6 }
  0x7f   :  { %812 = vmatprep.subr.bf16.mxu0 %v3180_v36 }
  0x80   :  { %v3718_v36 = vrot.slane %v3666_v8, %v208_v35 }
  0x82   :  { %813 = vmatpush1.bf16.msra.mxu0 %v3178_v37  ;;  %v3721_v37 = vsub.s32 1, %v3660_v6 }
  0x83   :  { %814 = vmatprep.subr.bf16.mxu0 %v3183_v38 }
  0x86   :  { %815 = vmatpush1.bf16.msra.mxu0 %v3181_v39 }
  0x87   :  { %816 = vmatprep.subr.bf16.mxu0 %v3186_v40 }
  0x8a   :  { %817 = vmatpush2.bf16.msra.mxu0 %v3184_v41  ;;  %v3727_v41 = vrot.slane %v3666_v8, %v3721_v37 }
  0x8b   :  { %818 = vmatprep.subr.bf16.mxu0 %v3189_v42 }
  0x8e   :  { %819 = vmatpush2.bf16.msra.mxu0 %v3187_v43 }
  0x8f   :  { %820 = vmatprep.subr.bf16.mxu0 %v3192_v44 }
  0x92   :  { %821 = vmatpush2.bf16.msra.mxu0 %v3190_v45 }
  0x93   :  { %822 = vmatprep.subr.bf16.mxu0 %v3195_v46 }
  0x96   :  { %823 = vmatpush2.bf16.msra.mxu0 %v3193_v47 }
  0x97   :  { %824 = vmatprep.subr.bf16.mxu0 %v3198_v48 }
  0x9a   :  { %825 = vmatpush2.bf16.msra.mxu0 %v3196_v49 }
  0x9b   :  { %826 = vmatprep.subr.bf16.mxu0 %v3201_v50 }
  0x9e   :  { %827 = vmatpush2.bf16.msra.mxu0 %v3199_v51 }
  0x9f   :  { %828 = vmatprep.subr.bf16.mxu0 %v3204_v52 }
  0xa2   :  { %829 = vmatpush2.bf16.msra.mxu0 %v3202_v53 }
  0xa3   :  { %830 = vmatprep.subr.bf16.mxu0 %v3207_v54 }
  0xa6   :  { %831 = vmatpush2.bf16.msra.mxu0 %v3205_v55 }
  0xa9   :  { %833 = vmatmul.mubr.bf16.vlgmr.msra.gmra.mxu0 %v3653_v3  ;;  %v213_v3 = vrot.slane %v3666_v8, %v212_v2 }
 0x128   :  { %v791_v11 = vpop.f32.mrf.mxu1 }
 0x129   :  { %v792_v13 = vadd.f32 %v791_v11, %v205_v10  ;;  %v748_v14 = vpop.f32.mrf.mxu0 }
 0x12a   :  { %v3676_v15 = vpop.f32.mrf.mxu1  ;;  %v749_v17 = vadd.f32 %v748_v14, %v197_v12 }
 0x12b   :  { %v844_v16 = vpack.c.bf16 %v792_v13, %v792_v13  ;;  %v3678_v18 = vpop.f32.mrf.mxu0  ;;  %v794_v39 = vadd.f32 %v3676_v15, %v3718_v36 }
 0x12c   :  { %v795_v19 = vpop.f32.mrf.mxu1  ;;  %v843_v23 = vpack.c.bf16 %v749_v17, %v749_v17  ;;  %v751_v45 = vadd.f32 %v3678_v18, %v3727_v41 }
 0x12d   :  { %v3680_v20 = vadd.f32 %v795_v19, %v205_v10  ;;  %3006 = vmatpush3.bf16.xpose.msra.mxu1 %v844_v16  ;;  %v752_v21 = vpop.f32.mrf.mxu0  ;;  %v953_v43 = vpack.c.bf16 %v794_v39, %v794_v39 }
 0x12e   :  { %3011 = vmatprep.subr.bf16.mxu1 %v3561_v4  ;;  %v3683_v22 = vadd.f32 %v752_v21, %v197_v12  ;;  %v3693_v57 = vpop.f32.mrf.mxu1  ;;  %v952_v46 = vpack.c.bf16 %v751_v45, %v751_v45 }
 0x12f   :  { %v3703_v5 = vpop.f32.mrf.mxu0 }
 0x134   :  { %3008 = vmatmul.mubr.bf16.vlgmr.msra.gmra.mxu1 %v843_v23  ;;  %v216_v23 = vsub.s32 5, %v3660_v6 }
 0x135   :  { %3013 = vmatprep.mubr.msk.bf16.mxu1 %vm3562_vm0, %v3561_v4 }
 0x136   :  { %v217_v25 = vrot.slane %v3666_v8, %v216_v23 }
 0x169   :  { %v834_v10 = vpop.f32.mrf.mxu0 }
 0x16a   :  { %v835_v11 = vadd.f32 %v834_v10, %v213_v3 }
 0x16b   :  { %v836_v24 = vpop.f32.mrf.mxu0 }
 0x16c   :  { %v845_v12 = vpack.c.bf16 %v835_v11, %v835_v11  ;;  %v837_v44 = vadd.f32 %v836_v24, %v217_v25  ;;  %v1055_v11 = vpack.c.bf16 %v3683_v22, %v3683_v22 }
 0x16d   :  { %v838_v26 = vpop.f32.mrf.mxu0 }
 0x16e   :  { %v910_v13 = vsel %vm908_vm2, %v845_v12, 0  ;;  %v839_v27 = vadd.f32 %v838_v26, %v213_v3  ;;  %v954_v15 = vpack.c.bf16 %v837_v44, %v837_v44 }
 0x16f   :  { %3012 = vmatpush3.bf16.msra.mxu1 %v910_v13  ;;  %v840_v28 = vpop.f32.mrf.mxu0 }
 0x170   :  { %3017 = vmatprep.subr.bf16.mxu1 %v3561_v4  ;;  %v1057_v29 = vpack.c.bf16 %v839_v27, %v839_v27  ;;  %v841_v30 = vadd.f32 %v840_v28, %v217_v25  ;;  %v1013_v47 = vsel %vm908_vm2, %v954_v15, 0 }
 0x172   :  { %v1120_v31 = vsel %vm908_vm2, %v1057_v29, 0  ;;  %v1164_v32 = vpack.c.bf16 %v841_v30, %v841_v30 }
 0x174   :  { %v3712_v33 = vsel %vm908_vm2, %v1164_v32, 0  ;;  %v798_v32 = vadd.f32 %v3693_v57, %v3718_v36 }
 0x176   :  { %v1163_v39 = vpack.c.bf16 %v798_v32, %v798_v32  ;;  %v3253_v32 = vld [vmem:[#allocation4 + $0x80] ss:$8 sps:$4 sm:$0xff]  }
 0x1f4   :  { %v880_v59 = vpop.f32.mrf.mxu1 }
 0x1f5   :  { %v886_v60 = vmul.f32 0.088388346, %v880_v59 }
 0x1f6   :  { %v3009_v61 = vpop.f32.mrf.mxu1 }
 0x1f7   :  { %v891_v62 = vadd.f32 %v3697_v58, %v886_v60 }
 0x1f8   :  { %v883_v63 = vpop.f32.mrf.mxu1 }
 0x1f9   :  { %v893_v0 = vsel %vm892_vm1, %v891_v62, -inf }
 0x1fa   :  { %894 = vmax.xlane.f32.xlu0 %v893_v0  ;;  %v3010_v1 = vpop.f32.mrf.mxu1 }
 0x283   :  { %v895_v14 = vpop.xlane.xlu0 %894 }
 0x284   :  { %v896_v16 = vsub.f32 %v891_v62, %v895_v14 }
 0x286   :  { %v897_v17 = vmul.f32 1.442695, %v896_v16  ;;  %v1102_v16 = vrot.slane %v3691_v56, %v3721_v37 }
 0x288   :  { %3448 = vpow2.f32 %v897_v17 }
 0x295   :  { %v3449_v19 = vpop.eup %3448 }
 0x296   :  { %v899_v21 = vsel %vm892_vm1, %v3449_v19, 0.0 }
 0x297   :  { %900 = vadd.xlane.f32.xlu0 %v899_v21 }
 0x320   :  { %v901_v34 = vpop.xlane.xlu0 %900 }
 0x321   :  { %3450 = vrcp.f32 %v901_v34 }
 0x32e   :  { %v3451_v38 = vpop.eup %3450 }
 0x32f   :  { %v903_v40 = vmul.f32 %v3451_v38, %v3449_v19 }
 0x331   :  { %v904_v42 = vpack.c.bf16 %v903_v40, %v903_v40  ;;  %v755_v40 = vadd.f32 %v3703_v5, %v3727_v41 }
 0x333   :  { %3014 = vmatmul.mubr.msk.bf16.vlgmr.msra.gmra.mxu1 %vm892_vm1, %v904_v42  ;;  %v1162_v42 = vpack.c.bf16 %v755_v40, %v755_v40 }
 0x334   :  { %3018 = vmatpush3.bf16.xpose.msra.mxu1 %v953_v43  ;;  %3019 = vmatprep.mubr.msk.bf16.mxu1 %vm3562_vm0, %v3561_v4 }
 0x335   :  { %3023 = vmatprep.subr.bf16.mxu1 %v3561_v4 }
 0x33b   :  { %3020 = vmatmul.mubr.bf16.vlgmr.msra.gmra.mxu1 %v952_v46 }
 0x33c   :  { %3024 = vmatpush3.bf16.msra.mxu1 %v1013_v47  ;;  %3025 = vmatprep.mubr.msk.bf16.mxu1 %vm3562_vm0, %v3561_v4 }
 0x33d   :  { %3029 = vmatprep.subr.bf16.mxu1 %v3561_v4 }
 0x3f3   :  { %v3739_v8 = vpop.f32.mrf.mxu1 }
 0x3f5   :  { %v3015_v48 = vpop.f32.mrf.mxu1 }
 0x3f7   :  { %v949_v49 = vpop.f32.mrf.mxu1 }
 0x3f9   :  { %v3016_v50 = vpop.f32.mrf.mxu1 }
 0x3fb   :  { %v989_v51 = vpop.f32.mrf.mxu1 }
 0x3fc   :  { %v995_v18 = vmul.f32 0.088388346, %v989_v51 }
 0x3fd   :  { %v3021_v52 = vpop.f32.mrf.mxu1 }
 0x3fe   :  { %v996_v53 = vadd.f32 %v995_v18, %v3697_v58  ;;  %v1056_v58 = vpack.c.bf16 %v3680_v20, %v3680_v20  ;;  %v3208_v18 = vld [vmem:[#allocation4 + $0x70] ss:$8 sps:$4 sm:$0xff]   ;;  %v3210_v52 = vld [vmem:[#allocation4 + $0x74] ss:$8 sps:$4 sm:$0xff]  }
 0x3ff   :  { %v992_v54 = vpop.f32.mrf.mxu1  ;;  %1471 = vmatprep.subr.bf16.mxu0 %v3210_v52 }
 0x400   :  { %v997_v55 = vsel %vm892_vm1, %v996_v53, -inf  ;;  %1472 = vmatpush1.bf16.msra.mxu0 %v3208_v18  ;;  %v3211_v54 = vld [vmem:[#allocation4 + $0x60] ss:$8 sps:$4 sm:$0xff]  }
 0x401   :  { %998 = vmax.xlane.f32.xlu1 %v997_v55  ;;  %v3022_v59 = vpop.f32.mrf.mxu1  ;;  %v3216_v55 = vld [vmem:[#allocation4 + $0x54] ss:$8 sps:$4 sm:$0xff]  }
 0x402   :  { %v3214_v59 = vld [vmem:[#allocation4 + $0x50] ss:$8 sps:$4 sm:$0xff]  }
 0x48a   :  { %v999_v60 = vpop.xlane.xlu1 %998 }
 0x48b   :  { %v1000_v61 = vsub.f32 %v996_v53, %v999_v60  ;;  %v3213_v53 = vld [vmem:[#allocation4 + $0x64] ss:$8 sps:$4 sm:$0xff]  }
 0x48c   :  { %1473 = vmatprep.subr.bf16.mxu0 %v3213_v53  ;;  %v3219_v60 = vld [vmem:[#allocation4 + $0x44] ss:$8 sps:$4 sm:$0xff]  }
 0x48d   :  { %v1001_v62 = vmul.f32 1.442695, %v1000_v61  ;;  %1474 = vmatpush1.bf16.msra.mxu0 %v3211_v54  ;;  %v3217_v61 = vld [vmem:[#allocation4 + $0x40] ss:$8 sps:$4 sm:$0xff]  }
 0x48e   :  { %1475 = vmatprep.subr.bf16.mxu0 %v3216_v55 }
 0x48f   :  { %3452 = vpow2.f32 %v1001_v62  ;;  %v3222_v62 = vld [vmem:[#allocation4 + $0x34] ss:$8 sps:$4 sm:$0xff]  }
 0x491   :  { %1476 = vmatpush1.bf16.msra.mxu0 %v3214_v59 }
 0x492   :  { %1477 = vmatprep.subr.bf16.mxu0 %v3219_v60  ;;  %v3256_v60 = vld [vmem:[%s4143_s8 + $0xe0] ss:$16 sps:$4 sm:$0xff]  }
 0x495   :  { %1478 = vmatpush1.bf16.msra.mxu0 %v3217_v61  ;;  %v3258_v61 = vld [vmem:[%s4143_s8 + $0xe4] ss:$16 sps:$4 sm:$0xff]  }
 0x496   :  { %1479 = vmatprep.subr.bf16.mxu0 %v3222_v62  ;;  %v3259_v62 = vld [vmem:[%s4143_s8 + $0xe8] ss:$16 sps:$4 sm:$0xff]  }
 0x49c   :  { %v3453_v63 = vpop.eup %3452 }
 0x49d   :  { %v1003_v0 = vsel %vm892_vm1, %v3453_v63, 0.0 }
 0x49e   :  { %1004 = vadd.xlane.f32.xlu1 %v1003_v0  ;;  %v3225_v0 = vld [vmem:[#allocation4 + $0x24] ss:$8 sps:$4 sm:$0xff]  }
 0x527   :  { %v1005_v1 = vpop.xlane.xlu1 %1004 }
 0x528   :  { %3454 = vrcp.f32 %v1005_v1  ;;  %v3223_v1 = vld [vmem:[#allocation4 + $0x20] ss:$8 sps:$4 sm:$0xff]  }
 0x535   :  { %v3455_v2 = vpop.eup %3454 }
 0x536   :  { %v1007_v3 = vmul.f32 %v3455_v2, %v3453_v63  ;;  %v3220_v63 = vld [vmem:[#allocation4 + $0x30] ss:$8 sps:$4 sm:$0xff]   ;;  %v3228_v2 = vld [vmem:[#allocation4 + $0x14] ss:$8 sps:$4 sm:$0xff]  }
 0x537   :  { %1480 = vmatpush1.bf16.msra.mxu0 %v3220_v63  ;;  %v3261_v63 = vld [vmem:[%s4143_s8 + $0xec] ss:$16 sps:$4 sm:$0xff]  }
 0x538   :  { %v1008_v10 = vpack.c.bf16 %v1007_v3, %v1007_v3  ;;  %1481 = vmatprep.subr.bf16.mxu0 %v3225_v0  ;;  %v3226_v3 = vld [vmem:[#allocation4 + $0x10] ss:$8 sps:$4 sm:$0xff]   ;;  %v3264_v0 = vld [vmem:[%s4143_s8 + $0xc4] ss:$16 sps:$4 sm:$0xff]  }
 0x53a   :  { %3026 = vmatmul.mubr.msk.bf16.vlgmr.msra.gmra.mxu1 %vm892_vm1, %v1008_v10  ;;  %v3231_v10 = vld [vmem:[#allocation4 + $0x4] ss:$8 sps:$4 sm:$0xff]  }
 0x53b   :  { %3030 = vmatpush3.bf16.xpose.msra.mxu1 %v1056_v58  ;;  %3031 = vmatprep.mubr.msk.bf16.mxu1 %vm3562_vm0, %v3561_v4  ;;  %v3229_v58 = vld [vmem:[#allocation4] ss:$8 sps:$4 sm:$0xff]  }
 0x53c   :  { %3035 = vmatprep.subr.bf16.mxu1 %v3561_v4  ;;  %1482 = vmatpush1.bf16.msra.mxu0 %v3223_v1  ;;  %v3267_v1 = vld [vmem:[%s4143_s8 + $0xcc] ss:$16 sps:$4 sm:$0xff]  }
 0x53d   :  { %1483 = vmatprep.subr.bf16.mxu0 %v3228_v2  ;;  %v3262_v2 = vld [vmem:[%s4143_s8 + $0xc0] ss:$16 sps:$4 sm:$0xff]  }
 0x540   :  { %1484 = vmatpush1.bf16.msra.mxu0 %v3226_v3  ;;  %v3265_v3 = vld [vmem:[%s4143_s8 + $0xc8] ss:$16 sps:$4 sm:$0xff]  }
 0x541   :  { %1485 = vmatprep.subr.bf16.mxu0 %v3231_v10  ;;  %v3270_v10 = vld [vmem:[%s4143_s8 + $0xa4] ss:$16 sps:$4 sm:$0xff]  }
 0x542   :  { %3032 = vmatmul.mubr.bf16.vlgmr.msra.gmra.mxu1 %v1055_v11  ;;  %v3234_v11 = vld [vmem:[#allocation4 + $0xf4] ss:$8 sps:$4 sm:$0xff]  }
 0x543   :  { %3036 = vmatpush3.bf16.msra.mxu1 %v1120_v31  ;;  %3037 = vmatprep.mubr.msk.bf16.mxu1 %vm3562_vm0, %v3561_v4 }
 0x544   :  { %3041 = vmatprep.subr.bf16.mxu1 %v3561_v4  ;;  %1486 = vmatpush1.bf16.msra.mxu0 %v3229_v58  ;;  %v3273_v58 = vld [vmem:[%s4143_s8 + $0xac] ss:$16 sps:$4 sm:$0xff]  }
 0x545   :  { %1487 = vmatprep.subr.bf16.mxu0 %v3234_v11  ;;  %v3268_v11 = vld [vmem:[%s4143_s8 + $0xa0] ss:$16 sps:$4 sm:$0xff]  }
 0x5fa   :  { %v3755_v12 = vpop.f32.mrf.mxu1 }
 0x5fc   :  { %v3027_v20 = vpop.f32.mrf.mxu1 }
 0x5fd   :  { %v3232_v20 = vld [vmem:[#allocation4 + $0xf0] ss:$8 sps:$4 sm:$0xff]  }
 0x5fe   :  { %v1052_v13 = vpop.f32.mrf.mxu1  ;;  %1488 = vmatpush2.bf16.msra.mxu0 %v3232_v20  ;;  %v3271_v20 = vld [vmem:[%s4143_s8 + $0xa8] ss:$16 sps:$4 sm:$0xff]  }
 0x5ff   :  { %v3237_v13 = vld [vmem:[#allocation4 + $0xe4] ss:$8 sps:$4 sm:$0xff]  }
 0x600   :  { %v3028_v14 = vpop.f32.mrf.mxu1  ;;  %1489 = vmatprep.subr.bf16.mxu0 %v3237_v13  ;;  %v3276_v13 = vld [vmem:[%s4143_s8 + $0x84] ss:$16 sps:$4 sm:$0xff]  }
 0x601   :  { %v3235_v14 = vld [vmem:[#allocation4 + $0xe0] ss:$8 sps:$4 sm:$0xff]  }
 0x602   :  { %v1092_v17 = vpop.f32.mrf.mxu1  ;;  %1490 = vmatpush2.bf16.msra.mxu0 %v3235_v14  ;;  %v3279_v14 = vld [vmem:[%s4143_s8 + $0x8c] ss:$16 sps:$4 sm:$0xff]  }
 0x603   :  { %v1098_v19 = vmul.f32 0.088388346, %v1092_v17  ;;  %v3238_v17 = vld [vmem:[#allocation4 + $0xd0] ss:$8 sps:$4 sm:$0xff]  }
 0x604   :  { %v3033_v21 = vpop.f32.mrf.mxu1 }
 0x605   :  { %v1103_v23 = vadd.f32 %v1102_v16, %v1098_v19  ;;  %v3243_v19 = vld [vmem:[#allocation4 + $0xc4] ss:$8 sps:$4 sm:$0xff]   ;;  %v3241_v21 = vld [vmem:[#allocation4 + $0xc0] ss:$8 sps:$4 sm:$0xff]  }
 0x606   :  { %v1095_v22 = vpop.f32.mrf.mxu1 }
 0x607   :  { %v1104_v24 = vsel %vm892_vm1, %v1103_v23, -inf  ;;  %v3244_v22 = vld [vmem:[#allocation4 + $0xb0] ss:$8 sps:$4 sm:$0xff]  }
 0x608   :  { %1105 = vmax.xlane.f32.xlu0 %v1104_v24  ;;  %v3034_v25 = vpop.f32.mrf.mxu1  ;;  %v3249_v24 = vld [vmem:[#allocation4 + $0xa4] ss:$8 sps:$4 sm:$0xff]  }
 0x609   :  { %v3247_v25 = vld [vmem:[#allocation4 + $0xa0] ss:$8 sps:$4 sm:$0xff]  }
 0x691   :  { %v1106_v26 = vpop.xlane.xlu0 %1105 }
 0x692   :  { %v1107_v27 = vsub.f32 %v1103_v23, %v1106_v26  ;;  %v3246_v23 = vld [vmem:[#allocation4 + $0xb4] ss:$8 sps:$4 sm:$0xff]  }
 0x693   :  { %v3252_v26 = vld [vmem:[#allocation4 + $0x94] ss:$8 sps:$4 sm:$0xff]  }
 0x694   :  { %v1108_v28 = vmul.f32 1.442695, %v1107_v27  ;;  %v3250_v27 = vld [vmem:[#allocation4 + $0x90] ss:$8 sps:$4 sm:$0xff]  }
 0x696   :  { %3456 = vpow2.f32 %v1108_v28 }
 0x6a3   :  { %v3457_v29 = vpop.eup %3456 }
 0x6a4   :  { %v1110_v30 = vsel %vm892_vm1, %v3457_v29, 0.0 }
 0x6a5   :  { %1111 = vadd.xlane.f32.xlu1 %v1110_v30 }
 0x72e   :  { %v1112_v31 = vpop.xlane.xlu1 %1111 }
 0x72f   :  { %3458 = vrcp.f32 %v1112_v31 }
 0x73c   :  { %v3459_v56 = vpop.eup %3458 }
 0x73d   :  { %v1114_v34 = vmul.f32 %v3459_v56, %v3457_v29  ;;  %v3255_v56 = vld [vmem:[#allocation4 + $0x84] ss:$8 sps:$4 sm:$0xff]  }
 0x73f   :  { %v1115_v38 = vpack.c.bf16 %v1114_v34, %v1114_v34 }
 0x741   :  { %3038 = vmatmul.mubr.msk.bf16.vlgmr.msra.gmra.mxu1 %vm892_vm1, %v1115_v38 }
 0x742   :  { %3042 = vmatpush3.bf16.xpose.msra.mxu1 %v1163_v39  ;;  %3043 = vmatprep.mubr.msk.bf16.mxu1 %vm3562_vm0, %v3561_v4 }
 0x743   :  { %3047 = vmatprep.subr.bf16.mxu1 %v3561_v4 }
 0x749   :  { %3044 = vmatmul.mubr.bf16.vlgmr.msra.gmra.mxu1 %v1162_v42 }
 0x74a   :  { %3048 = vmatpush3.bf16.msra.mxu1 %v3712_v33  ;;  %3049 = vmatprep.mubr.msk.bf16.mxu1 %vm3562_vm0, %v3561_v4 }
 0x74b   :  { %1991 = vmatprep.subr.bf16.mxu1 %v3258_v61  ;;  %v3325_v61 = vld [vmem:[%s4143_s8 + $0x188] ss:$16 sps:$4 sm:$0xff]  }
 0x801   :  { %v3772_v57 = vpop.f32.mrf.mxu1 }
 0x802   :  { %v1265_v39 = vpack.c.bf16 %v3772_v57, %v3739_v8 }
 0x803   :  { %v3039_v36 = vpop.f32.mrf.mxu1 }
 0x805   :  { %v1159_v43 = vpop.f32.mrf.mxu1 }
 0x806   :  { %v1299_v43 = vld [vmem:[%s4140_s5] sm:$0x3] }
 0x807   :  { %v3040_v44 = vpop.f32.mrf.mxu1 }
 0x808   :  { %v1304_v44 = vrot.slane %v1299_v43, %v3669_v9 }
 0x809   :  { %v1199_v45 = vpop.f32.mrf.mxu1 }
 0x80a   :  { %v1205_v15 = vmul.f32 0.088388346, %v1199_v45  ;;  %v1308_v45 = vrot.slane %v1299_v43, %v3721_v37 }
 0x80b   :  { %v3045_v46 = vpop.f32.mrf.mxu1 }
 0x80c   :  { %v1206_v47 = vadd.f32 %v1205_v15, %v1102_v16  ;;  %v3240_v16 = vld [vmem:[#allocation4 + $0xd4] ss:$8 sps:$4 sm:$0xff]  }
 0x80d   :  { %v1202_v48 = vpop.f32.mrf.mxu1  ;;  %1491 = vmatprep.subr.bf16.mxu0 %v3240_v16  ;;  %v3274_v16 = vld [vmem:[%s4143_s8 + $0x80] ss:$16 sps:$4 sm:$0xff]  }
 0x80e   :  { %v1207_v5 = vsel %vm892_vm1, %v1206_v47, -inf  ;;  %1492 = vmatpush2.bf16.msra.mxu0 %v3238_v17  ;;  %v3277_v17 = vld [vmem:[%s4143_s8 + $0x88] ss:$16 sps:$4 sm:$0xff]  }
 0x80f   :  { %1208 = vmax.xlane.f32.xlu0 %v1207_v5  ;;  %v3046_v41 = vpop.f32.mrf.mxu1  ;;  %1493 = vmatprep.subr.bf16.mxu0 %v3243_v19  ;;  %v3489_v5 = vld [vmem:[%s4135_s0 + $0x8] sm:$0xff]  ;;  %v3282_v19 = vld [vmem:[%s4143_s8 + $0x64] ss:$16 sps:$4 sm:$0xff]  }
 0x810   :  { %v93_v41 = vunpack.c.l.bf16 %v3489_v5 }
 0x812   :  { %1494 = vmatpush2.bf16.msra.mxu0 %v3241_v21  ;;  %v3285_v21 = vld [vmem:[%s4143_s8 + $0x6c] ss:$16 sps:$4 sm:$0xff]  }
 0x813   :  { %1495 = vmatprep.subr.bf16.mxu0 %v3246_v23  ;;  %v3280_v23 = vld [vmem:[%s4143_s8 + $0x60] ss:$16 sps:$4 sm:$0xff]  }
 0x816   :  { %1496 = vmatpush2.bf16.msra.mxu0 %v3244_v22  ;;  %v3283_v22 = vld [vmem:[%s4143_s8 + $0x68] ss:$16 sps:$4 sm:$0xff]  }
 0x817   :  { %1497 = vmatprep.subr.bf16.mxu0 %v3249_v24  ;;  %v3288_v24 = vld [vmem:[%s4143_s8 + $0x44] ss:$16 sps:$4 sm:$0xff]  }
 0x81a   :  { %1498 = vmatpush2.bf16.msra.mxu0 %v3247_v25  ;;  %v3291_v25 = vld [vmem:[%s4143_s8 + $0x4c] ss:$16 sps:$4 sm:$0xff]  }
 0x81b   :  { %1499 = vmatprep.subr.bf16.mxu0 %v3252_v26  ;;  %v3286_v26 = vld [vmem:[%s4143_s8 + $0x40] ss:$16 sps:$4 sm:$0xff]  }
 0x81e   :  { %1500 = vmatpush2.bf16.msra.mxu0 %v3250_v27  ;;  %v3289_v27 = vld [vmem:[%s4143_s8 + $0x48] ss:$16 sps:$4 sm:$0xff]  }
 0x81f   :  { %1501 = vmatprep.subr.bf16.mxu0 %v3255_v56  ;;  %v3300_v56 = vld [vmem:[%s4143_s8 + $0x4] ss:$16 sps:$4 sm:$0xff]  }
 0x822   :  { %1502 = vmatpush2.bf16.msra.mxu0 %v3253_v32  ;;  %v3303_v32 = vld [vmem:[%s4143_s8 + $0xc] ss:$16 sps:$4 sm:$0xff]  }
 0x823   :  { %2034 = vmatprep.subr.bf16.mxu0 %v3261_v63  ;;  %v3330_v63 = vld [vmem:[%s4143_s8 + $0x164] ss:$16 sps:$4 sm:$0xff]  }
 0x898   :  { %v1209_v49 = vpop.xlane.xlu0 %1208 }
 0x899   :  { %v1210_v50 = vsub.f32 %v1206_v47, %v1209_v49 }
 0x89b   :  { %v1211_v33 = vmul.f32 1.442695, %v1210_v50 }
 0x89d   :  { %3460 = vpow2.f32 %v1211_v33 }
 0x8aa   :  { %v3775_v51 = vpop.eup %3460 }
 0x8ab   :  { %v1213_v4 = vsel %vm892_vm1, %v3775_v51, 0.0 }
 0x8ac   :  { %1214 = vadd.xlane.f32.xlu1 %v1213_v4  ;;  %v94_v4 = vunpack.c.h.bf16 %v3489_v5 }
 0x935   :  { %v1215_v28 = vpop.xlane.xlu1 %1214 }
 0x936   :  { %3462 = vrcp.f32 %v1215_v28  ;;  %v3294_v28 = vld [vmem:[%s4143_s8 + $0x24] ss:$16 sps:$4 sm:$0xff]  }
 0x943   :  { %v3463_v29 = vpop.eup %3462 }
 0x944   :  { %v1217_v30 = vmul.f32 %v3463_v29, %v3775_v51  ;;  %v3297_v29 = vld [vmem:[%s4143_s8 + $0x2c] ss:$16 sps:$4 sm:$0xff]  }
 0x946   :  { %v1218_v31 = vpack.c.bf16 %v1217_v30, %v1217_v30  ;;  %v3292_v30 = vld [vmem:[%s4143_s8 + $0x20] ss:$16 sps:$4 sm:$0xff]  }
 0x948   :  { %3050 = vmatmul.mubr.msk.bf16.vlgmr.msra.gmra.mxu1 %vm892_vm1, %v1218_v31  ;;  %v3295_v31 = vld [vmem:[%s4143_s8 + $0x28] ss:$16 sps:$4 sm:$0xff]  }
 0x949   :  { %1992 = vmatpush1.bf16.msra.mxu1 %v3256_v60  ;;  %v3322_v60 = vld [vmem:[%s4143_s8 + $0x180] ss:$16 sps:$4 sm:$0xff]  }
 0x94a   :  { %1993 = vmatprep.subr.bf16.mxu1 %v3264_v0  ;;  %v3333_v0 = vld [vmem:[%s4143_s8 + $0x16c] ss:$16 sps:$4 sm:$0xff]  }
 0x94d   :  { %1994 = vmatpush1.bf16.msra.mxu1 %v3262_v2  ;;  %v3331_v2 = vld [vmem:[%s4143_s8 + $0x168] ss:$16 sps:$4 sm:$0xff]  }
 0x94e   :  { %1995 = vmatprep.subr.bf16.mxu1 %v3270_v10  ;;  %v3339_v10 = vld [vmem:[%s4143_s8 + $0x14c] ss:$16 sps:$4 sm:$0xff]  }
 0x951   :  { %1996 = vmatpush1.bf16.msra.mxu1 %v3268_v11  ;;  %v3337_v11 = vld [vmem:[%s4143_s8 + $0x148] ss:$16 sps:$4 sm:$0xff]  }
 0x952   :  { %1997 = vmatprep.subr.bf16.mxu1 %v3276_v13  ;;  %v3345_v13 = vld [vmem:[%s4143_s8 + $0x12c] ss:$16 sps:$4 sm:$0xff]  }
 0x955   :  { %1998 = vmatpush1.bf16.msra.mxu1 %v3274_v16  ;;  %v3343_v16 = vld [vmem:[%s4143_s8 + $0x128] ss:$16 sps:$4 sm:$0xff]  }
 0x956   :  { %1999 = vmatprep.subr.bf16.mxu1 %v3282_v19  ;;  %v3351_v19 = vld [vmem:[%s4143_s8 + $0x10c] ss:$16 sps:$4 sm:$0xff]  }
 0x959   :  { %2000 = vmatpush1.bf16.msra.mxu1 %v3280_v23  ;;  %v3349_v23 = vld [vmem:[%s4143_s8 + $0x108] ss:$16 sps:$4 sm:$0xff]  }
 0x95a   :  { %2001 = vmatprep.subr.bf16.mxu1 %v3288_v24  ;;  %v3357_v24 = vld [vmem:[#allocation6 + $0x174] ss:$8 sps:$4 sm:$0xff]  }
 0x95d   :  { %2002 = vmatpush1.bf16.msra.mxu1 %v3286_v26 }
 0x95e   :  { %2003 = vmatprep.subr.bf16.mxu1 %v3294_v28 }
 0x961   :  { %2004 = vmatpush1.bf16.msra.mxu1 %v3292_v30 }
 0x962   :  { %2005 = vmatprep.subr.bf16.mxu1 %v3300_v56 }
 0xa08   :  { %v1259_v34 = vpop.f32.mrf.mxu1 }
 0xa09   :  { %v1266_v38 = vpack.c.bf16 %v1259_v34, %v3755_v12  ;;  %v3488_v12 = vld [vmem:[%s4135_s0] sm:$0xff] }
 0xa0a   :  { %v3051_v40 = vpop.f32.mrf.mxu1  ;;  %v91_v46 = vunpack.c.l.bf16 %v3488_v12  ;;  %v92_v57 = vunpack.c.h.bf16 %v3488_v12  ;;  %v3298_v34 = vld [vmem:[%s4143_s8] ss:$16 sps:$4 sm:$0xff]  }
 0xa0b   :  { %1503 = vmatprep.mubr.bf16.mxu0 %v1266_v38  ;;  %v3301_v38 = vld [vmem:[%s4143_s8 + $0x8] ss:$16 sps:$4 sm:$0xff]   ;;  %v3309_v40 = vld [vmem:[%s4143_s8 + $0x1ec] ss:$16 sps:$4 sm:$0xff]   ;;  %2006 = vmatpush1.bf16.msra.mxu1 %v3298_v34 }
 0xa0c   :  { %v1262_v42 = vpop.f32.mrf.mxu1  ;;  %1504 = vmatmul.mubr.bf16.vlgmr.msra.gmra.mxu0 %v1265_v39  ;;  %v3306_v39 = vld [vmem:[%s4143_s8 + $0x1e4] ss:$16 sps:$4 sm:$0xff]  }
 0xa0d   :  { %2035 = vmatpush1.bf16.msra.mxu0 %v3259_v62  ;;  %v3304_v42 = vld [vmem:[%s4143_s8 + $0x1e0] ss:$16 sps:$4 sm:$0xff]   ;;  %2007 = vmatprep.subr.bf16.mxu1 %v3306_v39  ;;  %v3327_v62 = vld [vmem:[%s4143_s8 + $0x18c] ss:$16 sps:$4 sm:$0xff]  }
 0xa0e   :  { %v3052_v36 = vpop.f32.mrf.mxu1  ;;  %2036 = vmatprep.subr.bf16.mxu0 %v3267_v1  ;;  %v3328_v1 = vld [vmem:[%s4143_s8 + $0x160] ss:$16 sps:$4 sm:$0xff]  }
 0xa0f   :  { %v3307_v36 = vld [vmem:[%s4143_s8 + $0x1e8] ss:$16 sps:$4 sm:$0xff]   ;;  %2008 = vmatpush2.bf16.msra.mxu1 %v3304_v42 }
 0xa11   :  { %2037 = vmatpush1.bf16.msra.mxu0 %v3265_v3  ;;  %v3336_v3 = vld [vmem:[%s4143_s8 + $0x144] ss:$16 sps:$4 sm:$0xff]  }
 0xa12   :  { %2038 = vmatprep.subr.bf16.mxu0 %v3273_v58  ;;  %v3334_v58 = vld [vmem:[%s4143_s8 + $0x140] ss:$16 sps:$4 sm:$0xff]  }
 0xa15   :  { %2039 = vmatpush1.bf16.msra.mxu0 %v3271_v20  ;;  %v3342_v20 = vld [vmem:[%s4143_s8 + $0x124] ss:$16 sps:$4 sm:$0xff]  }
 0xa16   :  { %2040 = vmatprep.subr.bf16.mxu0 %v3279_v14  ;;  %v3340_v14 = vld [vmem:[%s4143_s8 + $0x120] ss:$16 sps:$4 sm:$0xff]  }
 0xa19   :  { %2041 = vmatpush1.bf16.msra.mxu0 %v3277_v17  ;;  %v3348_v17 = vld [vmem:[%s4143_s8 + $0x104] ss:$16 sps:$4 sm:$0xff]  }
 0xa1a   :  { %2042 = vmatprep.subr.bf16.mxu0 %v3285_v21  ;;  %v3346_v21 = vld [vmem:[%s4143_s8 + $0x100] ss:$16 sps:$4 sm:$0xff]  }
 0xa1d   :  { %2043 = vmatpush1.bf16.msra.mxu0 %v3283_v22  ;;  %v3354_v22 = vld [vmem:[#allocation6 + $0x74] ss:$8 sps:$4 sm:$0xff]  }
 0xa1e   :  { %2044 = vmatprep.subr.bf16.mxu0 %v3291_v25 }
 0xa21   :  { %2045 = vmatpush1.bf16.msra.mxu0 %v3289_v27 }
 0xa22   :  { %2046 = vmatprep.subr.bf16.mxu0 %v3297_v29 }
 0xa25   :  { %2047 = vmatpush1.bf16.msra.mxu0 %v3295_v31  ;;  %v1518_v31 = vld [vmem:[%s4141_s6] sm:$0x3] }
 0xa26   :  { %2048 = vmatprep.subr.bf16.mxu0 %v3303_v32  ;;  %v1519_v32 = vld [vmem:[%s4142_s7] sm:$0x3]  ;;  %v1561_v39 = vrot.slane %v1518_v31, %v3721_v37 }
 0xa29   :  { %2049 = vmatpush1.bf16.msra.mxu0 %v3301_v38  ;;  %v1557_v38 = vrot.slane %v1518_v31, %v3669_v9  ;;  %v3409_v31 = vld [vmem:[#allocation6 + $0x1e0] ss:$8 sps:$4 sm:$0xff]  }
 0xa2a   :  { %2050 = vmatprep.subr.bf16.mxu0 %v3309_v40 }
 0xa2d   :  { %2051 = vmatpush2.bf16.msra.mxu0 %v3307_v36  ;;  %v1572_v36 = vrot.slane %v1519_v32, %v3669_v9 }
 0xacc   :  { %v1505_v15 = vpop.f32.mrf.mxu0 }
 0xacd   :  { %v1506_v8 = vadd.f32 %v1505_v15, %v1304_v44 }
 0xace   :  { %v1507_v47 = vpop.f32.mrf.mxu0 }
 0xacf   :  { %v1508_v48 = vadd.f32 %v1507_v47, %v1308_v45  ;;  %v3795_v50 = vadd.f32 %v1506_v8, %v91_v46 }
 0xad0   :  { %v1509_v49 = vpop.f32.mrf.mxu0 }
 0xad1   :  { %v3797_v33 = vadd.f32 %v1508_v48, %v92_v57  ;;  %v1510_v51 = vadd.f32 %v1509_v49, %v1304_v44 }
 0xad2   :  { %v1511_v18 = vpop.f32.mrf.mxu0 }
 0xad3   :  { %v1512_v52 = vadd.f32 %v1511_v18, %v1308_v45  ;;  %v1520_v53 = vadd.f32 %v3797_v33, %v3795_v50  ;;  %v3801_v54 = vadd.f32 %v1510_v51, %v93_v41  ;;  %v3315_v51 = vld [vmem:[%s4143_s8 + $0x1cc] ss:$16 sps:$4 sm:$0xff]   ;;  %v3313_v18 = vld [vmem:[%s4143_s8 + $0x1c8] ss:$16 sps:$4 sm:$0xff]  }
 0xad4   :  { %2052 = vmatprep.subr.bf16.mxu0 %v3315_v51  ;;  %v3355_v51 = vld [vmem:[#allocation6 + $0x170] ss:$8 sps:$4 sm:$0xff]  }
 0xad5   :  { %v3803_v55 = vadd.f32 %v1512_v52, %v94_v4  ;;  %1521 = vadd.xlane.f32.xlu0 %v1520_v53  ;;  %v3310_v4 = vld [vmem:[%s4143_s8 + $0x1c0] ss:$16 sps:$4 sm:$0xff]   ;;  %2053 = vmatpush2.bf16.msra.mxu0 %v3313_v18  ;;  %v3318_v52 = vld [vmem:[%s4143_s8 + $0x1a4] ss:$16 sps:$4 sm:$0xff]   ;;  %v3321_v53 = vld [vmem:[%s4143_s8 + $0x1ac] ss:$16 sps:$4 sm:$0xff]  }
 0xad6   :  { %2054 = vmatprep.subr.bf16.mxu0 %v3321_v53  ;;  %v3358_v18 = vld [vmem:[#allocation6 + $0x60] ss:$8 sps:$4 sm:$0xff]   ;;  %v3366_v53 = vld [vmem:[#allocation6 + $0x54] ss:$8 sps:$4 sm:$0xff]  }
 0xad7   :  { %v1523_v59 = vadd.f32 %v3803_v55, %v3801_v54 }
 0xad9   :  { %1524 = vadd.xlane.f32.xlu1 %v1523_v59  ;;  %v3324_v59 = vld [vmem:[%s4143_s8 + $0x184] ss:$16 sps:$4 sm:$0xff]  }
 0xb5e   :  { %v1522_v43 = vpop.xlane.xlu0 %1521 }
 0xb5f   :  { %v1527_v44 = vmul.f32 0.00390625, %v1522_v43  ;;  %v1576_v43 = vrot.slane %v1519_v32, %v3721_v37  ;;  %v3417_v32 = vld [vmem:[#allocation6 + $0x1d4] ss:$8 sps:$4 sm:$0xff]  }
 0xb61   :  { %v3916_v45 = vsub.f32 %v3795_v50, %v1527_v44  ;;  %v3919_v15 = vsub.f32 %v3797_v33, %v1527_v44  ;;  %v3312_v33 = vld [vmem:[%s4143_s8 + $0x1c4] ss:$16 sps:$4 sm:$0xff]  }
 0xb62   :  { %v1525_v12 = vpop.xlane.xlu1 %1524  ;;  %2009 = vmatprep.subr.bf16.mxu1 %v3312_v33  ;;  %v3352_v33 = vld [vmem:[#allocation6 + $0x70] ss:$8 sps:$4 sm:$0xff]  }
 0xb63   :  { %v1528_v46 = vmul.f32 0.00390625, %v1525_v12  ;;  %v1533_v8 = vmul.f32 %v3916_v45, %v3916_v45  ;;  %v1534_v57 = vmul.f32 %v3919_v15, %v3919_v15  ;;  %2010 = vmatpush2.bf16.msra.mxu1 %v3310_v4  ;;  %v3363_v4 = vld [vmem:[#allocation6 + $0x164] ss:$8 sps:$4 sm:$0xff]  }
 0xb64   :  { %2011 = vmatprep.subr.bf16.mxu1 %v3318_v52  ;;  %v3361_v52 = vld [vmem:[#allocation6 + $0x160] ss:$8 sps:$4 sm:$0xff]  }
 0xb65   :  { %v3926_v47 = vsub.f32 %v3801_v54, %v1528_v46  ;;  %v3929_v48 = vsub.f32 %v3803_v55, %v1528_v46  ;;  %v1537_v5 = vadd.f32 %v1534_v57, %v1533_v8  ;;  %v3316_v54 = vld [vmem:[%s4143_s8 + $0x1a0] ss:$16 sps:$4 sm:$0xff]   ;;  %v3319_v55 = vld [vmem:[%s4143_s8 + $0x1a8] ss:$16 sps:$4 sm:$0xff]  }
 0xb66   :  { %2055 = vmatpush2.bf16.msra.mxu0 %v3319_v55  ;;  %v3364_v55 = vld [vmem:[#allocation6 + $0x50] ss:$8 sps:$4 sm:$0xff]  }
 0xb67   :  { %1538 = vadd.xlane.f32.xlu0 %v1537_v5  ;;  %v1535_v41 = vmul.f32 %v3926_v47, %v3926_v47  ;;  %v1536_v49 = vmul.f32 %v3929_v48, %v3929_v48  ;;  %2012 = vmatpush2.bf16.msra.mxu1 %v3316_v54  ;;  %v3369_v54 = vld [vmem:[#allocation6 + $0x154] ss:$8 sps:$4 sm:$0xff]  }
 0xb68   :  { %2013 = vmatprep.subr.bf16.mxu1 %v3324_v59  ;;  %2056 = vmatprep.subr.bf16.mxu0 %v3327_v62  ;;  %v3367_v59 = vld [vmem:[#allocation6 + $0x150] ss:$8 sps:$4 sm:$0xff]   ;;  %v3370_v62 = vld [vmem:[#allocation6 + $0x40] ss:$8 sps:$4 sm:$0xff]  }
 0xb69   :  { %v1540_v50 = vadd.f32 %v1536_v49, %v1535_v41 }
 0xb6a   :  { %2057 = vmatpush2.bf16.msra.mxu0 %v3325_v61  ;;  %v3375_v61 = vld [vmem:[#allocation6 + $0x144] ss:$8 sps:$4 sm:$0xff]  }
 0xb6b   :  { %1541 = vadd.xlane.f32.xlu1 %v1540_v50  ;;  %2014 = vmatpush2.bf16.msra.mxu1 %v3322_v60  ;;  %v3372_v60 = vld [vmem:[#allocation6 + $0x44] ss:$8 sps:$4 sm:$0xff]  }
 0xb6c   :  { %2015 = vmatprep.subr.bf16.mxu1 %v3330_v63  ;;  %2058 = vmatprep.subr.bf16.mxu0 %v3333_v0  ;;  %v3373_v63 = vld [vmem:[#allocation6 + $0x140] ss:$8 sps:$4 sm:$0xff]   ;;  %v3378_v0 = vld [vmem:[#allocation6 + $0x34] ss:$8 sps:$4 sm:$0xff]  }
 0xb6e   :  { %2059 = vmatpush2.bf16.msra.mxu0 %v3331_v2  ;;  %v3376_v2 = vld [vmem:[#allocation6 + $0x30] ss:$8 sps:$4 sm:$0xff]  }
 0xb6f   :  { %2016 = vmatpush2.bf16.msra.mxu1 %v3328_v1  ;;  %2060 = vmatprep.subr.bf16.mxu0 %v3339_v10  ;;  %v3381_v1 = vld [vmem:[#allocation6 + $0x134] ss:$8 sps:$4 sm:$0xff]   ;;  %v3384_v10 = vld [vmem:[#allocation6 + $0x24] ss:$8 sps:$4 sm:$0xff]  }
 0xb70   :  { %2017 = vmatprep.subr.bf16.mxu1 %v3336_v3  ;;  %v3379_v3 = vld [vmem:[#allocation6 + $0x130] ss:$8 sps:$4 sm:$0xff]  }
 0xb72   :  { %2061 = vmatpush2.bf16.msra.mxu0 %v3337_v11  ;;  %v3382_v11 = vld [vmem:[#allocation6 + $0x20] ss:$8 sps:$4 sm:$0xff]  }
 0xb73   :  { %2018 = vmatpush2.bf16.msra.mxu1 %v3334_v58  ;;  %2062 = vmatprep.subr.bf16.mxu0 %v3345_v13  ;;  %v3387_v58 = vld [vmem:[#allocation6 + $0x124] ss:$8 sps:$4 sm:$0xff]   ;;  %v3390_v13 = vld [vmem:[#allocation6 + $0x14] ss:$8 sps:$4 sm:$0xff]  }
 0xb74   :  { %2019 = vmatprep.subr.bf16.mxu1 %v3342_v20  ;;  %v3385_v20 = vld [vmem:[#allocation6 + $0x120] ss:$8 sps:$4 sm:$0xff]  }
 0xb76   :  { %2063 = vmatpush2.bf16.msra.mxu0 %v3343_v16  ;;  %v3388_v16 = vld [vmem:[#allocation6 + $0x10] ss:$8 sps:$4 sm:$0xff]  }
 0xb77   :  { %2020 = vmatpush2.bf16.msra.mxu1 %v3340_v14  ;;  %2064 = vmatprep.subr.bf16.mxu0 %v3351_v19  ;;  %v3393_v14 = vld [vmem:[#allocation6 + $0x114] ss:$8 sps:$4 sm:$0xff]   ;;  %v3396_v19 = vld [vmem:[#allocation6 + $0x4] ss:$8 sps:$4 sm:$0xff]  }
 0xb78   :  { %2021 = vmatprep.subr.bf16.mxu1 %v3348_v17  ;;  %v3391_v17 = vld [vmem:[#allocation6 + $0x110] ss:$8 sps:$4 sm:$0xff]  }
 0xb7a   :  { %2065 = vmatpush2.bf16.msra.mxu0 %v3349_v23  ;;  %v3394_v23 = vld [vmem:[#allocation6] ss:$8 sps:$4 sm:$0xff]  }
 0xb7b   :  { %2022 = vmatpush2.bf16.msra.mxu1 %v3346_v21  ;;  %2592 = vmatprep.subr.bf16.mxu0 %v3357_v24  ;;  %v3399_v21 = vld [vmem:[#allocation6 + $0x104] ss:$8 sps:$4 sm:$0xff]   ;;  %v3402_v24 = vld [vmem:[#allocation6 + $0xf4] ss:$8 sps:$4 sm:$0xff]  }
 0xb7c   :  { %2549 = vmatprep.subr.bf16.mxu1 %v3354_v22  ;;  %v3397_v22 = vld [vmem:[#allocation6 + $0x100] ss:$8 sps:$4 sm:$0xff]  }
 0xbf0   :  { %v1539_v25 = vpop.xlane.xlu0 %1538 }
 0xbf1   :  { %v1543_v26 = vmul.f32 0.00390625, %v1539_v25  ;;  %v3405_v25 = vld [vmem:[#allocation6 + $0x1f4] ss:$8 sps:$4 sm:$0xff]  }
 0xbf3   :  { %v1545_v27 = vadd.f32 1e-05, %v1543_v26  ;;  %v3400_v26 = vld [vmem:[#allocation6 + $0xf0] ss:$8 sps:$4 sm:$0xff]  }
 0xbf4   :  { %v1542_v28 = vpop.xlane.xlu1 %1541 }
 0xbf5   :  { %3464 = vrsqrt.f32 %v1545_v27  ;;  %v1544_v29 = vmul.f32 0.00390625, %v1542_v28  ;;  %v3403_v27 = vld [vmem:[#allocation6 + $0x1f0] ss:$8 sps:$4 sm:$0xff]   ;;  %v3408_v28 = vld [vmem:[#allocation6 + $0xe4] ss:$8 sps:$4 sm:$0xff]  }
 0xbf7   :  { %v1546_v30 = vadd.f32 1e-05, %v1544_v29  ;;  %v3411_v29 = vld [vmem:[#allocation6 + $0x1e4] ss:$8 sps:$4 sm:$0xff]  }
 0xbf9   :  { %3466 = vrsqrt.f32 %v1546_v30  ;;  %v3406_v30 = vld [vmem:[#allocation6 + $0xe0] ss:$8 sps:$4 sm:$0xff]  }
 0xc02   :  { %v3465_v56 = vpop.eup %3464 }
 0xc03   :  { %v1550_v34 = vmul.f32 %v3465_v56, %v3919_v15  ;;  %v1549_v40 = vmul.f32 %v3465_v56, %v3916_v45  ;;  %v3414_v56 = vld [vmem:[#allocation6 + $0xd4] ss:$8 sps:$4 sm:$0xff]  }
 0xc05   :  { %v1565_v12 = vmul.f32 %v1561_v39, %v1550_v34  ;;  %v1564_v8 = vmul.f32 %v1557_v38, %v1549_v40  ;;  %v3412_v34 = vld [vmem:[#allocation6 + $0xd0] ss:$8 sps:$4 sm:$0xff]   ;;  %v3423_v40 = vld [vmem:[#allocation6 + $0x1c4] ss:$8 sps:$4 sm:$0xff]  }
 0xc06   :  { %v3467_v42 = vpop.eup %3466 }
 0xc07   :  { %v1552_v44 = vmul.f32 %v3467_v42, %v3929_v48  ;;  %v1551_v46 = vmul.f32 %v3467_v42, %v3926_v47  ;;  %v4033_v15 = vadd.f32 %v1576_v43, %v1565_v12  ;;  %v4037_v49 = vadd.f32 %v1572_v36, %v1564_v8  ;;  %v3360_v47 = vld [vmem:[#allocation6 + $0x64] ss:$8 sps:$4 sm:$0xff]   ;;  %v3418_v42 = vld [vmem:[#allocation6 + $0xc0] ss:$8 sps:$4 sm:$0xff]   ;;  %v3424_v12 = vld [vmem:[#allocation6 + $0xb0] ss:$8 sps:$4 sm:$0xff]  }
 0xc08   :  { %v3432_v8 = vld [vmem:[#allocation6 + $0xa4] ss:$8 sps:$4 sm:$0xff]  }
 0xc09   :  { %v1567_v57 = vmul.f32 %v1561_v39, %v1552_v44  ;;  %v1566_v5 = vmul.f32 %v1557_v38, %v1551_v46  ;;  %v3415_v38 = vld [vmem:[#allocation6 + $0x1d0] ss:$8 sps:$4 sm:$0xff]   ;;  %v3420_v39 = vld [vmem:[#allocation6 + $0xc4] ss:$8 sps:$4 sm:$0xff]   ;;  %v3429_v44 = vld [vmem:[#allocation6 + $0x1b4] ss:$8 sps:$4 sm:$0xff]  }
 0xc0a   :  { %v3427_v46 = vld [vmem:[#allocation6 + $0x1b0] ss:$8 sps:$4 sm:$0xff]  }
 0xc0b   :  { %v4035_v41 = vadd.f32 %v1576_v43, %v1567_v57  ;;  %v4039_v45 = vadd.f32 %v1572_v36, %v1566_v5  ;;  %v3421_v36 = vld [vmem:[#allocation6 + $0x1c0] ss:$8 sps:$4 sm:$0xff]   ;;  %v3426_v43 = vld [vmem:[#allocation6 + $0xb4] ss:$8 sps:$4 sm:$0xff]   ;;  %v3435_v57 = vld [vmem:[#allocation6 + $0x1a4] ss:$8 sps:$4 sm:$0xff]  }
 0xc0c   :  { %v3430_v5 = vld [vmem:[#allocation6 + $0xa0] ss:$8 sps:$4 sm:$0xff]  }
 0xc0d   :  { %v1584_v50 = vpack.c.bf16 %v4035_v41, %v4033_v15  ;;  %v1583_v48 = vpack.c.bf16 %v4039_v45, %v4037_v49 }
 0xc0f   :  { %2023 = vmatprep.mubr.bf16.mxu1 %v1584_v50  ;;  %2066 = vmatprep.mubr.bf16.mxu0 %v1584_v50  ;;  %v3433_v50 = vld [vmem:[#allocation6 + $0x1a0] ss:$8 sps:$4 sm:$0xff]  }
 0xc10   :  { %2024 = vmatmul.mubr.bf16.vlgmr.msra.gmra.mxu1 %v1583_v48  ;;  %2067 = vmatmul.mubr.bf16.vlgmr.msra.gmra.mxu0 %v1583_v48  ;;  %v3438_v48 = vld [vmem:[#allocation6 + $0x94] ss:$8 sps:$4 sm:$0xff]  }
 0xc11   :  { %2550 = vmatpush1.bf16.msra.mxu1 %v3352_v33  ;;  %2593 = vmatpush1.bf16.msra.mxu0 %v3355_v51  ;;  %v3441_v33 = vld [vmem:[#allocation6 + $0x194] ss:$8 sps:$4 sm:$0xff]   ;;  %v3436_v51 = vld [vmem:[#allocation6 + $0x90] ss:$8 sps:$4 sm:$0xff]  }
 0xc12   :  { %2551 = vmatprep.subr.bf16.mxu1 %v3360_v47  ;;  %2594 = vmatprep.subr.bf16.mxu0 %v3363_v4  ;;  %v3439_v47 = vld [vmem:[#allocation6 + $0x190] ss:$8 sps:$4 sm:$0xff]   ;;  %v3442_v4 = vld [vmem:[#allocation6 + $0x80] ss:$8 sps:$4 sm:$0xff]  }
 0xc15   :  { %2552 = vmatpush1.bf16.msra.mxu1 %v3358_v18  ;;  %2595 = vmatpush1.bf16.msra.mxu0 %v3361_v52  ;;  %v3444_v18 = vld [vmem:[#allocation6 + $0x84] ss:$8 sps:$4 sm:$0xff]   ;;  %v3445_v52 = vld [vmem:[#allocation6 + $0x180] ss:$8 sps:$4 sm:$0xff]  }
 0xc16   :  { %2553 = vmatprep.subr.bf16.mxu1 %v3366_v53  ;;  %2596 = vmatprep.subr.bf16.mxu0 %v3369_v54  ;;  %v3447_v53 = vld [vmem:[#allocation6 + $0x184] ss:$8 sps:$4 sm:$0xff]   ;;  %v1649_v54 = vld [vmem:[%s4144_s9] sm:$0xf] }
 0xc19   :  { %2554 = vmatpush1.bf16.msra.mxu1 %v3364_v55  ;;  %2597 = vmatpush1.bf16.msra.mxu0 %v3367_v59  ;;  %v1654_v55 = vrot.slane %v1649_v54, %v3669_v9  ;;  %v1662_v59 = vrot.slane %v1649_v54, %v204_v7 }
 0xc1a   :  { %2555 = vmatprep.subr.bf16.mxu1 %v3372_v60  ;;  %2598 = vmatprep.subr.bf16.mxu0 %v3375_v61  ;;  %v1658_v60 = vrot.slane %v1649_v54, %v3721_v37  ;;  %v1666_v61 = vrot.slane %v1649_v54, %v208_v35 }
 0xc1d   :  { %2556 = vmatpush1.bf16.msra.mxu1 %v3370_v62  ;;  %2599 = vmatpush1.bf16.msra.mxu0 %v3373_v63 }
 0xc1e   :  { %2557 = vmatprep.subr.bf16.mxu1 %v3378_v0  ;;  %2600 = vmatprep.subr.bf16.mxu0 %v3381_v1 }
 0xc21   :  { %2558 = vmatpush1.bf16.msra.mxu1 %v3376_v2  ;;  %2601 = vmatpush1.bf16.msra.mxu0 %v3379_v3 }
 0xc22   :  { %2559 = vmatprep.subr.bf16.mxu1 %v3384_v10  ;;  %2602 = vmatprep.subr.bf16.mxu0 %v3387_v58 }
 0xc25   :  { %2560 = vmatpush1.bf16.msra.mxu1 %v3382_v11  ;;  %2603 = vmatpush1.bf16.msra.mxu0 %v3385_v20 }
 0xc26   :  { %2561 = vmatprep.subr.bf16.mxu1 %v3390_v13  ;;  %2604 = vmatprep.subr.bf16.mxu0 %v3393_v14 }
 0xc29   :  { %2562 = vmatpush1.bf16.msra.mxu1 %v3388_v16  ;;  %2605 = vmatpush1.bf16.msra.mxu0 %v3391_v17 }
 0xc2a   :  { %2563 = vmatprep.subr.bf16.mxu1 %v3396_v19  ;;  %2606 = vmatprep.subr.bf16.mxu0 %v3399_v21 }
 0xc2d   :  { %2564 = vmatpush1.bf16.msra.mxu1 %v3394_v23  ;;  %2607 = vmatpush1.bf16.msra.mxu0 %v3397_v22 }
 0xc2e   :  { %2565 = vmatprep.subr.bf16.mxu1 %v3402_v24  ;;  %2608 = vmatprep.subr.bf16.mxu0 %v3405_v25 }
 0xc31   :  { %2566 = vmatpush2.bf16.msra.mxu1 %v3400_v26  ;;  %2609 = vmatpush2.bf16.msra.mxu0 %v3403_v27 }
 0xc32   :  { %2567 = vmatprep.subr.bf16.mxu1 %v3408_v28  ;;  %2610 = vmatprep.subr.bf16.mxu0 %v3411_v29 }
 0xc35   :  { %2568 = vmatpush2.bf16.msra.mxu1 %v3406_v30  ;;  %2611 = vmatpush2.bf16.msra.mxu0 %v3409_v31 }
 0xc36   :  { %2569 = vmatprep.subr.bf16.mxu1 %v3414_v56  ;;  %2612 = vmatprep.subr.bf16.mxu0 %v3417_v32 }
 0xc39   :  { %2570 = vmatpush2.bf16.msra.mxu1 %v3412_v34  ;;  %2613 = vmatpush2.bf16.msra.mxu0 %v3415_v38 }
 0xc3a   :  { %2571 = vmatprep.subr.bf16.mxu1 %v3420_v39  ;;  %2614 = vmatprep.subr.bf16.mxu0 %v3423_v40 }
 0xc3d   :  { %2572 = vmatpush2.bf16.msra.mxu1 %v3418_v42  ;;  %2615 = vmatpush2.bf16.msra.mxu0 %v3421_v36 }
 0xc3e   :  { %2573 = vmatprep.subr.bf16.mxu1 %v3426_v43  ;;  %2616 = vmatprep.subr.bf16.mxu0 %v3429_v44 }
 0xc41   :  { %2574 = vmatpush2.bf16.msra.mxu1 %v3424_v12  ;;  %2617 = vmatpush2.bf16.msra.mxu0 %v3427_v46 }
 0xc42   :  { %2575 = vmatprep.subr.bf16.mxu1 %v3432_v8  ;;  %2618 = vmatprep.subr.bf16.mxu0 %v3435_v57 }
 0xc45   :  { %2576 = vmatpush2.bf16.msra.mxu1 %v3430_v5  ;;  %2619 = vmatpush2.bf16.msra.mxu0 %v3433_v50 }
 0xc46   :  { %2577 = vmatprep.subr.bf16.mxu1 %v3438_v48  ;;  %2620 = vmatprep.subr.bf16.mxu0 %v3441_v33 }
 0xc49   :  { %2578 = vmatpush2.bf16.msra.mxu1 %v3436_v51  ;;  %2621 = vmatpush2.bf16.msra.mxu0 %v3439_v47 }
 0xc4a   :  { %2579 = vmatprep.subr.bf16.mxu1 %v3444_v18  ;;  %2622 = vmatprep.subr.bf16.mxu0 %v3447_v53 }
 0xc4d   :  { %2580 = vmatpush2.bf16.msra.mxu1 %v3442_v4  ;;  %2623 = vmatpush2.bf16.msra.mxu0 %v3445_v52 }
 0xcd0   :  { %v2025_v62 = vpop.f32.mrf.mxu1  ;;  %v2068_v63 = vpop.f32.mrf.mxu0 }
 0xcd1   :  { %v4054_v0 = vadd.f32 %v2025_v62, %v1654_v55  ;;  %v4056_v1 = vadd.f32 %v2068_v63, %v1662_v59 }
 0xcd2   :  { %v2027_v2 = vpop.f32.mrf.mxu1  ;;  %v2070_v3 = vpop.f32.mrf.mxu0 }
 0xcd3   :  { %v2077_v10 = vmul.f32 %v4054_v0, %v4054_v0  ;;  %v2079_v58 = vmul.f32 %v4056_v1, %v4056_v1  ;;  %v4062_v7 = vadd.f32 %v2027_v2, %v1658_v60  ;;  %v4064_v11 = vadd.f32 %v2070_v3, %v1666_v61 }
 0xcd4   :  { %v2029_v6 = vpop.f32.mrf.mxu1  ;;  %v2072_v35 = vpop.f32.mrf.mxu0 }
 0xcd5   :  { %v2085_v20 = vmul.f32 %v2077_v10, %v4054_v0  ;;  %v2087_v13 = vmul.f32 %v2079_v58, %v4056_v1  ;;  %v2078_v14 = vmul.f32 %v4062_v7, %v4062_v7  ;;  %v2080_v16 = vmul.f32 %v4064_v11, %v4064_v11 }
 0xcd6   :  { %v4072_v17 = vadd.f32 %v2029_v6, %v1654_v55  ;;  %v4074_v19 = vadd.f32 %v2072_v35, %v1662_v59  ;;  %v2031_v21 = vpop.f32.mrf.mxu1  ;;  %v2074_v23 = vpop.f32.mrf.mxu0 }
 0xcd7   :  { %v2093_v22 = vmul.f32 0.044715, %v2085_v20  ;;  %v2095_v24 = vmul.f32 0.044715, %v2087_v13  ;;  %v2086_v25 = vmul.f32 %v2078_v14, %v4062_v7  ;;  %v2088_v26 = vmul.f32 %v2080_v16, %v4064_v11 }
 0xcd8   :  { %v2081_v27 = vmul.f32 %v4072_v17, %v4072_v17  ;;  %v2083_v28 = vmul.f32 %v4074_v19, %v4074_v19  ;;  %v4082_v29 = vadd.f32 %v2031_v21, %v1658_v60  ;;  %v4084_v30 = vadd.f32 %v2074_v23, %v1666_v61 }
 0xcd9   :  { %v2101_v31 = vadd.f32 %v2093_v22, %v4054_v0  ;;  %v2103_v56 = vadd.f32 %v2095_v24, %v4056_v1  ;;  %v2094_v32 = vmul.f32 0.044715, %v2086_v25  ;;  %v2096_v34 = vmul.f32 0.044715, %v2088_v26 }
 0xcda   :  { %v2089_v38 = vmul.f32 %v2081_v27, %v4072_v17  ;;  %v2091_v39 = vmul.f32 %v2083_v28, %v4074_v19  ;;  %v2082_v40 = vmul.f32 %v4082_v29, %v4082_v29  ;;  %v2084_v42 = vmul.f32 %v4084_v30, %v4084_v30 }
 0xcdb   :  { %v2109_v36 = vmul.f32 0.7978846, %v2101_v31  ;;  %v2111_v43 = vmul.f32 0.7978846, %v2103_v56  ;;  %v2102_v44 = vadd.f32 %v2094_v32, %v4062_v7  ;;  %v2104_v12 = vadd.f32 %v2096_v34, %v4064_v11 }
 0xcdc   :  { %v2097_v46 = vmul.f32 0.044715, %v2089_v38  ;;  %v2099_v8 = vmul.f32 0.044715, %v2091_v39  ;;  %v2090_v57 = vmul.f32 %v2082_v40, %v4082_v29  ;;  %v2092_v5 = vmul.f32 %v2084_v42, %v4084_v30 }
 0xcdd   :  { %3468 = vtanh.f32 %v2109_v36  ;;  %v2110_v50 = vmul.f32 0.7978846, %v2102_v44  ;;  %v2112_v48 = vmul.f32 0.7978846, %v2104_v12 }
 0xcde   :  { %3470 = vtanh.f32 %v2111_v43  ;;  %v2105_v33 = vadd.f32 %v2097_v46, %v4072_v17  ;;  %v2107_v51 = vadd.f32 %v2099_v8, %v4074_v19  ;;  %v2098_v47 = vmul.f32 0.044715, %v2090_v57 }
 0xcdf   :  { %3472 = vtanh.f32 %v2110_v50  ;;  %v2100_v4 = vmul.f32 0.044715, %v2092_v5 }
 0xce0   :  { %3474 = vtanh.f32 %v2112_v48  ;;  %v2113_v18 = vmul.f32 0.7978846, %v2105_v33  ;;  %v2115_v52 = vmul.f32 0.7978846, %v2107_v51  ;;  %v2106_v53 = vadd.f32 %v2098_v47, %v4082_v29 }
 0xce1   :  { %v2108_v54 = vadd.f32 %v2100_v4, %v4084_v30 }
 0xce2   :  { %3476 = vtanh.f32 %v2113_v18  ;;  %v2114_v55 = vmul.f32 0.7978846, %v2106_v53 }
 0xce3   :  { %3478 = vtanh.f32 %v2115_v52  ;;  %v2116_v59 = vmul.f32 0.7978846, %v2108_v54 }
 0xce4   :  { %3480 = vtanh.f32 %v2114_v55 }
 0xce5   :  { %3482 = vtanh.f32 %v2116_v59 }
 0xcea   :  { %v3469_v60 = vpop.eup %3468 }
 0xceb   :  { %v3471_v61 = vpop.eup %3470  ;;  %v2125_v10 = vadd.f32 1.0, %v3469_v60 }
 0xcec   :  { %v3473_v62 = vpop.eup %3472  ;;  %v2127_v35 = vadd.f32 1.0, %v3471_v61 }
 0xced   :  { %v3475_v63 = vpop.eup %3474  ;;  %v2126_v2 = vadd.f32 1.0, %v3473_v62  ;;  %v2133_v24 = vmul.f32 0.5, %v2125_v10 }
 0xcee   :  { %v2128_v58 = vadd.f32 1.0, %v3475_v63  ;;  %v2135_v28 = vmul.f32 0.5, %v2127_v35 }
 0xcef   :  { %v3477_v3 = vpop.eup %3476  ;;  %v2134_v22 = vmul.f32 0.5, %v2126_v2  ;;  %v2141_v40 = vmul.f32 %v2133_v24, %v4054_v0 }
 0xcf0   :  { %v3479_v6 = vpop.eup %3478  ;;  %v2129_v20 = vadd.f32 1.0, %v3477_v3  ;;  %v2136_v27 = vmul.f32 0.5, %v2128_v58  ;;  %v2143_v43 = vmul.f32 %v2135_v28, %v4056_v1 }
 0xcf1   :  { %v3481_v13 = vpop.eup %3480  ;;  %v2131_v14 = vadd.f32 1.0, %v3479_v6  ;;  %v2142_v38 = vmul.f32 %v2134_v22, %v4062_v7  ;;  %v2217_v7 = vld [vmem:[%s4146_s11] sm:$0x3] }
 0xcf2   :  { %v3483_v16 = vpop.eup %3482  ;;  %v2137_v21 = vmul.f32 0.5, %v2129_v20  ;;  %v2130_v23 = vadd.f32 1.0, %v3481_v13  ;;  %v2144_v42 = vmul.f32 %v2136_v27, %v4064_v11  ;;  %v2222_v0 = vrot.slane %v2217_v7, %v3669_v9  ;;  %v2640_v27 = vld [vmem:[%s4148_s13] sm:$0x3] }
 0xcf3   :  { %v2139_v25 = vmul.f32 0.5, %v2131_v14  ;;  %v2132_v26 = vadd.f32 1.0, %v3483_v16  ;;  %v2226_v11 = vrot.slane %v2217_v7, %v3721_v37 }
 0xcf4   :  { %v2138_v31 = vmul.f32 0.5, %v2130_v23  ;;  %v2145_v56 = vmul.f32 %v2137_v21, %v4072_v17 }
 0xcf5   :  { %v2140_v32 = vmul.f32 0.5, %v2132_v26  ;;  %v2147_v34 = vmul.f32 %v2139_v25, %v4074_v19  ;;  %v2639_v26 = vld [vmem:[%s4147_s12] sm:$0x3] }
 0xcf6   :  { %v2146_v39 = vmul.f32 %v2138_v31, %v4082_v29  ;;  %v2149_v46 = vpack.c.bf16 %v2145_v56, %v2141_v40  ;;  %v2677_v28 = vrot.slane %v2639_v26, %v3669_v9  ;;  %v2681_v31 = vrot.slane %v2639_v26, %v3721_v37 }
 0xcf7   :  { %v2148_v36 = vmul.f32 %v2140_v32, %v4084_v30  ;;  %v2151_v17 = vpack.c.bf16 %v2147_v34, %v2143_v43  ;;  %v2692_v32 = vrot.slane %v2640_v27, %v3669_v9  ;;  %v2696_v34 = vrot.slane %v2640_v27, %v3721_v37 }
 0xcf8   :  { %v2150_v44 = vpack.c.bf16 %v2146_v39, %v2142_v38 }
 0xcf9   :  { %v2152_v12 = vpack.c.bf16 %v2148_v36, %v2144_v42 }
 0xcfa   :  { %2581 = vmatprep.mubr.bf16.mxu1 %v2150_v44 }
 0xcfb   :  { %2624 = vmatprep.mubr.bf16.mxu0 %v2152_v12  ;;  %2582 = vmatmul.mubr.bf16.vlgmr.msra.gmra.mxu1 %v2149_v46 }
 0xcfc   :  { %2625 = vmatmul.mubr.bf16.vlgmr.msra.gmra.mxu0 %v2151_v17 }
 0xdbb   :  { %v2583_v19 = vpop.f32.mrf.mxu1 }
 0xdbc   :  { %v2584_v29 = vadd.f32 %v2583_v19, %v2222_v0  ;;  %v2626_v30 = vpop.f32.mrf.mxu0 }
 0xdbd   :  { %v2585_v1 = vpop.f32.mrf.mxu1 }
 0xdbe   :  { %v2627_v8 = vadd.f32 %v2626_v30, %v2584_v29  ;;  %v2586_v57 = vadd.f32 %v2585_v1, %v2226_v11  ;;  %v2628_v5 = vpop.f32.mrf.mxu0 }
 0xdbf   :  { %v2587_v50 = vpop.f32.mrf.mxu1 }
 0xdc0   :  { %v2629_v48 = vadd.f32 %v2628_v5, %v2586_v57  ;;  %v2588_v33 = vadd.f32 %v2587_v50, %v2222_v0  ;;  %v2630_v51 = vpop.f32.mrf.mxu0  ;;  %v2635_v4 = vadd.f32 %v2627_v8, %v4037_v49 }
 0xdc1   :  { %v2589_v47 = vpop.f32.mrf.mxu1 }
 0xdc2   :  { %v2636_v18 = vadd.f32 %v2629_v48, %v4033_v15  ;;  %v2631_v52 = vadd.f32 %v2630_v51, %v2588_v33  ;;  %v2590_v53 = vadd.f32 %v2589_v47, %v2226_v11  ;;  %v2632_v54 = vpop.f32.mrf.mxu0 }
 0xdc4   :  { %v2633_v55 = vadd.f32 %v2632_v54, %v2590_v53  ;;  %v2641_v59 = vadd.f32 %v2636_v18, %v2635_v4  ;;  %v2637_v60 = vadd.f32 %v2631_v52, %v4039_v45 }
 0xdc6   :  { %v2638_v61 = vadd.f32 %v2633_v55, %v4035_v41  ;;  %2642 = vadd.xlane.f32.xlu0 %v2641_v59 }
 0xdc8   :  { %v2644_v62 = vadd.f32 %v2638_v61, %v2637_v60 }
 0xdca   :  { %2645 = vadd.xlane.f32.xlu1 %v2644_v62 }
 0xe4f   :  { %v2643_v63 = vpop.xlane.xlu0 %2642 }
 0xe50   :  { %v2647_v2 = vmul.f32 0.00390625, %v2643_v63 }
 0xe52   :  { %v2649_v3 = vsub.f32 %v2635_v4, %v2647_v2  ;;  %v2650_v10 = vsub.f32 %v2636_v18, %v2647_v2 }
 0xe53   :  { %v2646_v58 = vpop.xlane.xlu1 %2645 }
 0xe54   :  { %v2648_v49 = vmul.f32 0.00390625, %v2646_v58  ;;  %v2653_v6 = vmul.f32 %v2649_v3, %v2649_v3  ;;  %v2654_v15 = vmul.f32 %v2650_v10, %v2650_v10 }
 0xe56   :  { %v2651_v35 = vsub.f32 %v2637_v60, %v2648_v49  ;;  %v2652_v20 = vsub.f32 %v2638_v61, %v2648_v49  ;;  %v2657_v13 = vadd.f32 %v2654_v15, %v2653_v6 }
 0xe58   :  { %2658 = vadd.xlane.f32.xlu0 %v2657_v13  ;;  %v2655_v14 = vmul.f32 %v2651_v35, %v2651_v35  ;;  %v2656_v16 = vmul.f32 %v2652_v20, %v2652_v20 }
 0xe5a   :  { %v2660_v45 = vadd.f32 %v2656_v16, %v2655_v14 }
 0xe5c   :  { %2661 = vadd.xlane.f32.xlu1 %v2660_v45 }
 0xee1   :  { %v2659_v41 = vpop.xlane.xlu0 %2658 }
 0xee2   :  { %v2663_v21 = vmul.f32 0.00390625, %v2659_v41 }
 0xee4   :  { %v2665_v23 = vadd.f32 1e-05, %v2663_v21 }
 0xee5   :  { %v2662_v22 = vpop.xlane.xlu1 %2661 }
 0xee6   :  { %3484 = vrsqrt.f32 %v2665_v23  ;;  %v2664_v24 = vmul.f32 0.00390625, %v2662_v22 }
 0xee8   :  { %v2666_v25 = vadd.f32 1e-05, %v2664_v24 }
 0xeea   :  { %3486 = vrsqrt.f32 %v2666_v25 }
 0xef3   :  { %v3485_v56 = vpop.eup %3484 }
 0xef4   :  { %v2669_v38 = vmul.f32 %v3485_v56, %v2649_v3  ;;  %v2670_v39 = vmul.f32 %v3485_v56, %v2650_v10 }
 0xef6   :  { %v2684_v40 = vmul.f32 %v2677_v28, %v2669_v38  ;;  %v2685_v42 = vmul.f32 %v2681_v31, %v2670_v39 }
 0xef7   :  { %v3487_v36 = vpop.eup %3486 }
 0xef8   :  { %v2699_v43 = vadd.f32 %v2692_v32, %v2684_v40  ;;  %v2700_v44 = vadd.f32 %v2696_v34, %v2685_v42  ;;  %v2671_v12 = vmul.f32 %v3487_v36, %v2651_v35  ;;  %v2672_v46 = vmul.f32 %v3487_v36, %v2652_v20 }
 0xefa   :  { %v2987_v17 = vpack.c.bf16 %v2700_v44, %v2699_v43  ;;  %v2686_v7 = vmul.f32 %v2677_v28, %v2671_v12  ;;  %v2687_v0 = vmul.f32 %v2681_v31, %v2672_v46 }
 0xefc   :  { %2715 = vst [vmem:[%s4149_s14] sm:$0xff] %v2987_v17  ;;  %v2701_v11 = vadd.f32 %v2692_v32, %v2686_v7  ;;  %v2702_v9 = vadd.f32 %v2696_v34, %v2687_v0 }
 0xefe   :  { %v2988_v19 = vpack.c.bf16 %v2702_v9, %v2701_v11 }
 0xf00   :  { %2716 = vst [vmem:[%s4149_s14 + $0x8] sm:$0xff] %v2988_v19 }
 0xf01   :  { %2721 = vsyncpa [#allocation3], 1 }
 0xf02   :  { %2722 = vsyncpa [#allocation5], 1 }

// kernel: _lambda_.6
= control target key start
LH: loop header
LB: loop body
LE: loop exit
PB: predicated region body
PF: predicated region fallthrough
CT: control target
= control target key end

     0   :  { %vm3439_vm0 = vmmov 0   ;;  %vm851_vm1 = vcmask 64512   ;;  %vm867_vm2 = vcmask 1043456   ;;  %s4585_s2 = inlined_call_operand.vmem [shape: bf16[256,768], index: 2, kind: input, shape index: {}]   ;;  %s4586_s0 = inlined_call_operand.vmem [shape: bf16[16,256], index: 0, kind: input, shape index: {}]   ;;  %s4587_s3 = inlined_call_operand.vmem [shape: f32[1,768], index: 3, kind: input, shape index: {}]   ;;  %s4588_s1 = inlined_call_operand.vmem [shape: f32[2,8], index: 1, kind: input, shape index: {}]   ;;  %s4589_s4 = inlined_call_operand.vmem [shape: bf16[256,256], index: 4, kind: input, shape index: {}]   ;;  %s4590_s5 = inlined_call_operand.vmem [shape: f32[1,256], index: 5, kind: input, shape index: {}, may-alias: {5,7,11,13}]   ;;  %s4591_s8 = inlined_call_operand.vmem [shape: bf16[256,512], index: 8, kind: input, shape index: {}]   ;;  %s4592_s10 = inlined_call_operand.vmem [shape: bf16[512,256], index: 10, kind: input, shape index: {}]   ;;  %s4593_s6 = inlined_call_operand.vmem [shape: f32[1,256], index: 6, kind: input, shape index: {}, may-alias: {6,12}]   ;;  %s4594_s7 = inlined_call_operand.vmem [shape: f32[1,256], index: 7, kind: input, shape index: {}, may-alias: {5,7,11,13}]   ;;  %s4595_s9 = inlined_call_operand.vmem [shape: f32[1,512], index: 9, kind: input, shape index: {}]   ;;  %s4596_s11 = inlined_call_operand.vmem [shape: f32[1,256], index: 11, kind: input, shape index: {}, may-alias: {5,7,11,13}]   ;;  %s4597_s12 = inlined_call_operand.vmem [shape: f32[1,256], index: 12, kind: input, shape index: {}, may-alias: {6,12}]   ;;  %s4598_s13 = inlined_call_operand.vmem [shape: f32[1,256], index: 13, kind: input, shape index: {}, may-alias: {5,7,11,13}]   ;;  %s4599_s14 = inlined_call_operand.vmem [shape: bf16[16,256], index: 14, kind: output, shape index: {}]  }
   0x1   :  { %v3012_v0 = vld [vmem:[%s4585_s2 + $0x15c] ss:$24 sps:$4 sm:$0xff]   ;;  %v3014_v1 = vld [vmem:[%s4585_s2 + $0x158] ss:$24 sps:$4 sm:$0xff]   ;;  %v3018_v4 = vld [vmem:[%s4585_s2 + $0x12c] ss:$24 sps:$4 sm:$0xff]  }
   0x2   :  { %716 = vmatprep.subr.bf16.mxu1 %v3012_v0  ;;  %v3015_v2 = vld [vmem:[%s4585_s2 + $0x154] ss:$24 sps:$4 sm:$0xff]   ;;  %v3017_v3 = vld [vmem:[%s4585_s2 + $0x150] ss:$24 sps:$4 sm:$0xff]   ;;  %v3021_v6 = vld [vmem:[%s4585_s2 + $0x124] ss:$24 sps:$4 sm:$0xff]  }
   0x3   :  { %717 = vmatpush1.bf16.msra.mxu1 %v3014_v1  ;;  %v3020_v5 = vld [vmem:[%s4585_s2 + $0x128] ss:$24 sps:$4 sm:$0xff]   ;;  %673 = vmatprep.subr.bf16.mxu0 %v3015_v2  ;;  %v3024_v8 = vld [vmem:[%s4585_s2 + $0xfc] ss:$24 sps:$4 sm:$0xff]   ;;  %v3026_v9 = vld [vmem:[%s4585_s2 + $0xf8] ss:$24 sps:$4 sm:$0xff]  }
   0x4   :  { %674 = vmatpush1.bf16.msra.mxu0 %v3017_v3  ;;  %718 = vmatprep.subr.bf16.mxu1 %v3018_v4  ;;  %v3023_v7 = vld [vmem:[%s4585_s2 + $0x120] ss:$24 sps:$4 sm:$0xff]   ;;  %v3027_v10 = vld [vmem:[%s4585_s2 + $0xf4] ss:$24 sps:$4 sm:$0xff]   ;;  %v3029_v12 = vld [vmem:[%s4585_s2 + $0xf0] ss:$24 sps:$4 sm:$0xff]  }
   0x5   :  { %675 = vmatprep.subr.bf16.mxu0 %v3021_v6  ;;  %v3030_v11 = vld [vmem:[%s4585_s2 + $0xcc] ss:$24 sps:$4 sm:$0xff]   ;;  %v3032_v14 = vld [vmem:[%s4585_s2 + $0xc8] ss:$24 sps:$4 sm:$0xff]   ;;  %v3036_v15 = vld [vmem:[%s4585_s2 + $0x9c] ss:$24 sps:$4 sm:$0xff]  }
   0x6   :  { %v3033_v13 = vld [vmem:[%s4585_s2 + $0xc4] ss:$24 sps:$4 sm:$0xff]   ;;  %v3035_v16 = vld [vmem:[%s4585_s2 + $0xc0] ss:$24 sps:$4 sm:$0xff]   ;;  %v3039_v17 = vld [vmem:[%s4585_s2 + $0x94] ss:$24 sps:$4 sm:$0xff]  }
   0x7   :  { %719 = vmatpush1.bf16.msra.mxu1 %v3020_v5  ;;  %v3038_v18 = vld [vmem:[%s4585_s2 + $0x98] ss:$24 sps:$4 sm:$0xff]   ;;  %v3042_v19 = vld [vmem:[%s4585_s2 + $0x6c] ss:$24 sps:$4 sm:$0xff]   ;;  %v3044_v22 = vld [vmem:[%s4585_s2 + $0x68] ss:$24 sps:$4 sm:$0xff]   ;;  %v153_v5 = vlaneseq }
   0x8   :  { %720 = vmatprep.subr.bf16.mxu1 %v3024_v8  ;;  %676 = vmatpush1.bf16.msra.mxu0 %v3023_v7  ;;  %v3041_v20 = vld [vmem:[%s4585_s2 + $0x90] ss:$24 sps:$4 sm:$0xff]   ;;  %v3045_v21 = vld [vmem:[%s4585_s2 + $0x64] ss:$24 sps:$4 sm:$0xff]   ;;  %v3047_v24 = vld [vmem:[%s4585_s2 + $0x60] ss:$24 sps:$4 sm:$0xff]  }
   0x9   :  { %677 = vmatprep.subr.bf16.mxu0 %v3027_v10  ;;  %v3048_v23 = vld [vmem:[%s4585_s2 + $0x3c] ss:$24 sps:$4 sm:$0xff]   ;;  %v3050_v26 = vld [vmem:[%s4585_s2 + $0x38] ss:$24 sps:$4 sm:$0xff]   ;;  %v3054_v27 = vld [vmem:[%s4585_s2 + $0xc] ss:$24 sps:$4 sm:$0xff]  }
   0xa   :  { %v3051_v25 = vld [vmem:[%s4585_s2 + $0x34] ss:$24 sps:$4 sm:$0xff]   ;;  %v3053_v28 = vld [vmem:[%s4585_s2 + $0x30] ss:$24 sps:$4 sm:$0xff]   ;;  %v3057_v29 = vld [vmem:[%s4585_s2 + $0x4] ss:$24 sps:$4 sm:$0xff]  }
   0xb   :  { %721 = vmatpush1.bf16.msra.mxu1 %v3026_v9  ;;  %v3056_v30 = vld [vmem:[%s4585_s2 + $0x8] ss:$24 sps:$4 sm:$0xff]   ;;  %v3060_v31 = vld [vmem:[%s4585_s2 + $0x2dc] ss:$24 sps:$4 sm:$0xff]   ;;  %v3062_v34 = vld [vmem:[%s4585_s2 + $0x2d8] ss:$24 sps:$4 sm:$0xff]  }
   0xc   :  { %722 = vmatprep.subr.bf16.mxu1 %v3030_v11  ;;  %678 = vmatpush1.bf16.msra.mxu0 %v3029_v12  ;;  %v3059_v32 = vld [vmem:[%s4585_s2] ss:$24 sps:$4 sm:$0xff]   ;;  %v3063_v33 = vld [vmem:[%s4585_s2 + $0x2d4] ss:$24 sps:$4 sm:$0xff]   ;;  %v3065_v36 = vld [vmem:[%s4585_s2 + $0x2d0] ss:$24 sps:$4 sm:$0xff]  }
   0xd   :  { %679 = vmatprep.subr.bf16.mxu0 %v3033_v13  ;;  %v3066_v35 = vld [vmem:[%s4585_s2 + $0x2ac] ss:$24 sps:$4 sm:$0xff]   ;;  %v3068_v38 = vld [vmem:[%s4585_s2 + $0x2a8] ss:$24 sps:$4 sm:$0xff]   ;;  %v3072_v39 = vld [vmem:[%s4585_s2 + $0x27c] ss:$24 sps:$4 sm:$0xff]  }
   0xe   :  { %v3069_v37 = vld [vmem:[%s4585_s2 + $0x2a4] ss:$24 sps:$4 sm:$0xff]   ;;  %v3071_v40 = vld [vmem:[%s4585_s2 + $0x2a0] ss:$24 sps:$4 sm:$0xff]   ;;  %v3075_v41 = vld [vmem:[%s4585_s2 + $0x274] ss:$24 sps:$4 sm:$0xff]  }
   0xf   :  { %723 = vmatpush1.bf16.msra.mxu1 %v3032_v14  ;;  %v3074_v42 = vld [vmem:[%s4585_s2 + $0x278] ss:$24 sps:$4 sm:$0xff]   ;;  %v3078_v43 = vld [vmem:[%s4585_s2 + $0x24c] ss:$24 sps:$4 sm:$0xff]   ;;  %v3080_v45 = vld [vmem:[%s4585_s2 + $0x248] ss:$24 sps:$4 sm:$0xff]  }
  0x10   :  { %724 = vmatprep.subr.bf16.mxu1 %v3036_v15  ;;  %680 = vmatpush1.bf16.msra.mxu0 %v3035_v16  ;;  %v3077_v44 = vld [vmem:[%s4585_s2 + $0x270] ss:$24 sps:$4 sm:$0xff]   ;;  %v3081_v46 = vld [vmem:[%s4585_s2 + $0x244] ss:$24 sps:$4 sm:$0xff]   ;;  %v3083_v48 = vld [vmem:[%s4585_s2 + $0x240] ss:$24 sps:$4 sm:$0xff]  }
  0x11   :  { %681 = vmatprep.subr.bf16.mxu0 %v3039_v17  ;;  %v3659_v47 = vld [vmem:[%s4586_s0] sm:$0xff]  ;;  %v3084_v49 = vld [vmem:[%s4585_s2 + $0x21c] ss:$24 sps:$4 sm:$0xff]   ;;  %v3670_v50 = vld [vmem:[%s4586_s0 + $0x8] sm:$0xff]  ;;  %v3438_v4 = vmov 0.0   ;;  %v3728_v6 = vshrl.u32 %v153_v5, 7 }
  0x12   :  { %v3087_v51 = vld [vmem:[%s4585_s2 + $0x214] ss:$24 sps:$4 sm:$0xff]   ;;  %v2681_v52 = vcombine.high %v3659_v47, %v3670_v50  ;;  %v3086_v53 = vld [vmem:[%s4585_s2 + $0x218] ss:$24 sps:$4 sm:$0xff]   ;;  %v3093_v56 = vld [vmem:[%s4585_s2 + $0x1e4] ss:$24 sps:$4 sm:$0xff]   ;;  %v3721_v3 = vcombine.low %v3659_v47, %v3670_v50 }
  0x13   :  { %725 = vmatpush1.bf16.msra.mxu1 %v3038_v18  ;;  %v3090_v54 = vld [vmem:[%s4585_s2 + $0x1ec] ss:$24 sps:$4 sm:$0xff]   ;;  %v3089_v55 = vld [vmem:[%s4585_s2 + $0x210] ss:$24 sps:$4 sm:$0xff]   ;;  %v3096_v58 = vld [vmem:[%s4585_s2 + $0x1bc] ss:$24 sps:$4 sm:$0xff]  }
  0x14   :  { %726 = vmatprep.subr.bf16.mxu1 %v3042_v19  ;;  %682 = vmatpush1.bf16.msra.mxu0 %v3041_v20  ;;  %v3092_v57 = vld [vmem:[%s4585_s2 + $0x1e8] ss:$24 sps:$4 sm:$0xff]   ;;  %v3099_v60 = vld [vmem:[%s4585_s2 + $0x1b4] ss:$24 sps:$4 sm:$0xff]   ;;  %v3098_v61 = vld [vmem:[%s4585_s2 + $0x1b8] ss:$24 sps:$4 sm:$0xff]  }
  0x15   :  { %683 = vmatprep.subr.bf16.mxu0 %v3045_v21  ;;  %748 = vmatprep.mubr.bf16.mxu1 %v2681_v52  ;;  %v3095_v59 = vld [vmem:[%s4585_s2 + $0x1e0] ss:$24 sps:$4 sm:$0xff]   ;;  %v3102_v62 = vld [vmem:[%s4585_s2 + $0x18c] ss:$24 sps:$4 sm:$0xff]   ;;  %v3101_v63 = vld [vmem:[%s4585_s2 + $0x1b0] ss:$24 sps:$4 sm:$0xff]  }
  0x16   :  { %705 = vmatprep.mubr.bf16.mxu0 %v2681_v52  ;;  %v3105_v0 = vld [vmem:[%s4585_s2 + $0x184] ss:$24 sps:$4 sm:$0xff]   ;;  %v3104_v1 = vld [vmem:[%s4585_s2 + $0x188] ss:$24 sps:$4 sm:$0xff]   ;;  %v163_v7 = vsub.s32 2, %v3728_v6  ;;  %v3737_v9 = vsub.s32 0, %v3728_v6 }
  0x17   :  { %727 = vmatpush1.bf16.msra.mxu1 %v3044_v22  ;;  %v3107_v2 = vld [vmem:[%s4585_s2 + $0x180] ss:$24 sps:$4 sm:$0xff]   ;;  %v171_v5 = vsub.s32 4, %v3728_v6 }
  0x18   :  { %728 = vmatprep.subr.bf16.mxu1 %v3048_v23  ;;  %684 = vmatpush1.bf16.msra.mxu0 %v3047_v24  ;;  %v3734_v8 = vld [vmem:[%s4587_s3] sm:$0x3f] }
  0x19   :  { %685 = vmatprep.subr.bf16.mxu0 %v3051_v25  ;;  %v164_v10 = vrot.slane %v3734_v8, %v163_v7  ;;  %v156_v12 = vrot.slane %v3734_v8, %v3737_v9  ;;  %v3110_v24 = vld [vmem:[%s4585_s2 + $0x160] ss:$24 sps:$4 sm:$0xff]   ;;  %v3112_v25 = vld [vmem:[%s4585_s2 + $0x164] ss:$24 sps:$4 sm:$0xff]  }
  0x1b   :  { %729 = vmatpush1.bf16.msra.mxu1 %v3050_v26  ;;  %v3115_v26 = vld [vmem:[%s4585_s2 + $0x134] ss:$24 sps:$4 sm:$0xff]  }
  0x1c   :  { %730 = vmatprep.subr.bf16.mxu1 %v3054_v27  ;;  %686 = vmatpush1.bf16.msra.mxu0 %v3053_v28  ;;  %v3113_v27 = vld [vmem:[%s4585_s2 + $0x130] ss:$24 sps:$4 sm:$0xff]   ;;  %v3118_v28 = vld [vmem:[%s4585_s2 + $0x104] ss:$24 sps:$4 sm:$0xff]  }
  0x1d   :  { %687 = vmatprep.subr.bf16.mxu0 %v3057_v29  ;;  %v3116_v29 = vld [vmem:[%s4585_s2 + $0x100] ss:$24 sps:$4 sm:$0xff]  }
  0x1f   :  { %731 = vmatpush1.bf16.msra.mxu1 %v3056_v30  ;;  %v3121_v30 = vld [vmem:[%s4585_s2 + $0xd4] ss:$24 sps:$4 sm:$0xff]  }
  0x20   :  { %732 = vmatprep.subr.bf16.mxu1 %v3060_v31  ;;  %688 = vmatpush1.bf16.msra.mxu0 %v3059_v32  ;;  %v3119_v31 = vld [vmem:[%s4585_s2 + $0xd0] ss:$24 sps:$4 sm:$0xff]   ;;  %v3124_v32 = vld [vmem:[%s4585_s2 + $0xa4] ss:$24 sps:$4 sm:$0xff]  }
  0x21   :  { %689 = vmatprep.subr.bf16.mxu0 %v3063_v33  ;;  %v3122_v33 = vld [vmem:[%s4585_s2 + $0xa0] ss:$24 sps:$4 sm:$0xff]  }
  0x23   :  { %733 = vmatpush2.bf16.msra.mxu1 %v3062_v34  ;;  %v3127_v34 = vld [vmem:[%s4585_s2 + $0x74] ss:$24 sps:$4 sm:$0xff]  }
  0x24   :  { %734 = vmatprep.subr.bf16.mxu1 %v3066_v35  ;;  %690 = vmatpush2.bf16.msra.mxu0 %v3065_v36  ;;  %v3125_v35 = vld [vmem:[%s4585_s2 + $0x70] ss:$24 sps:$4 sm:$0xff]   ;;  %v3130_v36 = vld [vmem:[%s4585_s2 + $0x44] ss:$24 sps:$4 sm:$0xff]  }
  0x25   :  { %691 = vmatprep.subr.bf16.mxu0 %v3069_v37  ;;  %v3128_v37 = vld [vmem:[%s4585_s2 + $0x40] ss:$24 sps:$4 sm:$0xff]  }
  0x27   :  { %735 = vmatpush2.bf16.msra.mxu1 %v3068_v38  ;;  %v3133_v38 = vld [vmem:[%s4585_s2 + $0x14] ss:$24 sps:$4 sm:$0xff]  }
  0x28   :  { %736 = vmatprep.subr.bf16.mxu1 %v3072_v39  ;;  %692 = vmatpush2.bf16.msra.mxu0 %v3071_v40  ;;  %v3131_v39 = vld [vmem:[%s4585_s2 + $0x10] ss:$24 sps:$4 sm:$0xff]   ;;  %v3136_v40 = vld [vmem:[%s4585_s2 + $0x2e4] ss:$24 sps:$4 sm:$0xff]  }
  0x29   :  { %693 = vmatprep.subr.bf16.mxu0 %v3075_v41  ;;  %v3134_v41 = vld [vmem:[%s4585_s2 + $0x2e0] ss:$24 sps:$4 sm:$0xff]  }
  0x2b   :  { %737 = vmatpush2.bf16.msra.mxu1 %v3074_v42  ;;  %v3139_v42 = vld [vmem:[%s4585_s2 + $0x2b4] ss:$24 sps:$4 sm:$0xff]  }
  0x2c   :  { %738 = vmatprep.subr.bf16.mxu1 %v3078_v43  ;;  %694 = vmatpush2.bf16.msra.mxu0 %v3077_v44  ;;  %v3137_v43 = vld [vmem:[%s4585_s2 + $0x2b0] ss:$24 sps:$4 sm:$0xff]   ;;  %v3142_v44 = vld [vmem:[%s4585_s2 + $0x284] ss:$24 sps:$4 sm:$0xff]  }
  0x2d   :  { %695 = vmatprep.subr.bf16.mxu0 %v3081_v46  ;;  %v3145_v46 = vld [vmem:[%s4585_s2 + $0x254] ss:$24 sps:$4 sm:$0xff]  }
  0x2f   :  { %739 = vmatpush2.bf16.msra.mxu1 %v3080_v45  ;;  %v3140_v45 = vld [vmem:[%s4585_s2 + $0x280] ss:$24 sps:$4 sm:$0xff]  }
  0x30   :  { %740 = vmatprep.subr.bf16.mxu1 %v3084_v49  ;;  %696 = vmatpush2.bf16.msra.mxu0 %v3083_v48  ;;  %v3143_v48 = vld [vmem:[%s4585_s2 + $0x250] ss:$24 sps:$4 sm:$0xff]   ;;  %v3148_v49 = vld [vmem:[%s4585_s2 + $0x224] ss:$24 sps:$4 sm:$0xff]  }
  0x31   :  { %697 = vmatprep.subr.bf16.mxu0 %v3087_v51  ;;  %v3146_v51 = vld [vmem:[%s4585_s2 + $0x220] ss:$24 sps:$4 sm:$0xff]  }
  0x33   :  { %741 = vmatpush2.bf16.msra.mxu1 %v3086_v53  ;;  %v3149_v53 = vld [vmem:[%s4585_s2 + $0x1f0] ss:$24 sps:$4 sm:$0xff]  }
  0x34   :  { %742 = vmatprep.subr.bf16.mxu1 %v3090_v54  ;;  %698 = vmatpush2.bf16.msra.mxu0 %v3089_v55  ;;  %v3154_v54 = vld [vmem:[%s4585_s2 + $0x1c4] ss:$24 sps:$4 sm:$0xff]   ;;  %v3152_v55 = vld [vmem:[%s4585_s2 + $0x1c0] ss:$24 sps:$4 sm:$0xff]  }
  0x35   :  { %699 = vmatprep.subr.bf16.mxu0 %v3093_v56  ;;  %v3157_v56 = vld [vmem:[%s4585_s2 + $0x194] ss:$24 sps:$4 sm:$0xff]  }
  0x37   :  { %743 = vmatpush2.bf16.msra.mxu1 %v3092_v57  ;;  %v3155_v57 = vld [vmem:[%s4585_s2 + $0x190] ss:$24 sps:$4 sm:$0xff]  }
  0x38   :  { %744 = vmatprep.subr.bf16.mxu1 %v3096_v58  ;;  %700 = vmatpush2.bf16.msra.mxu0 %v3095_v59  ;;  %v3855_v58 = vld [vmem:[%s4588_s1] sm:$0x3] }
  0x39   :  { %701 = vmatprep.subr.bf16.mxu0 %v3099_v60  ;;  %v3861_v60 = vrot.slane %v3855_v58, %v3737_v9 }
  0x3b   :  { %745 = vmatpush2.bf16.msra.mxu1 %v3098_v61 }
  0x3c   :  { %746 = vmatprep.subr.bf16.mxu1 %v3102_v62  ;;  %702 = vmatpush2.bf16.msra.mxu0 %v3101_v63 }
  0x3d   :  { %703 = vmatprep.subr.bf16.mxu0 %v3105_v0 }
  0x3f   :  { %747 = vmatpush2.bf16.msra.mxu1 %v3104_v1 }
  0x40   :  { %704 = vmatpush2.bf16.msra.mxu0 %v3107_v2  ;;  %2962 = vmatprep.subr.bf16.mxu1 %v3438_v4 }
  0x41   :  { %759 = vmatprep.subr.bf16.mxu0 %v3112_v25  ;;  %v175_v25 = vsub.s32 5, %v3728_v6 }
  0x42   :  { %749 = vmatmul.mubr.bf16.vlgmr.msra.gmra.mxu1 %v3721_v3 }
  0x43   :  { %706 = vmatmul.mubr.bf16.vlgmr.msra.gmra.mxu0 %v3721_v3  ;;  %2964 = vmatprep.mubr.msk.bf16.mxu1 %vm3439_vm0, %v3438_v4 }
  0x44   :  { %791 = vmatprep.mubr.bf16.mxu0 %v2681_v52  ;;  %760 = vmatpush1.bf16.msra.mxu0 %v3110_v24  ;;  %v3151_v52 = vld [vmem:[%s4585_s2 + $0x1f4] ss:$24 sps:$4 sm:$0xff]  }
  0x45   :  { %761 = vmatprep.subr.bf16.mxu0 %v3115_v26 }
  0x48   :  { %762 = vmatpush1.bf16.msra.mxu0 %v3113_v27  ;;  %v176_v27 = vrot.slane %v3734_v8, %v175_v25 }
  0x49   :  { %763 = vmatprep.subr.bf16.mxu0 %v3118_v28 }
  0x4c   :  { %764 = vmatpush1.bf16.msra.mxu0 %v3116_v29 }
  0x4d   :  { %765 = vmatprep.subr.bf16.mxu0 %v3121_v30 }
  0x50   :  { %766 = vmatpush1.bf16.msra.mxu0 %v3119_v31 }
  0x51   :  { %767 = vmatprep.subr.bf16.mxu0 %v3124_v32 }
  0x54   :  { %768 = vmatpush1.bf16.msra.mxu0 %v3122_v33 }
  0x55   :  { %769 = vmatprep.subr.bf16.mxu0 %v3127_v34 }
  0x58   :  { %770 = vmatpush1.bf16.msra.mxu0 %v3125_v35 }
  0x59   :  { %771 = vmatprep.subr.bf16.mxu0 %v3130_v36 }
  0x5c   :  { %772 = vmatpush1.bf16.msra.mxu0 %v3128_v37  ;;  %v167_v37 = vsub.s32 3, %v3728_v6 }
  0x5d   :  { %773 = vmatprep.subr.bf16.mxu0 %v3133_v38 }
  0x5e   :  { %v3882_v38 = vrot.slane %v3734_v8, %v167_v37 }
  0x60   :  { %774 = vmatpush1.bf16.msra.mxu0 %v3131_v39  ;;  %v3885_v39 = vsub.s32 1, %v3728_v6 }
  0x61   :  { %775 = vmatprep.subr.bf16.mxu0 %v3136_v40 }
  0x64   :  { %776 = vmatpush2.bf16.msra.mxu0 %v3134_v41 }
  0x65   :  { %777 = vmatprep.subr.bf16.mxu0 %v3139_v42 }
  0x68   :  { %778 = vmatpush2.bf16.msra.mxu0 %v3137_v43  ;;  %v3891_v43 = vrot.slane %v3734_v8, %v3885_v39 }
  0x69   :  { %779 = vmatprep.subr.bf16.mxu0 %v3142_v44 }
  0x6c   :  { %780 = vmatpush2.bf16.msra.mxu0 %v3140_v45 }
  0x6d   :  { %781 = vmatprep.subr.bf16.mxu0 %v3145_v46 }
  0x70   :  { %782 = vmatpush2.bf16.msra.mxu0 %v3143_v48 }
  0x71   :  { %783 = vmatprep.subr.bf16.mxu0 %v3148_v49 }
  0x74   :  { %784 = vmatpush2.bf16.msra.mxu0 %v3146_v51 }
  0x75   :  { %785 = vmatprep.subr.bf16.mxu0 %v3151_v52 }
  0x78   :  { %786 = vmatpush2.bf16.msra.mxu0 %v3149_v53 }
  0x79   :  { %787 = vmatprep.subr.bf16.mxu0 %v3154_v54 }
  0x7c   :  { %788 = vmatpush2.bf16.msra.mxu0 %v3152_v55 }
  0x7d   :  { %789 = vmatprep.subr.bf16.mxu0 %v3157_v56 }
  0x80   :  { %790 = vmatpush2.bf16.msra.mxu0 %v3155_v57 }
  0x83   :  { %792 = vmatmul.mubr.bf16.vlgmr.msra.gmra.mxu0 %v3721_v3 }
 0x102   :  { %v750_v11 = vpop.f32.mrf.mxu1 }
 0x103   :  { %v751_v13 = vadd.f32 %v750_v11, %v164_v10  ;;  %v707_v14 = vpop.f32.mrf.mxu0 }
 0x104   :  { %v3744_v15 = vpop.f32.mrf.mxu1  ;;  %v708_v17 = vadd.f32 %v707_v14, %v156_v12 }
 0x105   :  { %v803_v16 = vpack.c.bf16 %v751_v13, %v751_v13  ;;  %v3746_v18 = vpop.f32.mrf.mxu0  ;;  %v753_v41 = vadd.f32 %v3744_v15, %v3882_v38 }
 0x106   :  { %v754_v19 = vpop.f32.mrf.mxu1  ;;  %v802_v23 = vpack.c.bf16 %v708_v17, %v708_v17  ;;  %v710_v48 = vadd.f32 %v3746_v18, %v3891_v43 }
 0x107   :  { %v3748_v20 = vadd.f32 %v754_v19, %v164_v10  ;;  %2963 = vmatpush3.bf16.xpose.msra.mxu1 %v803_v16  ;;  %v711_v21 = vpop.f32.mrf.mxu0  ;;  %v172_v10 = vrot.slane %v3734_v8, %v171_v5  ;;  %v912_v45 = vpack.c.bf16 %v753_v41, %v753_v41 }
 0x108   :  { %2968 = vmatprep.subr.bf16.mxu1 %v3438_v4  ;;  %v3751_v22 = vadd.f32 %v711_v21, %v156_v12  ;;  %v3857_v59 = vpop.f32.mrf.mxu1  ;;  %v911_v49 = vpack.c.bf16 %v710_v48, %v710_v48 }
 0x109   :  { %v3867_v11 = vpop.f32.mrf.mxu0 }
 0x10e   :  { %2965 = vmatmul.mubr.bf16.vlgmr.msra.gmra.mxu1 %v802_v23 }
 0x10f   :  { %2970 = vmatprep.mubr.msk.bf16.mxu1 %vm3439_vm0, %v3438_v4 }
 0x143   :  { %v793_v12 = vpop.f32.mrf.mxu0 }
 0x144   :  { %v794_v13 = vadd.f32 %v793_v12, %v172_v10 }
 0x145   :  { %v795_v26 = vpop.f32.mrf.mxu0 }
 0x146   :  { %v804_v14 = vpack.c.bf16 %v794_v13, %v794_v13  ;;  %v796_v46 = vadd.f32 %v795_v26, %v176_v27 }
 0x147   :  { %v797_v28 = vpop.f32.mrf.mxu0 }
 0x148   :  { %v869_v16 = vsel %vm867_vm2, %v804_v14, 0  ;;  %v798_v29 = vadd.f32 %v797_v28, %v172_v10  ;;  %v913_v15 = vpack.c.bf16 %v796_v46, %v796_v46 }
 0x149   :  { %2969 = vmatpush3.bf16.msra.mxu1 %v869_v16  ;;  %v799_v30 = vpop.f32.mrf.mxu0  ;;  %v1014_v16 = vpack.c.bf16 %v3751_v22, %v3751_v22 }
 0x14a   :  { %2974 = vmatprep.subr.bf16.mxu1 %v3438_v4  ;;  %v1016_v31 = vpack.c.bf16 %v798_v29, %v798_v29  ;;  %v800_v32 = vadd.f32 %v799_v30, %v176_v27  ;;  %v972_v51 = vsel %vm867_vm2, %v913_v15, 0 }
 0x14c   :  { %v1079_v33 = vsel %vm867_vm2, %v1016_v31, 0  ;;  %v1123_v34 = vpack.c.bf16 %v800_v32, %v800_v32 }
 0x14e   :  { %v3876_v35 = vsel %vm867_vm2, %v1123_v34, 0 }
 0x1ce   :  { %v839_v61 = vpop.f32.mrf.mxu1 }
 0x1cf   :  { %v845_v62 = vmul.f32 0.088388346, %v839_v61 }
 0x1d0   :  { %v2966_v63 = vpop.f32.mrf.mxu1 }
 0x1d1   :  { %v850_v0 = vadd.f32 %v3861_v60, %v845_v62 }
 0x1d2   :  { %v842_v1 = vpop.f32.mrf.mxu1 }
 0x1d3   :  { %v852_v2 = vsel %vm851_vm1, %v850_v0, -inf }
 0x1d4   :  { %853 = vmax.xlane.f32.xlu0 %v852_v2  ;;  %v2967_v3 = vpop.f32.mrf.mxu1 }
 0x25d   :  { %v854_v17 = vpop.xlane.xlu0 %853 }
 0x25e   :  { %v855_v19 = vsub.f32 %v850_v0, %v854_v17 }
 0x260   :  { %v856_v21 = vmul.f32 1.442695, %v855_v19 }
 0x262   :  { %3398 = vpow2.f32 %v856_v21 }
 0x26f   :  { %v3399_v23 = vpop.eup %3398 }
 0x270   :  { %v858_v24 = vsel %vm851_vm1, %v3399_v23, 0.0 }
 0x271   :  { %859 = vadd.xlane.f32.xlu0 %v858_v24 }
 0x2fa   :  { %v860_v36 = vpop.xlane.xlu0 %859 }
 0x2fb   :  { %3400 = vrcp.f32 %v860_v36 }
 0x308   :  { %v3401_v40 = vpop.eup %3400 }
 0x309   :  { %v862_v42 = vmul.f32 %v3401_v40, %v3399_v23  ;;  %v1061_v23 = vrot.slane %v3855_v58, %v3885_v39  ;;  %v757_v40 = vadd.f32 %v3857_v59, %v3882_v38 }
 0x30b   :  { %v863_v44 = vpack.c.bf16 %v862_v42, %v862_v42 }
 0x30d   :  { %2971 = vmatmul.mubr.msk.bf16.vlgmr.msra.gmra.mxu1 %vm851_vm1, %v863_v44  ;;  %v1122_v44 = vpack.c.bf16 %v757_v40, %v757_v40 }
 0x30e   :  { %2975 = vmatpush3.bf16.xpose.msra.mxu1 %v912_v45  ;;  %2976 = vmatprep.mubr.msk.bf16.mxu1 %vm3439_vm0, %v3438_v4  ;;  %v714_v45 = vadd.f32 %v3867_v11, %v3891_v43 }
 0x30f   :  { %2980 = vmatprep.subr.bf16.mxu1 %v3438_v4 }
 0x310   :  { %v1121_v46 = vpack.c.bf16 %v714_v45, %v714_v45 }
 0x315   :  { %2977 = vmatmul.mubr.bf16.vlgmr.msra.gmra.mxu1 %v911_v49 }
 0x316   :  { %2981 = vmatpush3.bf16.msra.mxu1 %v972_v51  ;;  %2982 = vmatprep.mubr.msk.bf16.mxu1 %vm3439_vm0, %v3438_v4 }
 0x317   :  { %2986 = vmatprep.subr.bf16.mxu1 %v3438_v4 }
 0x3cd   :  { %v3903_v8 = vpop.f32.mrf.mxu1 }
 0x3cf   :  { %v2972_v52 = vpop.f32.mrf.mxu1 }
 0x3d1   :  { %v908_v53 = vpop.f32.mrf.mxu1 }
 0x3d3   :  { %v2973_v54 = vpop.f32.mrf.mxu1 }
 0x3d5   :  { %v948_v55 = vpop.f32.mrf.mxu1 }
 0x3d6   :  { %v954_v18 = vmul.f32 0.088388346, %v948_v55 }
 0x3d7   :  { %v2978_v56 = vpop.f32.mrf.mxu1 }
 0x3d8   :  { %v955_v57 = vadd.f32 %v954_v18, %v3861_v60  ;;  %v1015_v60 = vpack.c.bf16 %v3748_v20, %v3748_v20 }
 0x3d9   :  { %v951_v61 = vpop.f32.mrf.mxu1 }
 0x3da   :  { %v956_v62 = vsel %vm851_vm1, %v955_v57, -inf  ;;  %v3160_v61 = vld [vmem:[%s4589_s4 + $0x74] ss:$8 sps:$4 sm:$0xff]  }
 0x3db   :  { %957 = vmax.xlane.f32.xlu1 %v956_v62  ;;  %v2979_v63 = vpop.f32.mrf.mxu1  ;;  %v3163_v62 = vld [vmem:[%s4589_s4 + $0x64] ss:$8 sps:$4 sm:$0xff]   ;;  %1430 = vmatprep.subr.bf16.mxu0 %v3160_v61 }
 0x3dc   :  { %v3161_v63 = vld [vmem:[%s4589_s4 + $0x60] ss:$8 sps:$4 sm:$0xff]  }
 0x464   :  { %v958_v0 = vpop.xlane.xlu1 %957 }
 0x465   :  { %v959_v1 = vsub.f32 %v955_v57, %v958_v0  ;;  %v3158_v57 = vld [vmem:[%s4589_s4 + $0x70] ss:$8 sps:$4 sm:$0xff]   ;;  %v3166_v0 = vld [vmem:[%s4589_s4 + $0x54] ss:$8 sps:$4 sm:$0xff]  }
 0x466   :  { %1431 = vmatpush1.bf16.msra.mxu0 %v3158_v57 }
 0x467   :  { %v960_v2 = vmul.f32 1.442695, %v959_v1  ;;  %1432 = vmatprep.subr.bf16.mxu0 %v3163_v62  ;;  %v3164_v1 = vld [vmem:[%s4589_s4 + $0x50] ss:$8 sps:$4 sm:$0xff]  }
 0x469   :  { %3402 = vpow2.f32 %v960_v2  ;;  %v3169_v2 = vld [vmem:[%s4589_s4 + $0x44] ss:$8 sps:$4 sm:$0xff]  }
 0x46a   :  { %1433 = vmatpush1.bf16.msra.mxu0 %v3161_v63 }
 0x46b   :  { %1434 = vmatprep.subr.bf16.mxu0 %v3166_v0 }
 0x46e   :  { %1435 = vmatpush1.bf16.msra.mxu0 %v3164_v1  ;;  %v3206_v1 = vld [vmem:[%s4591_s8 + $0xe0] ss:$16 sps:$4 sm:$0xff]  }
 0x46f   :  { %1436 = vmatprep.subr.bf16.mxu0 %v3169_v2  ;;  %v3209_v2 = vld [vmem:[%s4591_s8 + $0xe8] ss:$16 sps:$4 sm:$0xff]  }
 0x476   :  { %v3403_v3 = vpop.eup %3402 }
 0x477   :  { %v962_v5 = vsel %vm851_vm1, %v3403_v3, 0.0 }
 0x478   :  { %963 = vadd.xlane.f32.xlu1 %v962_v5  ;;  %v3172_v5 = vld [vmem:[%s4589_s4 + $0x34] ss:$8 sps:$4 sm:$0xff]  }
 0x501   :  { %v964_v10 = vpop.xlane.xlu1 %963 }
 0x502   :  { %3404 = vrcp.f32 %v964_v10  ;;  %v3170_v10 = vld [vmem:[%s4589_s4 + $0x30] ss:$8 sps:$4 sm:$0xff]  }
 0x50f   :  { %v3405_v12 = vpop.eup %3404 }
 0x510   :  { %v966_v13 = vmul.f32 %v3405_v12, %v3403_v3  ;;  %v3167_v3 = vld [vmem:[%s4589_s4 + $0x40] ss:$8 sps:$4 sm:$0xff]   ;;  %v3175_v12 = vld [vmem:[%s4589_s4 + $0x24] ss:$8 sps:$4 sm:$0xff]  }
 0x511   :  { %1437 = vmatpush1.bf16.msra.mxu0 %v3167_v3  ;;  %v3211_v3 = vld [vmem:[%s4591_s8 + $0xec] ss:$16 sps:$4 sm:$0xff]  }
 0x512   :  { %v967_v14 = vpack.c.bf16 %v966_v13, %v966_v13  ;;  %1438 = vmatprep.subr.bf16.mxu0 %v3172_v5  ;;  %v3173_v13 = vld [vmem:[%s4589_s4 + $0x20] ss:$8 sps:$4 sm:$0xff]  }
 0x513   :  { %v3212_v5 = vld [vmem:[%s4591_s8 + $0xc0] ss:$16 sps:$4 sm:$0xff]  }
 0x514   :  { %2983 = vmatmul.mubr.msk.bf16.vlgmr.msra.gmra.mxu1 %vm851_vm1, %v967_v14  ;;  %v3178_v14 = vld [vmem:[%s4589_s4 + $0x14] ss:$8 sps:$4 sm:$0xff]  }
 0x515   :  { %2987 = vmatpush3.bf16.xpose.msra.mxu1 %v1015_v60  ;;  %2988 = vmatprep.mubr.msk.bf16.mxu1 %vm3439_vm0, %v3438_v4  ;;  %v3176_v60 = vld [vmem:[%s4589_s4 + $0x10] ss:$8 sps:$4 sm:$0xff]  }
 0x516   :  { %2992 = vmatprep.subr.bf16.mxu1 %v3438_v4  ;;  %1439 = vmatpush1.bf16.msra.mxu0 %v3170_v10  ;;  %v3214_v10 = vld [vmem:[%s4591_s8 + $0xc4] ss:$16 sps:$4 sm:$0xff]  }
 0x517   :  { %1440 = vmatprep.subr.bf16.mxu0 %v3175_v12  ;;  %v3215_v12 = vld [vmem:[%s4591_s8 + $0xc8] ss:$16 sps:$4 sm:$0xff]  }
 0x51a   :  { %1441 = vmatpush1.bf16.msra.mxu0 %v3173_v13  ;;  %v3217_v13 = vld [vmem:[%s4591_s8 + $0xcc] ss:$16 sps:$4 sm:$0xff]  }
 0x51b   :  { %1442 = vmatprep.subr.bf16.mxu0 %v3178_v14  ;;  %v3220_v14 = vld [vmem:[%s4591_s8 + $0xa4] ss:$16 sps:$4 sm:$0xff]  }
 0x51c   :  { %2989 = vmatmul.mubr.bf16.vlgmr.msra.gmra.mxu1 %v1014_v16  ;;  %v3181_v16 = vld [vmem:[%s4589_s4 + $0x4] ss:$8 sps:$4 sm:$0xff]  }
 0x51d   :  { %2993 = vmatpush3.bf16.msra.mxu1 %v1079_v33  ;;  %2994 = vmatprep.mubr.msk.bf16.mxu1 %vm3439_vm0, %v3438_v4 }
 0x51e   :  { %2998 = vmatprep.subr.bf16.mxu1 %v3438_v4  ;;  %1443 = vmatpush1.bf16.msra.mxu0 %v3176_v60  ;;  %v3218_v60 = vld [vmem:[%s4591_s8 + $0xa0] ss:$16 sps:$4 sm:$0xff]  }
 0x51f   :  { %1444 = vmatprep.subr.bf16.mxu0 %v3181_v16  ;;  %v3223_v16 = vld [vmem:[%s4591_s8 + $0xac] ss:$16 sps:$4 sm:$0xff]  }
 0x5d4   :  { %v3919_v17 = vpop.f32.mrf.mxu1 }
 0x5d6   :  { %v2984_v20 = vpop.f32.mrf.mxu1 }
 0x5d7   :  { %v3179_v20 = vld [vmem:[%s4589_s4] ss:$8 sps:$4 sm:$0xff]  }
 0x5d8   :  { %v1011_v19 = vpop.f32.mrf.mxu1  ;;  %1445 = vmatpush1.bf16.msra.mxu0 %v3179_v20  ;;  %v3221_v20 = vld [vmem:[%s4591_s8 + $0xa8] ss:$16 sps:$4 sm:$0xff]  }
 0x5d9   :  { %v3184_v19 = vld [vmem:[%s4589_s4 + $0xf4] ss:$8 sps:$4 sm:$0xff]  }
 0x5da   :  { %v2985_v21 = vpop.f32.mrf.mxu1  ;;  %1446 = vmatprep.subr.bf16.mxu0 %v3184_v19  ;;  %v3226_v19 = vld [vmem:[%s4591_s8 + $0x84] ss:$16 sps:$4 sm:$0xff]  }
 0x5db   :  { %v3182_v21 = vld [vmem:[%s4589_s4 + $0xf0] ss:$8 sps:$4 sm:$0xff]  }
 0x5dc   :  { %v1051_v24 = vpop.f32.mrf.mxu1  ;;  %1447 = vmatpush2.bf16.msra.mxu0 %v3182_v21  ;;  %v3229_v21 = vld [vmem:[%s4591_s8 + $0x8c] ss:$16 sps:$4 sm:$0xff]  }
 0x5dd   :  { %v1057_v25 = vmul.f32 0.088388346, %v1051_v24  ;;  %v3185_v24 = vld [vmem:[%s4589_s4 + $0xe0] ss:$8 sps:$4 sm:$0xff]  }
 0x5de   :  { %v2990_v26 = vpop.f32.mrf.mxu1 }
 0x5df   :  { %v1062_v27 = vadd.f32 %v1061_v23, %v1057_v25  ;;  %v3190_v25 = vld [vmem:[%s4589_s4 + $0xd4] ss:$8 sps:$4 sm:$0xff]   ;;  %v3188_v26 = vld [vmem:[%s4589_s4 + $0xd0] ss:$8 sps:$4 sm:$0xff]  }
 0x5e0   :  { %v1054_v22 = vpop.f32.mrf.mxu1 }
 0x5e1   :  { %v1063_v28 = vsel %vm851_vm1, %v1062_v27, -inf  ;;  %v3191_v22 = vld [vmem:[%s4589_s4 + $0xc0] ss:$8 sps:$4 sm:$0xff]  }
 0x5e2   :  { %1064 = vmax.xlane.f32.xlu0 %v1063_v28  ;;  %v2991_v29 = vpop.f32.mrf.mxu1  ;;  %v3196_v28 = vld [vmem:[%s4589_s4 + $0xb4] ss:$8 sps:$4 sm:$0xff]  }
 0x5e3   :  { %v3194_v29 = vld [vmem:[%s4589_s4 + $0xb0] ss:$8 sps:$4 sm:$0xff]  }
 0x66b   :  { %v1065_v30 = vpop.xlane.xlu0 %1064 }
 0x66c   :  { %v1066_v31 = vsub.f32 %v1062_v27, %v1065_v30  ;;  %v3193_v27 = vld [vmem:[%s4589_s4 + $0xc4] ss:$8 sps:$4 sm:$0xff]  }
 0x66d   :  { %v3199_v30 = vld [vmem:[%s4589_s4 + $0xa4] ss:$8 sps:$4 sm:$0xff]  }
 0x66e   :  { %v1067_v32 = vmul.f32 1.442695, %v1066_v31  ;;  %v3197_v31 = vld [vmem:[%s4589_s4 + $0xa0] ss:$8 sps:$4 sm:$0xff]  }
 0x670   :  { %3406 = vpow2.f32 %v1067_v32  ;;  %v3202_v32 = vld [vmem:[%s4589_s4 + $0x94] ss:$8 sps:$4 sm:$0xff]  }
 0x67d   :  { %v3407_v33 = vpop.eup %3406 }
 0x67e   :  { %v1069_v34 = vsel %vm851_vm1, %v3407_v33, 0.0 }
 0x67f   :  { %1070 = vadd.xlane.f32.xlu1 %v1069_v34 }
 0x708   :  { %v1071_v36 = vpop.xlane.xlu1 %1070 }
 0x709   :  { %3408 = vrcp.f32 %v1071_v36 }
 0x716   :  { %v3409_v58 = vpop.eup %3408 }
 0x717   :  { %v1073_v41 = vmul.f32 %v3409_v58, %v3407_v33  ;;  %v3200_v33 = vld [vmem:[%s4589_s4 + $0x90] ss:$8 sps:$4 sm:$0xff]  }
 0x719   :  { %v1074_v42 = vpack.c.bf16 %v1073_v41, %v1073_v41  ;;  %v3205_v41 = vld [vmem:[%s4589_s4 + $0x84] ss:$8 sps:$4 sm:$0xff]  }
 0x71b   :  { %2995 = vmatmul.mubr.msk.bf16.vlgmr.msra.gmra.mxu1 %vm851_vm1, %v1074_v42  ;;  %v3203_v42 = vld [vmem:[%s4589_s4 + $0x80] ss:$8 sps:$4 sm:$0xff]  }
 0x71c   :  { %2999 = vmatpush3.bf16.xpose.msra.mxu1 %v1122_v44  ;;  %3000 = vmatprep.mubr.msk.bf16.mxu1 %vm3439_vm0, %v3438_v4 }
 0x71d   :  { %3004 = vmatprep.subr.bf16.mxu1 %v3438_v4 }
 0x723   :  { %3001 = vmatmul.mubr.bf16.vlgmr.msra.gmra.mxu1 %v1121_v46 }
 0x724   :  { %3005 = vmatpush3.bf16.msra.mxu1 %v3876_v35  ;;  %3006 = vmatprep.mubr.msk.bf16.mxu1 %vm3439_vm0, %v3438_v4 }
 0x7db   :  { %v3936_v59 = vpop.f32.mrf.mxu1 }
 0x7dc   :  { %v1224_v46 = vpack.c.bf16 %v3936_v59, %v3903_v8 }
 0x7dd   :  { %v2996_v38 = vpop.f32.mrf.mxu1 }
 0x7df   :  { %v1118_v48 = vpop.f32.mrf.mxu1 }
 0x7e1   :  { %v2997_v15 = vpop.f32.mrf.mxu1 }
 0x7e3   :  { %v1158_v49 = vpop.f32.mrf.mxu1 }
 0x7e4   :  { %v1164_v51 = vmul.f32 0.088388346, %v1158_v49  ;;  %v1258_v49 = vld [vmem:[%s4590_s5] sm:$0x3] }
 0x7e5   :  { %v3002_v52 = vpop.f32.mrf.mxu1 }
 0x7e6   :  { %v1165_v53 = vadd.f32 %v1164_v51, %v1061_v23  ;;  %v3187_v23 = vld [vmem:[%s4589_s4 + $0xe4] ss:$8 sps:$4 sm:$0xff]   ;;  %v1263_v51 = vrot.slane %v1258_v49, %v3737_v9  ;;  %v1267_v52 = vrot.slane %v1258_v49, %v3885_v39 }
 0x7e7   :  { %v1161_v54 = vpop.f32.mrf.mxu1  ;;  %1448 = vmatprep.subr.bf16.mxu0 %v3187_v23  ;;  %v3224_v23 = vld [vmem:[%s4591_s8 + $0x80] ss:$16 sps:$4 sm:$0xff]  }
 0x7e8   :  { %v1166_v11 = vsel %vm851_vm1, %v1165_v53, -inf  ;;  %1449 = vmatpush2.bf16.msra.mxu0 %v3185_v24  ;;  %v50_v54 = vunpack.c.l.bf16 %v3659_v47  ;;  %v3227_v24 = vld [vmem:[%s4591_s8 + $0x88] ss:$16 sps:$4 sm:$0xff]  }
 0x7e9   :  { %1167 = vmax.xlane.f32.xlu0 %v1166_v11  ;;  %v3003_v43 = vpop.f32.mrf.mxu1  ;;  %1450 = vmatprep.subr.bf16.mxu0 %v3190_v25  ;;  %v51_v11 = vunpack.c.h.bf16 %v3659_v47  ;;  %v3232_v25 = vld [vmem:[%s4591_s8 + $0x64] ss:$16 sps:$4 sm:$0xff]  }
 0x7ea   :  { %v52_v43 = vunpack.c.l.bf16 %v3670_v50 }
 0x7ec   :  { %1451 = vmatpush2.bf16.msra.mxu0 %v3188_v26  ;;  %v3235_v26 = vld [vmem:[%s4591_s8 + $0x6c] ss:$16 sps:$4 sm:$0xff]  }
 0x7ed   :  { %1452 = vmatprep.subr.bf16.mxu0 %v3193_v27  ;;  %v3230_v27 = vld [vmem:[%s4591_s8 + $0x60] ss:$16 sps:$4 sm:$0xff]  }
 0x7f0   :  { %1453 = vmatpush2.bf16.msra.mxu0 %v3191_v22  ;;  %v3233_v22 = vld [vmem:[%s4591_s8 + $0x68] ss:$16 sps:$4 sm:$0xff]  }
 0x7f1   :  { %1454 = vmatprep.subr.bf16.mxu0 %v3196_v28  ;;  %v3238_v28 = vld [vmem:[%s4591_s8 + $0x44] ss:$16 sps:$4 sm:$0xff]  }
 0x7f4   :  { %1455 = vmatpush2.bf16.msra.mxu0 %v3194_v29  ;;  %v3241_v29 = vld [vmem:[%s4591_s8 + $0x4c] ss:$16 sps:$4 sm:$0xff]  }
 0x7f5   :  { %1456 = vmatprep.subr.bf16.mxu0 %v3199_v30  ;;  %v3236_v30 = vld [vmem:[%s4591_s8 + $0x40] ss:$16 sps:$4 sm:$0xff]  }
 0x7f8   :  { %1457 = vmatpush2.bf16.msra.mxu0 %v3197_v31  ;;  %v3239_v31 = vld [vmem:[%s4591_s8 + $0x48] ss:$16 sps:$4 sm:$0xff]  }
 0x7f9   :  { %1458 = vmatprep.subr.bf16.mxu0 %v3202_v32  ;;  %v3244_v32 = vld [vmem:[%s4591_s8 + $0x24] ss:$16 sps:$4 sm:$0xff]  }
 0x7fc   :  { %1459 = vmatpush2.bf16.msra.mxu0 %v3200_v33  ;;  %v3242_v33 = vld [vmem:[%s4591_s8 + $0x20] ss:$16 sps:$4 sm:$0xff]  }
 0x7fd   :  { %1460 = vmatprep.subr.bf16.mxu0 %v3205_v41  ;;  %v3248_v41 = vld [vmem:[%s4591_s8] ss:$16 sps:$4 sm:$0xff]  }
 0x800   :  { %1461 = vmatpush2.bf16.msra.mxu0 %v3203_v42  ;;  %v3251_v42 = vld [vmem:[%s4591_s8 + $0x8] ss:$16 sps:$4 sm:$0xff]  }
 0x801   :  { %1993 = vmatprep.subr.bf16.mxu0 %v3211_v3  ;;  %v3280_v3 = vld [vmem:[%s4591_s8 + $0x164] ss:$16 sps:$4 sm:$0xff]  }
 0x872   :  { %v1168_v55 = vpop.xlane.xlu0 %1167 }
 0x873   :  { %v1169_v18 = vsub.f32 %v1165_v53, %v1168_v55 }
 0x875   :  { %v1170_v35 = vmul.f32 1.442695, %v1169_v18 }
 0x877   :  { %3410 = vpow2.f32 %v1170_v35 }
 0x884   :  { %v3939_v56 = vpop.eup %3410 }
 0x885   :  { %v1172_v4 = vsel %vm851_vm1, %v3939_v56, 0.0 }
 0x886   :  { %1173 = vadd.xlane.f32.xlu1 %v1172_v4  ;;  %v53_v4 = vunpack.c.h.bf16 %v3670_v50  ;;  %v3208_v50 = vld [vmem:[%s4591_s8 + $0xe4] ss:$16 sps:$4 sm:$0xff]  }
 0x887   :  { %1950 = vmatprep.subr.bf16.mxu1 %v3208_v50  ;;  %v3275_v50 = vld [vmem:[%s4591_s8 + $0x188] ss:$16 sps:$4 sm:$0xff]  }
 0x90f   :  { %v1174_v34 = vpop.xlane.xlu1 %1173 }
 0x910   :  { %3412 = vrcp.f32 %v1174_v34  ;;  %v3247_v34 = vld [vmem:[%s4591_s8 + $0x2c] ss:$16 sps:$4 sm:$0xff]  }
 0x91d   :  { %v3413_v36 = vpop.eup %3412 }
 0x91e   :  { %v1176_v58 = vmul.f32 %v3413_v36, %v3939_v56  ;;  %v3245_v36 = vld [vmem:[%s4591_s8 + $0x28] ss:$16 sps:$4 sm:$0xff]  }
 0x920   :  { %v1177_v40 = vpack.c.bf16 %v1176_v58, %v1176_v58  ;;  %v3250_v58 = vld [vmem:[%s4591_s8 + $0x4] ss:$16 sps:$4 sm:$0xff]  }
 0x922   :  { %3007 = vmatmul.mubr.msk.bf16.vlgmr.msra.gmra.mxu1 %vm851_vm1, %v1177_v40  ;;  %v3253_v40 = vld [vmem:[%s4591_s8 + $0xc] ss:$16 sps:$4 sm:$0xff]  }
 0x923   :  { %1951 = vmatpush1.bf16.msra.mxu1 %v3206_v1  ;;  %v3272_v1 = vld [vmem:[%s4591_s8 + $0x180] ss:$16 sps:$4 sm:$0xff]  }
 0x924   :  { %1952 = vmatprep.subr.bf16.mxu1 %v3214_v10  ;;  %v3278_v10 = vld [vmem:[%s4591_s8 + $0x160] ss:$16 sps:$4 sm:$0xff]  }
 0x927   :  { %1953 = vmatpush1.bf16.msra.mxu1 %v3212_v5  ;;  %v3283_v5 = vld [vmem:[%s4591_s8 + $0x16c] ss:$16 sps:$4 sm:$0xff]  }
 0x928   :  { %1954 = vmatprep.subr.bf16.mxu1 %v3220_v14  ;;  %v3289_v14 = vld [vmem:[%s4591_s8 + $0x14c] ss:$16 sps:$4 sm:$0xff]  }
 0x92b   :  { %1955 = vmatpush1.bf16.msra.mxu1 %v3218_v60  ;;  %v3284_v60 = vld [vmem:[%s4591_s8 + $0x140] ss:$16 sps:$4 sm:$0xff]  }
 0x92c   :  { %1956 = vmatprep.subr.bf16.mxu1 %v3226_v19  ;;  %v3295_v19 = vld [vmem:[%s4591_s8 + $0x12c] ss:$16 sps:$4 sm:$0xff]  }
 0x92f   :  { %1957 = vmatpush1.bf16.msra.mxu1 %v3224_v23  ;;  %v3293_v23 = vld [vmem:[%s4591_s8 + $0x128] ss:$16 sps:$4 sm:$0xff]  }
 0x930   :  { %1958 = vmatprep.subr.bf16.mxu1 %v3232_v25  ;;  %v3301_v25 = vld [vmem:[%s4591_s8 + $0x10c] ss:$16 sps:$4 sm:$0xff]  }
 0x933   :  { %1959 = vmatpush1.bf16.msra.mxu1 %v3230_v27  ;;  %v3299_v27 = vld [vmem:[%s4591_s8 + $0x108] ss:$16 sps:$4 sm:$0xff]  }
 0x934   :  { %1960 = vmatprep.subr.bf16.mxu1 %v3238_v28  ;;  %v3307_v28 = vld [vmem:[%s4592_s10 + $0x174] ss:$8 sps:$4 sm:$0xff]  }
 0x937   :  { %1961 = vmatpush1.bf16.msra.mxu1 %v3236_v30 }
 0x938   :  { %1962 = vmatprep.subr.bf16.mxu1 %v3244_v32 }
 0x93b   :  { %1963 = vmatpush1.bf16.msra.mxu1 %v3242_v33 }
 0x93c   :  { %1964 = vmatprep.subr.bf16.mxu1 %v3250_v58 }
 0x93f   :  { %1965 = vmatpush1.bf16.msra.mxu1 %v3248_v41 }
 0x9e2   :  { %v1218_v44 = vpop.f32.mrf.mxu1 }
 0x9e3   :  { %v1225_v45 = vpack.c.bf16 %v1218_v44, %v3919_v17  ;;  %v3256_v44 = vld [vmem:[%s4591_s8 + $0x1e4] ss:$16 sps:$4 sm:$0xff]  }
 0x9e4   :  { %v3008_v38 = vpop.f32.mrf.mxu1  ;;  %1966 = vmatprep.subr.bf16.mxu1 %v3256_v44 }
 0x9e5   :  { %1462 = vmatprep.mubr.bf16.mxu0 %v1225_v45  ;;  %v3259_v45 = vld [vmem:[%s4591_s8 + $0x1ec] ss:$16 sps:$4 sm:$0xff]   ;;  %v3257_v38 = vld [vmem:[%s4591_s8 + $0x1e8] ss:$16 sps:$4 sm:$0xff]  }
 0x9e6   :  { %v1221_v48 = vpop.f32.mrf.mxu1  ;;  %1463 = vmatmul.mubr.bf16.vlgmr.msra.gmra.mxu0 %v1224_v46  ;;  %v3254_v46 = vld [vmem:[%s4591_s8 + $0x1e0] ss:$16 sps:$4 sm:$0xff]  }
 0x9e7   :  { %1994 = vmatpush1.bf16.msra.mxu0 %v3209_v2  ;;  %1967 = vmatpush2.bf16.msra.mxu1 %v3254_v46  ;;  %v3277_v2 = vld [vmem:[%s4591_s8 + $0x18c] ss:$16 sps:$4 sm:$0xff]  }
 0x9e8   :  { %v3009_v15 = vpop.f32.mrf.mxu1  ;;  %1995 = vmatprep.subr.bf16.mxu0 %v3217_v13  ;;  %v3286_v13 = vld [vmem:[%s4591_s8 + $0x144] ss:$16 sps:$4 sm:$0xff]  }
 0x9eb   :  { %1996 = vmatpush1.bf16.msra.mxu0 %v3215_v12  ;;  %v3281_v12 = vld [vmem:[%s4591_s8 + $0x168] ss:$16 sps:$4 sm:$0xff]  }
 0x9ec   :  { %1997 = vmatprep.subr.bf16.mxu0 %v3223_v16  ;;  %v3287_v16 = vld [vmem:[%s4591_s8 + $0x148] ss:$16 sps:$4 sm:$0xff]  }
 0x9ef   :  { %1998 = vmatpush1.bf16.msra.mxu0 %v3221_v20  ;;  %v3292_v20 = vld [vmem:[%s4591_s8 + $0x124] ss:$16 sps:$4 sm:$0xff]  }
 0x9f0   :  { %1999 = vmatprep.subr.bf16.mxu0 %v3229_v21  ;;  %v3290_v21 = vld [vmem:[%s4591_s8 + $0x120] ss:$16 sps:$4 sm:$0xff]  }
 0x9f3   :  { %2000 = vmatpush1.bf16.msra.mxu0 %v3227_v24  ;;  %v3298_v24 = vld [vmem:[%s4591_s8 + $0x104] ss:$16 sps:$4 sm:$0xff]  }
 0x9f4   :  { %2001 = vmatprep.subr.bf16.mxu0 %v3235_v26  ;;  %v3296_v26 = vld [vmem:[%s4591_s8 + $0x100] ss:$16 sps:$4 sm:$0xff]  }
 0x9f7   :  { %2002 = vmatpush1.bf16.msra.mxu0 %v3233_v22  ;;  %v3304_v22 = vld [vmem:[%s4592_s10 + $0x74] ss:$8 sps:$4 sm:$0xff]  }
 0x9f8   :  { %2003 = vmatprep.subr.bf16.mxu0 %v3241_v29 }
 0x9fb   :  { %2004 = vmatpush1.bf16.msra.mxu0 %v3239_v31 }
 0x9fc   :  { %2005 = vmatprep.subr.bf16.mxu0 %v3247_v34 }
 0x9ff   :  { %2006 = vmatpush1.bf16.msra.mxu0 %v3245_v36  ;;  %v1477_v36 = vld [vmem:[%s4593_s6] sm:$0x3] }
 0xa00   :  { %2007 = vmatprep.subr.bf16.mxu0 %v3253_v40  ;;  %v1478_v40 = vld [vmem:[%s4594_s7] sm:$0x3]  ;;  %v1520_v44 = vrot.slane %v1477_v36, %v3885_v39 }
 0xa03   :  { %2008 = vmatpush1.bf16.msra.mxu0 %v3251_v42  ;;  %v1516_v42 = vrot.slane %v1477_v36, %v3737_v9  ;;  %v3359_v36 = vld [vmem:[%s4592_s10 + $0x1e0] ss:$8 sps:$4 sm:$0xff]  }
 0xa04   :  { %2009 = vmatprep.subr.bf16.mxu0 %v3259_v45 }
 0xa07   :  { %2010 = vmatpush2.bf16.msra.mxu0 %v3257_v38  ;;  %v1531_v38 = vrot.slane %v1478_v40, %v3737_v9 }
 0xaa6   :  { %v1464_v53 = vpop.f32.mrf.mxu0 }
 0xaa7   :  { %v1465_v17 = vadd.f32 %v1464_v53, %v1263_v51 }
 0xaa8   :  { %v1466_v8 = vpop.f32.mrf.mxu0 }
 0xaa9   :  { %v1467_v59 = vadd.f32 %v1466_v8, %v1267_v52  ;;  %v4052_v18 = vadd.f32 %v1465_v17, %v50_v54 }
 0xaaa   :  { %v1468_v55 = vpop.f32.mrf.mxu0 }
 0xaab   :  { %v4054_v35 = vadd.f32 %v1467_v59, %v51_v11  ;;  %v1469_v56 = vadd.f32 %v1468_v55, %v1263_v51 }
 0xaac   :  { %v1470_v57 = vpop.f32.mrf.mxu0 }
 0xaad   :  { %v1471_v61 = vadd.f32 %v1470_v57, %v1267_v52  ;;  %v1479_v62 = vadd.f32 %v4054_v35, %v4052_v18  ;;  %v4059_v63 = vadd.f32 %v1469_v56, %v52_v43  ;;  %v3265_v56 = vld [vmem:[%s4591_s8 + $0x1cc] ss:$16 sps:$4 sm:$0xff]   ;;  %v3263_v57 = vld [vmem:[%s4591_s8 + $0x1c8] ss:$16 sps:$4 sm:$0xff]  }
 0xaae   :  { %2011 = vmatprep.subr.bf16.mxu0 %v3265_v56  ;;  %v3310_v56 = vld [vmem:[%s4592_s10 + $0x64] ss:$8 sps:$4 sm:$0xff]  }
 0xaaf   :  { %v4061_v47 = vadd.f32 %v1471_v61, %v53_v4  ;;  %1480 = vadd.xlane.f32.xlu0 %v1479_v62  ;;  %v3260_v4 = vld [vmem:[%s4591_s8 + $0x1c0] ss:$16 sps:$4 sm:$0xff]   ;;  %2012 = vmatpush2.bf16.msra.mxu0 %v3263_v57  ;;  %v3268_v61 = vld [vmem:[%s4591_s8 + $0x1a4] ss:$16 sps:$4 sm:$0xff]   ;;  %v3271_v62 = vld [vmem:[%s4591_s8 + $0x1ac] ss:$16 sps:$4 sm:$0xff]  }
 0xab0   :  { %2013 = vmatprep.subr.bf16.mxu0 %v3271_v62  ;;  %v3308_v57 = vld [vmem:[%s4592_s10 + $0x60] ss:$8 sps:$4 sm:$0xff]   ;;  %v3316_v62 = vld [vmem:[%s4592_s10 + $0x54] ss:$8 sps:$4 sm:$0xff]  }
 0xab1   :  { %v1482_v0 = vadd.f32 %v4061_v47, %v4059_v63 }
 0xab3   :  { %1483 = vadd.xlane.f32.xlu1 %v1482_v0  ;;  %v3274_v0 = vld [vmem:[%s4591_s8 + $0x184] ss:$16 sps:$4 sm:$0xff]  }
 0xb38   :  { %v1481_v48 = vpop.xlane.xlu0 %1480 }
 0xb39   :  { %v1486_v15 = vmul.f32 0.00390625, %v1481_v48  ;;  %v1535_v48 = vrot.slane %v1478_v40, %v3885_v39  ;;  %v3367_v40 = vld [vmem:[%s4592_s10 + $0x1d4] ss:$8 sps:$4 sm:$0xff]  }
 0xb3b   :  { %v4174_v49 = vsub.f32 %v4052_v18, %v1486_v15  ;;  %v4177_v51 = vsub.f32 %v4054_v35, %v1486_v15  ;;  %v3262_v35 = vld [vmem:[%s4591_s8 + $0x1c4] ss:$16 sps:$4 sm:$0xff]  }
 0xb3c   :  { %v1484_v52 = vpop.xlane.xlu1 %1483  ;;  %1968 = vmatprep.subr.bf16.mxu1 %v3262_v35  ;;  %v3305_v35 = vld [vmem:[%s4592_s10 + $0x170] ss:$8 sps:$4 sm:$0xff]  }
 0xb3d   :  { %v1487_v53 = vmul.f32 0.00390625, %v1484_v52  ;;  %v1492_v54 = vmul.f32 %v4174_v49, %v4174_v49  ;;  %v1493_v17 = vmul.f32 %v4177_v51, %v4177_v51  ;;  %1969 = vmatpush2.bf16.msra.mxu1 %v3260_v4  ;;  %v3313_v4 = vld [vmem:[%s4592_s10 + $0x164] ss:$8 sps:$4 sm:$0xff]  }
 0xb3e   :  { %1970 = vmatprep.subr.bf16.mxu1 %v3268_v61  ;;  %v3311_v61 = vld [vmem:[%s4592_s10 + $0x160] ss:$8 sps:$4 sm:$0xff]  }
 0xb3f   :  { %v4184_v11 = vsub.f32 %v4059_v63, %v1487_v53  ;;  %v4187_v8 = vsub.f32 %v4061_v47, %v1487_v53  ;;  %v1496_v59 = vadd.f32 %v1493_v17, %v1492_v54  ;;  %v3266_v63 = vld [vmem:[%s4591_s8 + $0x1a0] ss:$16 sps:$4 sm:$0xff]   ;;  %v3269_v47 = vld [vmem:[%s4591_s8 + $0x1a8] ss:$16 sps:$4 sm:$0xff]  }
 0xb40   :  { %2014 = vmatpush2.bf16.msra.mxu0 %v3269_v47  ;;  %v3314_v47 = vld [vmem:[%s4592_s10 + $0x50] ss:$8 sps:$4 sm:$0xff]  }
 0xb41   :  { %1497 = vadd.xlane.f32.xlu0 %v1496_v59  ;;  %v1494_v43 = vmul.f32 %v4184_v11, %v4184_v11  ;;  %v1495_v55 = vmul.f32 %v4187_v8, %v4187_v8  ;;  %1971 = vmatpush2.bf16.msra.mxu1 %v3266_v63  ;;  %v3319_v63 = vld [vmem:[%s4592_s10 + $0x154] ss:$8 sps:$4 sm:$0xff]  }
 0xb42   :  { %1972 = vmatprep.subr.bf16.mxu1 %v3274_v0  ;;  %2015 = vmatprep.subr.bf16.mxu0 %v3277_v2  ;;  %v3317_v0 = vld [vmem:[%s4592_s10 + $0x150] ss:$8 sps:$4 sm:$0xff]   ;;  %v3320_v2 = vld [vmem:[%s4592_s10 + $0x40] ss:$8 sps:$4 sm:$0xff]  }
 0xb43   :  { %v1499_v18 = vadd.f32 %v1495_v55, %v1494_v43 }
 0xb44   :  { %2016 = vmatpush2.bf16.msra.mxu0 %v3275_v50  ;;  %v3325_v50 = vld [vmem:[%s4592_s10 + $0x144] ss:$8 sps:$4 sm:$0xff]  }
 0xb45   :  { %1500 = vadd.xlane.f32.xlu1 %v1499_v18  ;;  %1973 = vmatpush2.bf16.msra.mxu1 %v3272_v1  ;;  %v3322_v1 = vld [vmem:[%s4592_s10 + $0x44] ss:$8 sps:$4 sm:$0xff]  }
 0xb46   :  { %1974 = vmatprep.subr.bf16.mxu1 %v3280_v3  ;;  %2017 = vmatprep.subr.bf16.mxu0 %v3283_v5  ;;  %v3323_v3 = vld [vmem:[%s4592_s10 + $0x140] ss:$8 sps:$4 sm:$0xff]   ;;  %v3328_v5 = vld [vmem:[%s4592_s10 + $0x34] ss:$8 sps:$4 sm:$0xff]  }
 0xb48   :  { %2018 = vmatpush2.bf16.msra.mxu0 %v3281_v12  ;;  %v3326_v12 = vld [vmem:[%s4592_s10 + $0x30] ss:$8 sps:$4 sm:$0xff]  }
 0xb49   :  { %1975 = vmatpush2.bf16.msra.mxu1 %v3278_v10  ;;  %2019 = vmatprep.subr.bf16.mxu0 %v3289_v14  ;;  %v3331_v10 = vld [vmem:[%s4592_s10 + $0x134] ss:$8 sps:$4 sm:$0xff]   ;;  %v3334_v14 = vld [vmem:[%s4592_s10 + $0x24] ss:$8 sps:$4 sm:$0xff]  }
 0xb4a   :  { %1976 = vmatprep.subr.bf16.mxu1 %v3286_v13  ;;  %v3329_v13 = vld [vmem:[%s4592_s10 + $0x130] ss:$8 sps:$4 sm:$0xff]  }
 0xb4c   :  { %2020 = vmatpush2.bf16.msra.mxu0 %v3287_v16  ;;  %v3332_v16 = vld [vmem:[%s4592_s10 + $0x20] ss:$8 sps:$4 sm:$0xff]  }
 0xb4d   :  { %1977 = vmatpush2.bf16.msra.mxu1 %v3284_v60  ;;  %2021 = vmatprep.subr.bf16.mxu0 %v3295_v19  ;;  %v3337_v60 = vld [vmem:[%s4592_s10 + $0x124] ss:$8 sps:$4 sm:$0xff]   ;;  %v3340_v19 = vld [vmem:[%s4592_s10 + $0x14] ss:$8 sps:$4 sm:$0xff]  }
 0xb4e   :  { %1978 = vmatprep.subr.bf16.mxu1 %v3292_v20  ;;  %v3335_v20 = vld [vmem:[%s4592_s10 + $0x120] ss:$8 sps:$4 sm:$0xff]  }
 0xb50   :  { %2022 = vmatpush2.bf16.msra.mxu0 %v3293_v23  ;;  %v3338_v23 = vld [vmem:[%s4592_s10 + $0x10] ss:$8 sps:$4 sm:$0xff]  }
 0xb51   :  { %1979 = vmatpush2.bf16.msra.mxu1 %v3290_v21  ;;  %2023 = vmatprep.subr.bf16.mxu0 %v3301_v25  ;;  %v3343_v21 = vld [vmem:[%s4592_s10 + $0x114] ss:$8 sps:$4 sm:$0xff]   ;;  %v3346_v25 = vld [vmem:[%s4592_s10 + $0x4] ss:$8 sps:$4 sm:$0xff]  }
 0xb52   :  { %1980 = vmatprep.subr.bf16.mxu1 %v3298_v24  ;;  %v3341_v24 = vld [vmem:[%s4592_s10 + $0x110] ss:$8 sps:$4 sm:$0xff]  }
 0xb54   :  { %2024 = vmatpush2.bf16.msra.mxu0 %v3299_v27  ;;  %v3344_v27 = vld [vmem:[%s4592_s10] ss:$8 sps:$4 sm:$0xff]  }
 0xb55   :  { %1981 = vmatpush2.bf16.msra.mxu1 %v3296_v26  ;;  %2551 = vmatprep.subr.bf16.mxu0 %v3307_v28  ;;  %v3349_v26 = vld [vmem:[%s4592_s10 + $0x104] ss:$8 sps:$4 sm:$0xff]   ;;  %v3352_v28 = vld [vmem:[%s4592_s10 + $0xf4] ss:$8 sps:$4 sm:$0xff]  }
 0xb56   :  { %2508 = vmatprep.subr.bf16.mxu1 %v3304_v22  ;;  %v3347_v22 = vld [vmem:[%s4592_s10 + $0x100] ss:$8 sps:$4 sm:$0xff]  }
 0xbca   :  { %v1498_v29 = vpop.xlane.xlu0 %1497 }
 0xbcb   :  { %v1502_v30 = vmul.f32 0.00390625, %v1498_v29  ;;  %v3355_v29 = vld [vmem:[%s4592_s10 + $0x1f4] ss:$8 sps:$4 sm:$0xff]  }
 0xbcd   :  { %v1504_v31 = vadd.f32 1e-05, %v1502_v30  ;;  %v3350_v30 = vld [vmem:[%s4592_s10 + $0xf0] ss:$8 sps:$4 sm:$0xff]  }
 0xbce   :  { %v1501_v32 = vpop.xlane.xlu1 %1500 }
 0xbcf   :  { %3414 = vrsqrt.f32 %v1504_v31  ;;  %v1503_v33 = vmul.f32 0.00390625, %v1501_v32  ;;  %v3353_v31 = vld [vmem:[%s4592_s10 + $0x1f0] ss:$8 sps:$4 sm:$0xff]   ;;  %v3358_v32 = vld [vmem:[%s4592_s10 + $0xe4] ss:$8 sps:$4 sm:$0xff]  }
 0xbd1   :  { %v1505_v34 = vadd.f32 1e-05, %v1503_v33  ;;  %v3361_v33 = vld [vmem:[%s4592_s10 + $0x1e4] ss:$8 sps:$4 sm:$0xff]  }
 0xbd3   :  { %3416 = vrsqrt.f32 %v1505_v34  ;;  %v3356_v34 = vld [vmem:[%s4592_s10 + $0xe0] ss:$8 sps:$4 sm:$0xff]  }
 0xbdc   :  { %v3415_v58 = vpop.eup %3414 }
 0xbdd   :  { %v1509_v41 = vmul.f32 %v3415_v58, %v4177_v51  ;;  %v1508_v45 = vmul.f32 %v3415_v58, %v4174_v49  ;;  %v3364_v58 = vld [vmem:[%s4592_s10 + $0xd4] ss:$8 sps:$4 sm:$0xff]  }
 0xbdf   :  { %v1524_v52 = vmul.f32 %v1520_v44, %v1509_v41  ;;  %v1523_v54 = vmul.f32 %v1516_v42, %v1508_v45  ;;  %v3362_v41 = vld [vmem:[%s4592_s10 + $0xd0] ss:$8 sps:$4 sm:$0xff]   ;;  %v3373_v45 = vld [vmem:[%s4592_s10 + $0x1c4] ss:$8 sps:$4 sm:$0xff]  }
 0xbe0   :  { %v3417_v46 = vpop.eup %3416 }
 0xbe1   :  { %v1511_v15 = vmul.f32 %v3417_v46, %v4187_v8  ;;  %v1510_v53 = vmul.f32 %v3417_v46, %v4184_v11  ;;  %v4297_v51 = vadd.f32 %v1535_v48, %v1524_v52  ;;  %v4301_v55 = vadd.f32 %v1531_v38, %v1523_v54  ;;  %v3302_v11 = vld [vmem:[%s4592_s10 + $0x70] ss:$8 sps:$4 sm:$0xff]   ;;  %v3368_v46 = vld [vmem:[%s4592_s10 + $0xc0] ss:$8 sps:$4 sm:$0xff]   ;;  %v3382_v54 = vld [vmem:[%s4592_s10 + $0xa4] ss:$8 sps:$4 sm:$0xff]  }
 0xbe2   :  { %v3374_v52 = vld [vmem:[%s4592_s10 + $0xb0] ss:$8 sps:$4 sm:$0xff]  }
 0xbe3   :  { %v1526_v17 = vmul.f32 %v1520_v44, %v1511_v15  ;;  %v1525_v59 = vmul.f32 %v1516_v42, %v1510_v53  ;;  %v3365_v42 = vld [vmem:[%s4592_s10 + $0x1d0] ss:$8 sps:$4 sm:$0xff]   ;;  %v3370_v44 = vld [vmem:[%s4592_s10 + $0xc4] ss:$8 sps:$4 sm:$0xff]   ;;  %v3379_v15 = vld [vmem:[%s4592_s10 + $0x1b4] ss:$8 sps:$4 sm:$0xff]  }
 0xbe4   :  { %v3377_v53 = vld [vmem:[%s4592_s10 + $0x1b0] ss:$8 sps:$4 sm:$0xff]  }
 0xbe5   :  { %v4299_v43 = vadd.f32 %v1535_v48, %v1526_v17  ;;  %v4303_v49 = vadd.f32 %v1531_v38, %v1525_v59  ;;  %v3371_v38 = vld [vmem:[%s4592_s10 + $0x1c0] ss:$8 sps:$4 sm:$0xff]   ;;  %v3376_v48 = vld [vmem:[%s4592_s10 + $0xb4] ss:$8 sps:$4 sm:$0xff]   ;;  %v3385_v17 = vld [vmem:[%s4592_s10 + $0x1a4] ss:$8 sps:$4 sm:$0xff]  }
 0xbe6   :  { %v3380_v59 = vld [vmem:[%s4592_s10 + $0xa0] ss:$8 sps:$4 sm:$0xff]  }
 0xbe7   :  { %v1543_v18 = vpack.c.bf16 %v4299_v43, %v4297_v51  ;;  %v1542_v8 = vpack.c.bf16 %v4303_v49, %v4301_v55 }
 0xbe9   :  { %1982 = vmatprep.mubr.bf16.mxu1 %v1543_v18  ;;  %2025 = vmatprep.mubr.bf16.mxu0 %v1543_v18  ;;  %v3383_v18 = vld [vmem:[%s4592_s10 + $0x1a0] ss:$8 sps:$4 sm:$0xff]  }
 0xbea   :  { %1983 = vmatmul.mubr.bf16.vlgmr.msra.gmra.mxu1 %v1542_v8  ;;  %2026 = vmatmul.mubr.bf16.vlgmr.msra.gmra.mxu0 %v1542_v8  ;;  %v3388_v8 = vld [vmem:[%s4592_s10 + $0x94] ss:$8 sps:$4 sm:$0xff]  }
 0xbeb   :  { %2509 = vmatpush1.bf16.msra.mxu1 %v3302_v11  ;;  %2552 = vmatpush1.bf16.msra.mxu0 %v3305_v35  ;;  %v3391_v11 = vld [vmem:[%s4592_s10 + $0x194] ss:$8 sps:$4 sm:$0xff]   ;;  %v3386_v35 = vld [vmem:[%s4592_s10 + $0x90] ss:$8 sps:$4 sm:$0xff]  }
 0xbec   :  { %2510 = vmatprep.subr.bf16.mxu1 %v3310_v56  ;;  %2553 = vmatprep.subr.bf16.mxu0 %v3313_v4  ;;  %v3389_v56 = vld [vmem:[%s4592_s10 + $0x190] ss:$8 sps:$4 sm:$0xff]   ;;  %v3392_v4 = vld [vmem:[%s4592_s10 + $0x80] ss:$8 sps:$4 sm:$0xff]  }
 0xbef   :  { %2511 = vmatpush1.bf16.msra.mxu1 %v3308_v57  ;;  %2554 = vmatpush1.bf16.msra.mxu0 %v3311_v61  ;;  %v3394_v57 = vld [vmem:[%s4592_s10 + $0x84] ss:$8 sps:$4 sm:$0xff]   ;;  %v3395_v61 = vld [vmem:[%s4592_s10 + $0x180] ss:$8 sps:$4 sm:$0xff]  }
 0xbf0   :  { %2512 = vmatprep.subr.bf16.mxu1 %v3316_v62  ;;  %2555 = vmatprep.subr.bf16.mxu0 %v3319_v63  ;;  %v3397_v62 = vld [vmem:[%s4592_s10 + $0x184] ss:$8 sps:$4 sm:$0xff]   ;;  %v1608_v63 = vld [vmem:[%s4595_s9] sm:$0xf] }
 0xbf3   :  { %2513 = vmatpush1.bf16.msra.mxu1 %v3314_v47  ;;  %2556 = vmatpush1.bf16.msra.mxu0 %v3317_v0  ;;  %v1613_v47 = vrot.slane %v1608_v63, %v3737_v9  ;;  %v1621_v0 = vrot.slane %v1608_v63, %v163_v7 }
 0xbf4   :  { %2514 = vmatprep.subr.bf16.mxu1 %v3322_v1  ;;  %2557 = vmatprep.subr.bf16.mxu0 %v3325_v50  ;;  %v1617_v1 = vrot.slane %v1608_v63, %v3885_v39  ;;  %v1625_v50 = vrot.slane %v1608_v63, %v167_v37 }
 0xbf7   :  { %2515 = vmatpush1.bf16.msra.mxu1 %v3320_v2  ;;  %2558 = vmatpush1.bf16.msra.mxu0 %v3323_v3 }
 0xbf8   :  { %2516 = vmatprep.subr.bf16.mxu1 %v3328_v5  ;;  %2559 = vmatprep.subr.bf16.mxu0 %v3331_v10 }
 0xbfb   :  { %2517 = vmatpush1.bf16.msra.mxu1 %v3326_v12  ;;  %2560 = vmatpush1.bf16.msra.mxu0 %v3329_v13 }
 0xbfc   :  { %2518 = vmatprep.subr.bf16.mxu1 %v3334_v14  ;;  %2561 = vmatprep.subr.bf16.mxu0 %v3337_v60 }
 0xbff   :  { %2519 = vmatpush1.bf16.msra.mxu1 %v3332_v16  ;;  %2562 = vmatpush1.bf16.msra.mxu0 %v3335_v20 }
 0xc00   :  { %2520 = vmatprep.subr.bf16.mxu1 %v3340_v19  ;;  %2563 = vmatprep.subr.bf16.mxu0 %v3343_v21 }
 0xc03   :  { %2521 = vmatpush1.bf16.msra.mxu1 %v3338_v23  ;;  %2564 = vmatpush1.bf16.msra.mxu0 %v3341_v24 }
 0xc04   :  { %2522 = vmatprep.subr.bf16.mxu1 %v3346_v25  ;;  %2565 = vmatprep.subr.bf16.mxu0 %v3349_v26 }
 0xc07   :  { %2523 = vmatpush1.bf16.msra.mxu1 %v3344_v27  ;;  %2566 = vmatpush1.bf16.msra.mxu0 %v3347_v22 }
 0xc08   :  { %2524 = vmatprep.subr.bf16.mxu1 %v3352_v28  ;;  %2567 = vmatprep.subr.bf16.mxu0 %v3355_v29 }
 0xc0b   :  { %2525 = vmatpush2.bf16.msra.mxu1 %v3350_v30  ;;  %2568 = vmatpush2.bf16.msra.mxu0 %v3353_v31 }
 0xc0c   :  { %2526 = vmatprep.subr.bf16.mxu1 %v3358_v32  ;;  %2569 = vmatprep.subr.bf16.mxu0 %v3361_v33 }
 0xc0f   :  { %2527 = vmatpush2.bf16.msra.mxu1 %v3356_v34  ;;  %2570 = vmatpush2.bf16.msra.mxu0 %v3359_v36 }
 0xc10   :  { %2528 = vmatprep.subr.bf16.mxu1 %v3364_v58  ;;  %2571 = vmatprep.subr.bf16.mxu0 %v3367_v40 }
 0xc13   :  { %2529 = vmatpush2.bf16.msra.mxu1 %v3362_v41  ;;  %2572 = vmatpush2.bf16.msra.mxu0 %v3365_v42 }
 0xc14   :  { %2530 = vmatprep.subr.bf16.mxu1 %v3370_v44  ;;  %2573 = vmatprep.subr.bf16.mxu0 %v3373_v45 }
 0xc17   :  { %2531 = vmatpush2.bf16.msra.mxu1 %v3368_v46  ;;  %2574 = vmatpush2.bf16.msra.mxu0 %v3371_v38 }
 0xc18   :  { %2532 = vmatprep.subr.bf16.mxu1 %v3376_v48  ;;  %2575 = vmatprep.subr.bf16.mxu0 %v3379_v15 }
 0xc1b   :  { %2533 = vmatpush2.bf16.msra.mxu1 %v3374_v52  ;;  %2576 = vmatpush2.bf16.msra.mxu0 %v3377_v53 }
 0xc1c   :  { %2534 = vmatprep.subr.bf16.mxu1 %v3382_v54  ;;  %2577 = vmatprep.subr.bf16.mxu0 %v3385_v17 }
 0xc1f   :  { %2535 = vmatpush2.bf16.msra.mxu1 %v3380_v59  ;;  %2578 = vmatpush2.bf16.msra.mxu0 %v3383_v18 }
 0xc20   :  { %2536 = vmatprep.subr.bf16.mxu1 %v3388_v8  ;;  %2579 = vmatprep.subr.bf16.mxu0 %v3391_v11 }
 0xc23   :  { %2537 = vmatpush2.bf16.msra.mxu1 %v3386_v35  ;;  %2580 = vmatpush2.bf16.msra.mxu0 %v3389_v56 }
 0xc24   :  { %2538 = vmatprep.subr.bf16.mxu1 %v3394_v57  ;;  %2581 = vmatprep.subr.bf16.mxu0 %v3397_v62 }
 0xc27   :  { %2539 = vmatpush2.bf16.msra.mxu1 %v3392_v4  ;;  %2582 = vmatpush2.bf16.msra.mxu0 %v3395_v61 }
 0xcaa   :  { %v1984_v2 = vpop.f32.mrf.mxu1  ;;  %v2027_v3 = vpop.f32.mrf.mxu0 }
 0xcab   :  { %v4504_v5 = vadd.f32 %v1984_v2, %v1613_v47  ;;  %v4506_v10 = vadd.f32 %v2027_v3, %v1621_v0 }
 0xcac   :  { %v1986_v12 = vpop.f32.mrf.mxu1  ;;  %v2029_v13 = vpop.f32.mrf.mxu0 }
 0xcad   :  { %v2036_v14 = vmul.f32 %v4504_v5, %v4504_v5  ;;  %v2038_v60 = vmul.f32 %v4506_v10, %v4506_v10  ;;  %v4512_v7 = vadd.f32 %v1986_v12, %v1617_v1  ;;  %v4514_v16 = vadd.f32 %v2029_v13, %v1625_v50 }
 0xcae   :  { %v1988_v6 = vpop.f32.mrf.mxu1  ;;  %v2031_v37 = vpop.f32.mrf.mxu0 }
 0xcaf   :  { %v2044_v20 = vmul.f32 %v2036_v14, %v4504_v5  ;;  %v2046_v19 = vmul.f32 %v2038_v60, %v4506_v10  ;;  %v2037_v21 = vmul.f32 %v4512_v7, %v4512_v7  ;;  %v2039_v23 = vmul.f32 %v4514_v16, %v4514_v16 }
 0xcb0   :  { %v4522_v24 = vadd.f32 %v1988_v6, %v1613_v47  ;;  %v4524_v25 = vadd.f32 %v2031_v37, %v1621_v0  ;;  %v1990_v26 = vpop.f32.mrf.mxu1  ;;  %v2033_v27 = vpop.f32.mrf.mxu0 }
 0xcb1   :  { %v2052_v22 = vmul.f32 0.044715, %v2044_v20  ;;  %v2054_v28 = vmul.f32 0.044715, %v2046_v19  ;;  %v2045_v29 = vmul.f32 %v2037_v21, %v4512_v7  ;;  %v2047_v30 = vmul.f32 %v2039_v23, %v4514_v16 }
 0xcb2   :  { %v2040_v31 = vmul.f32 %v4522_v24, %v4522_v24  ;;  %v2042_v32 = vmul.f32 %v4524_v25, %v4524_v25  ;;  %v4532_v33 = vadd.f32 %v1990_v26, %v1617_v1  ;;  %v4534_v34 = vadd.f32 %v2033_v27, %v1625_v50 }
 0xcb3   :  { %v2060_v36 = vadd.f32 %v2052_v22, %v4504_v5  ;;  %v2062_v58 = vadd.f32 %v2054_v28, %v4506_v10  ;;  %v2053_v40 = vmul.f32 0.044715, %v2045_v29  ;;  %v2055_v41 = vmul.f32 0.044715, %v2047_v30 }
 0xcb4   :  { %v2048_v42 = vmul.f32 %v2040_v31, %v4522_v24  ;;  %v2050_v44 = vmul.f32 %v2042_v32, %v4524_v25  ;;  %v2041_v45 = vmul.f32 %v4532_v33, %v4532_v33  ;;  %v2043_v46 = vmul.f32 %v4534_v34, %v4534_v34 }
 0xcb5   :  { %v2068_v38 = vmul.f32 0.7978846, %v2060_v36  ;;  %v2070_v48 = vmul.f32 0.7978846, %v2062_v58  ;;  %v2061_v15 = vadd.f32 %v2053_v40, %v4512_v7  ;;  %v2063_v52 = vadd.f32 %v2055_v41, %v4514_v16 }
 0xcb6   :  { %v2056_v53 = vmul.f32 0.044715, %v2048_v42  ;;  %v2058_v54 = vmul.f32 0.044715, %v2050_v44  ;;  %v2049_v17 = vmul.f32 %v2041_v45, %v4532_v33  ;;  %v2051_v59 = vmul.f32 %v2043_v46, %v4534_v34 }
 0xcb7   :  { %3418 = vtanh.f32 %v2068_v38  ;;  %v2069_v18 = vmul.f32 0.7978846, %v2061_v15  ;;  %v2071_v8 = vmul.f32 0.7978846, %v2063_v52 }
 0xcb8   :  { %3420 = vtanh.f32 %v2070_v48  ;;  %v2064_v11 = vadd.f32 %v2056_v53, %v4522_v24  ;;  %v2066_v35 = vadd.f32 %v2058_v54, %v4524_v25  ;;  %v2057_v56 = vmul.f32 0.044715, %v2049_v17 }
 0xcb9   :  { %3422 = vtanh.f32 %v2069_v18  ;;  %v2059_v4 = vmul.f32 0.044715, %v2051_v59 }
 0xcba   :  { %3424 = vtanh.f32 %v2071_v8  ;;  %v2072_v57 = vmul.f32 0.7978846, %v2064_v11  ;;  %v2074_v61 = vmul.f32 0.7978846, %v2066_v35  ;;  %v2065_v62 = vadd.f32 %v2057_v56, %v4532_v33 }
 0xcbb   :  { %v2067_v63 = vadd.f32 %v2059_v4, %v4534_v34 }
 0xcbc   :  { %3426 = vtanh.f32 %v2072_v57  ;;  %v2073_v47 = vmul.f32 0.7978846, %v2065_v62 }
 0xcbd   :  { %3428 = vtanh.f32 %v2074_v61  ;;  %v2075_v0 = vmul.f32 0.7978846, %v2067_v63 }
 0xcbe   :  { %3430 = vtanh.f32 %v2073_v47 }
 0xcbf   :  { %3432 = vtanh.f32 %v2075_v0 }
 0xcc4   :  { %v3419_v1 = vpop.eup %3418 }
 0xcc5   :  { %v3421_v50 = vpop.eup %3420  ;;  %v2084_v14 = vadd.f32 1.0, %v3419_v1 }
 0xcc6   :  { %v3423_v2 = vpop.eup %3422  ;;  %v2086_v37 = vadd.f32 1.0, %v3421_v50 }
 0xcc7   :  { %v3425_v3 = vpop.eup %3424  ;;  %v2085_v12 = vadd.f32 1.0, %v3423_v2  ;;  %v2092_v28 = vmul.f32 0.5, %v2084_v14 }
 0xcc8   :  { %v2087_v60 = vadd.f32 1.0, %v3425_v3  ;;  %v2094_v32 = vmul.f32 0.5, %v2086_v37 }
 0xcc9   :  { %v3427_v13 = vpop.eup %3426  ;;  %v2093_v22 = vmul.f32 0.5, %v2085_v12  ;;  %v2100_v45 = vmul.f32 %v2092_v28, %v4504_v5 }
 0xcca   :  { %v3429_v6 = vpop.eup %3428  ;;  %v2088_v20 = vadd.f32 1.0, %v3427_v13  ;;  %v2095_v31 = vmul.f32 0.5, %v2087_v60  ;;  %v2102_v48 = vmul.f32 %v2094_v32, %v4506_v10 }
 0xccb   :  { %v3431_v19 = vpop.eup %3430  ;;  %v2090_v21 = vadd.f32 1.0, %v3429_v6  ;;  %v2101_v42 = vmul.f32 %v2093_v22, %v4512_v7  ;;  %v2176_v7 = vld [vmem:[%s4596_s11] sm:$0x3] }
 0xccc   :  { %v3433_v23 = vpop.eup %3432  ;;  %v2096_v26 = vmul.f32 0.5, %v2088_v20  ;;  %v2089_v27 = vadd.f32 1.0, %v3431_v19  ;;  %v2103_v46 = vmul.f32 %v2095_v31, %v4514_v16  ;;  %v2181_v5 = vrot.slane %v2176_v7, %v3737_v9  ;;  %v2599_v31 = vld [vmem:[%s4598_s13] sm:$0x3] }
 0xccd   :  { %v2098_v29 = vmul.f32 0.5, %v2090_v21  ;;  %v2091_v30 = vadd.f32 1.0, %v3433_v23  ;;  %v2185_v16 = vrot.slane %v2176_v7, %v3885_v39 }
 0xcce   :  { %v2097_v36 = vmul.f32 0.5, %v2089_v27  ;;  %v2104_v58 = vmul.f32 %v2096_v26, %v4522_v24 }
 0xccf   :  { %v2099_v40 = vmul.f32 0.5, %v2091_v30  ;;  %v2106_v41 = vmul.f32 %v2098_v29, %v4524_v25  ;;  %v2598_v30 = vld [vmem:[%s4597_s12] sm:$0x3] }
 0xcd0   :  { %v2105_v44 = vmul.f32 %v2097_v36, %v4532_v33  ;;  %v2108_v53 = vpack.c.bf16 %v2104_v58, %v2100_v45  ;;  %v2636_v32 = vrot.slane %v2598_v30, %v3737_v9  ;;  %v2640_v36 = vrot.slane %v2598_v30, %v3885_v39 }
 0xcd1   :  { %v2107_v38 = vmul.f32 %v2099_v40, %v4534_v34  ;;  %v2110_v24 = vpack.c.bf16 %v2106_v41, %v2102_v48  ;;  %v2651_v40 = vrot.slane %v2599_v31, %v3737_v9  ;;  %v2655_v41 = vrot.slane %v2599_v31, %v3885_v39 }
 0xcd2   :  { %v2109_v15 = vpack.c.bf16 %v2105_v44, %v2101_v42 }
 0xcd3   :  { %v2111_v52 = vpack.c.bf16 %v2107_v38, %v2103_v46 }
 0xcd4   :  { %2540 = vmatprep.mubr.bf16.mxu1 %v2109_v15 }
 0xcd5   :  { %2583 = vmatprep.mubr.bf16.mxu0 %v2111_v52  ;;  %2541 = vmatmul.mubr.bf16.vlgmr.msra.gmra.mxu1 %v2108_v53 }
 0xcd6   :  { %2584 = vmatmul.mubr.bf16.vlgmr.msra.gmra.mxu0 %v2110_v24 }
 0xd95   :  { %v2542_v25 = vpop.f32.mrf.mxu1 }
 0xd96   :  { %v2543_v33 = vadd.f32 %v2542_v25, %v2181_v5  ;;  %v2585_v34 = vpop.f32.mrf.mxu0 }
 0xd97   :  { %v2544_v10 = vpop.f32.mrf.mxu1 }
 0xd98   :  { %v2586_v54 = vadd.f32 %v2585_v34, %v2543_v33  ;;  %v2545_v17 = vadd.f32 %v2544_v10, %v2185_v16  ;;  %v2587_v59 = vpop.f32.mrf.mxu0 }
 0xd99   :  { %v2546_v18 = vpop.f32.mrf.mxu1 }
 0xd9a   :  { %v2588_v8 = vadd.f32 %v2587_v59, %v2545_v17  ;;  %v2547_v11 = vadd.f32 %v2546_v18, %v2181_v5  ;;  %v2589_v35 = vpop.f32.mrf.mxu0  ;;  %v2594_v4 = vadd.f32 %v2586_v54, %v4301_v55 }
 0xd9b   :  { %v2548_v56 = vpop.f32.mrf.mxu1 }
 0xd9c   :  { %v2595_v57 = vadd.f32 %v2588_v8, %v4297_v51  ;;  %v2590_v61 = vadd.f32 %v2589_v35, %v2547_v11  ;;  %v2549_v62 = vadd.f32 %v2548_v56, %v2185_v16  ;;  %v2591_v63 = vpop.f32.mrf.mxu0 }
 0xd9e   :  { %v2592_v47 = vadd.f32 %v2591_v63, %v2549_v62  ;;  %v2600_v0 = vadd.f32 %v2595_v57, %v2594_v4  ;;  %v2596_v1 = vadd.f32 %v2590_v61, %v4303_v49 }
 0xda0   :  { %v2597_v50 = vadd.f32 %v2592_v47, %v4299_v43  ;;  %2601 = vadd.xlane.f32.xlu0 %v2600_v0 }
 0xda2   :  { %v2603_v2 = vadd.f32 %v2597_v50, %v2596_v1 }
 0xda4   :  { %2604 = vadd.xlane.f32.xlu1 %v2603_v2 }
 0xe29   :  { %v2602_v3 = vpop.xlane.xlu0 %2601 }
 0xe2a   :  { %v2606_v12 = vmul.f32 0.00390625, %v2602_v3 }
 0xe2c   :  { %v2608_v13 = vsub.f32 %v2594_v4, %v2606_v12  ;;  %v2609_v14 = vsub.f32 %v2595_v57, %v2606_v12 }
 0xe2d   :  { %v2605_v60 = vpop.xlane.xlu1 %2604 }
 0xe2e   :  { %v2607_v55 = vmul.f32 0.00390625, %v2605_v60  ;;  %v2612_v6 = vmul.f32 %v2608_v13, %v2608_v13  ;;  %v2613_v51 = vmul.f32 %v2609_v14, %v2609_v14 }
 0xe30   :  { %v2610_v37 = vsub.f32 %v2596_v1, %v2607_v55  ;;  %v2611_v20 = vsub.f32 %v2597_v50, %v2607_v55  ;;  %v2616_v19 = vadd.f32 %v2613_v51, %v2612_v6 }
 0xe32   :  { %2617 = vadd.xlane.f32.xlu0 %v2616_v19  ;;  %v2614_v21 = vmul.f32 %v2610_v37, %v2610_v37  ;;  %v2615_v23 = vmul.f32 %v2611_v20, %v2611_v20 }
 0xe34   :  { %v2619_v49 = vadd.f32 %v2615_v23, %v2614_v21 }
 0xe36   :  { %2620 = vadd.xlane.f32.xlu1 %v2619_v49 }
 0xebb   :  { %v2618_v43 = vpop.xlane.xlu0 %2617 }
 0xebc   :  { %v2622_v26 = vmul.f32 0.00390625, %v2618_v43 }
 0xebe   :  { %v2624_v27 = vadd.f32 1e-05, %v2622_v26 }
 0xebf   :  { %v2621_v22 = vpop.xlane.xlu1 %2620 }
 0xec0   :  { %3434 = vrsqrt.f32 %v2624_v27  ;;  %v2623_v28 = vmul.f32 0.00390625, %v2621_v22 }
 0xec2   :  { %v2625_v29 = vadd.f32 1e-05, %v2623_v28 }
 0xec4   :  { %3436 = vrsqrt.f32 %v2625_v29 }
 0xecd   :  { %v3435_v58 = vpop.eup %3434 }
 0xece   :  { %v2628_v42 = vmul.f32 %v3435_v58, %v2608_v13  ;;  %v2629_v44 = vmul.f32 %v3435_v58, %v2609_v14 }
 0xed0   :  { %v2643_v45 = vmul.f32 %v2636_v32, %v2628_v42  ;;  %v2644_v46 = vmul.f32 %v2640_v36, %v2629_v44 }
 0xed1   :  { %v3437_v38 = vpop.eup %3436 }
 0xed2   :  { %v2658_v48 = vadd.f32 %v2651_v40, %v2643_v45  ;;  %v2659_v15 = vadd.f32 %v2655_v41, %v2644_v46  ;;  %v2630_v52 = vmul.f32 %v3437_v38, %v2610_v37  ;;  %v2631_v53 = vmul.f32 %v3437_v38, %v2611_v20 }
 0xed4   :  { %v2944_v24 = vpack.c.bf16 %v2659_v15, %v2658_v48  ;;  %v2645_v7 = vmul.f32 %v2636_v32, %v2630_v52  ;;  %v2646_v5 = vmul.f32 %v2640_v36, %v2631_v53 }
 0xed6   :  { %2674 = vst [vmem:[%s4599_s14] sm:$0xff] %v2944_v24  ;;  %v2660_v16 = vadd.f32 %v2651_v40, %v2645_v7  ;;  %v2661_v9 = vadd.f32 %v2655_v41, %v2646_v5 }
 0xed8   :  { %v2945_v25 = vpack.c.bf16 %v2661_v9, %v2660_v16 }
 0xeda   :  { %2675 = vst [vmem:[%s4599_s14 + $0x8] sm:$0xff] %v2945_v25 }

</bundles_post_ra>
